<compile_context>
chip_gen: v6e
topology: v6e:2x2x1
jax: 0.10.0
libtpu: 0.0.40
codegen_flags: <defaults>
</compile_context>

<pallas_src>
import functools

import numpy as np
import jax
import jax.numpy as jnp
from jax import lax
from jax.experimental import pallas as pl
from jax.experimental.pallas import tpu as pltpu

EMBED_KERNEL = 4          # embed_kernel ctor argument (stride = k // 2 = 2)
NEG_SLOPE = 0.01          # F.leaky_relu default negative slope


# --------------------- host-side static gather matrices --------------------- #

def _conv_row_sel(h, oh, stride, pad, k):
    """Per-image circular row-gather matrices, shape (k, oh, h).
    sel[kh, r, src] = 1  iff  src == (stride*r + kh - pad) mod h."""
    sel = np.zeros((k, oh, h), np.float32)
    for kh in range(k):
        for r in range(oh):
            sel[kh, r, (stride * r + kh - pad) % h] = 1.0
    return sel


def _block_diag_group(sel, g):
    """(k, oh, h) per-image matrix -> (k, g*oh, g*h) block-diagonal batch stack."""
    k, oh, h = sel.shape
    out = np.zeros((k, g * oh, g * h), np.float32)
    for i in range(g):
        out[:, i * oh:(i + 1) * oh, i * h:(i + 1) * h] = sel
    return out


def _c3_row_sel(g, h2, hm, oh3, stride, pad, k):
    """c3 row gather composed with mp1's stride-2 row selection, acting on the
    *dense* row-max array (G*h2 - 2 rows): shape (k, g*oh3, g*h2 - 2)."""
    sel3 = _conv_row_sel(hm, oh3, stride, pad, k)              # (k, oh3, hm)
    out = np.zeros((k, g * oh3, g * h2 - 2), np.float32)
    for gi in range(g):
        for kh in range(k):
            for r in range(oh3):
                for j in range(hm):
                    if sel3[kh, r, j]:
                        out[kh, gi * oh3 + r, gi * h2 + 2 * j] = 1.0
    return out


def _c4_row_sel(g, h3, oh4, hp, pad, k):
    """c4 row gather composed with mp2's 3-row averaging window (row sums; the
    1/9 lives in the column matrix): shape (k, g*hp, g*h3)."""
    sel4 = _conv_row_sel(h3, oh4, 1, pad, k)                   # (k, oh4, h3)
    p_avg = np.zeros((hp, oh4), np.float32)
    for op in range(hp):
        p_avg[op, 2 * op:2 * op + 3] = 1.0
    sel4p = np.einsum("pr,krj->kpj", p_avg, sel4)              # (k, hp, h3)
    return _block_diag_group(sel4p, g)


def _mp1_col_sel(w2, wm, c):
    """Lane-selection picking mp1's stride-2 columns out of the dense column-max
    representation: ((w2-2)*c, wm*c)."""
    m = np.zeros(((w2 - 2) * c, wm * c), np.float32)
    for j in range(wm):
        for ch in range(c):
            m[2 * j * c + ch, j * c + ch] = 1.0
    return m


def _mp2_col_avg(w4, wp, c):
    """3-wide / stride-2 column averaging matrix with the full 1/9 folded in:
    (w4*c, wp*c)."""
    m = np.zeros((w4 * c, wp * c), np.float32)
    for op in range(wp):
        for dw in range(3):
            for ch in range(c):
                m[(2 * op + dw) * c + ch, op * c + ch] = 1.0 / 9.0
    return m


# ----------------------- banded weight matrix construction ------------------- #

def _build_conv_matrix(w_oihw, w_in, ow, stride, pad):
    """PyTorch (Cout, Cin, k, k) weights -> (k, w_in*cin, ow*cout) banded matrices.

    M[kh, w1*cin + ci, ow*cout + co] =
        sum_kw W[co, ci, kh, kw] * [ (stride*ow + kw - pad) mod w_in == w1 ]

    so `rows_kh @ M[kh]` performs the conv along W (circular wrap included) on
    the MXU — no im2col / strided slices needed in-kernel.
    """
    cout, cin, k, _ = w_oihw.shape
    w_t = jnp.transpose(w_oihw, (2, 3, 1, 0)).astype(jnp.float32)        # (kh,kw,ci,co)
    wgrid = jnp.arange(w_in)[:, None, None]                              # (w, 1, 1)
    owi = jnp.arange(ow)[None, :, None]                                  # (1, ow, 1)
    kwi = jnp.arange(k)[None, None, :]                                   # (1, 1, k)
    hit = (((stride * owi + kwi - pad) % w_in) == wgrid).astype(jnp.float32)  # (w,ow,k)
    m = jnp.einsum("woq,hqic->hwioc", hit, w_t)                          # (kh,w,ci,ow,co)
    return m.reshape(k, w_in * cin, ow * cout)


# --------------------------------- kernel ------------------------------------ #

def _embedder_kernel(x_ref,
                     sel1, m1, b1, sel2, m2, b2, sel3, m3, b3, sel4, m4, b4,
                     o_ref, *, k, mp_c):
    def conv(a, sel_ref, m_ref, b_ref, lrelu):
        acc = None
        for kh in range(k):                                    # static unroll
            rows = jnp.dot(sel_ref[kh], a, preferred_element_type=jnp.float32)
            part = jnp.dot(rows, m_ref[kh], preferred_element_type=jnp.float32)
            acc = part if acc is None else acc + part
        acc = acc + b_ref[...]
        if lrelu:
            acc = jnp.maximum(acc, NEG_SLOPE * acc)            # leaky_relu
        return acc

    a = x_ref[0].astype(jnp.float32)                           # (G*H, W*Cin)
    a = conv(a, sel1, m1, b1, True)                            # c1 + leaky_relu
    a = conv(a, sel2, m2, b2, True)                            # c2 + leaky_relu

    # mp1 (3x3 max, stride 2): dense row/column max only; the stride-2
    # selection is folded into c3's gather / banded matrices.  Rows/lanes that
    # straddle image boundaries are garbage but are never selected downstream.
    n = a.shape[0]
    rm = jnp.maximum(jnp.maximum(a[0:n - 2, :], a[1:n - 1, :]), a[2:n, :])
    wl = a.shape[1]
    c = mp_c
    cm = jnp.maximum(jnp.maximum(rm[:, 0:wl - 2 * c], rm[:, c:wl - c]),
                     rm[:, 2 * c:wl])

    a = conv(cm, sel3, m3, b3, True)                           # c3 + leaky_relu
    a = conv(a, sel4, m4, b4, False)                           # c4 with mp2 folded
    o_ref[0] = a.astype(o_ref.dtype)


# ------------------------------ forward wrapper ------------------------------ #

def embedder_forward(x_nchw, params, k=EMBED_KERNEL, group_size=None):
    B, cin0, H, W = x_nchw.shape
    s = k // 2
    p = k - 1

    if group_size is None:
        # Stack as many images as possible (<=8) per grid step.  On v7x prefer
        # group_size=B//2 so the parallel grid axis keeps both TensorCores busy.
        group_size = max(g for g in range(1, min(B, 8) + 1) if B % g == 0)
    assert B % group_size == 0, "batch must be divisible by group_size"
    G = group_size
    n_steps = B // G

    cc1, cc2, cc3, cc4 = 32, 32, 32, 8

    def conv_dims(h, w, stride):
        # Single-wrap circular padding is only valid while pad <= spatial size
        # (PyTorch has the same limit).
        assert p <= h and p <= w, "circular pad wraps more than once"
        return (h + 2 * p - k) // stride + 1, (w + 2 * p - k) // stride + 1

    h1, w1 = conv_dims(H, W, s)                      # c1
    h2, w2 = conv_dims(h1, w1, s)                    # c2
    hm, wm = (h2 - 3) // 2 + 1, (w2 - 3) // 2 + 1    # mp1
    h3, w3 = conv_dims(hm, wm, s)                    # c3
    h4, w4 = conv_dims(h3, w3, 1)                    # c4
    hp, wp = (h4 - 3) // 2 + 1, (w4 - 3) // 2 + 1    # mp2

    # Static 0/1 row-gather matrices (host-built, batch block-diagonal).
    sel1 = jnp.asarray(_block_diag_group(_conv_row_sel(H, h1, s, p, k), G))
    sel2 = jnp.asarray(_block_diag_group(_conv_row_sel(h1, h2, s, p, k), G))
    sel3 = jnp.asarray(_c3_row_sel(G, h2, hm, h3, s, p, k))     # mp1 rows folded
    sel4 = jnp.asarray(_c4_row_sel(G, h3, h4, hp, p, k))        # mp2 rows folded

    # Banded conv matrices (shared across the batch), pooling columns folded in.
    m1 = _build_conv_matrix(params["c1"][0], W, w1, s, p)
    m2 = _build_conv_matrix(params["c2"][0], w1, w2, s, p)
    m3 = jnp.einsum("dj,kjo->kdo", jnp.asarray(_mp1_col_sel(w2, wm, cc2)),
                    _build_conv_matrix(params["c3"][0], wm, w3, s, p))
    m4 = jnp.einsum("kjo,op->kjp",
                    _build_conv_matrix(params["c4"][0], w3, w4, 1, p),
                    jnp.asarray(_mp2_col_avg(w4, wp, cc4)))

    b1 = jnp.tile(params["c1"][1].astype(jnp.float32), w1).reshape(1, w1 * cc1)
    b2 = jnp.tile(params["c2"][1].astype(jnp.float32), w2).reshape(1, w2 * cc2)
    b3 = jnp.tile(params["c3"][1].astype(jnp.float32), w3).reshape(1, w3 * cc3)
    b4 = jnp.tile(params["c4"][1].astype(jnp.float32), wp).reshape(1, wp * cc4)

    x_l = jnp.transpose(x_nchw, (0, 2, 3, 1)).reshape(n_steps, G * H, W * cin0)

    const3 = lambda b: (0, 0, 0)
    const2 = lambda b: (0, 0)
    weights = (sel1, m1, b1, sel2, m2, b2, sel3, m3, b3, sel4, m4, b4)
    w_specs = [pl.BlockSpec(w.shape, const3 if w.ndim == 3 else const2)
               for w in weights]

    out = pl.pallas_call(
        functools.partial(_embedder_kernel, k=k, mp_c=cc2),
        out_shape=jax.ShapeDtypeStruct((n_steps, G * hp, wp * cc4), x_nchw.dtype),
        grid=(n_steps,),
        in_specs=[pl.BlockSpec((1, G * H, W * cin0), lambda b: (b, 0, 0))] + w_specs,
        out_specs=pl.BlockSpec((1, G * hp, wp * cc4), lambda b: (b, 0, 0)),
        compiler_params=pltpu.CompilerParams(
            dimension_semantics=("parallel",)),
    )(x_l, *weights)

    out = out.reshape(B, hp, wp, cc4)
    return jnp.transpose(out, (0, 3, 1, 2))


# ---------------------------- parameter init -------------------------------- #

def init_params(key, k):
    def conv_init(kk, cout, cin):
        wk, bk = jax.random.split(kk)
        fan_in = cin * k * k
        bound = 1.0 / (fan_in ** 0.5)
        w = jax.random.uniform(wk, (cout, cin, k, k), jnp.float32, -bound, bound)
        b = jax.random.uniform(bk, (cout,), jnp.float32, -bound, bound)
        return w, b

    keys = jax.random.split(key, 4)
    return {
        "c1": conv_init(keys[0], 32, 4),
        "c2": conv_init(keys[1], 32, 32),
        "c3": conv_init(keys[2], 32, 32),
        "c4": conv_init(keys[3], 8, 32),
    }


# --------------------------- pure-JAX reference ------------------------------ #

def reference_forward(x_nchw, params, k=EMBED_KERNEL):
    # XLA reference mirroring the PyTorch forward exactly.
    s = k // 2
    x = jnp.transpose(x_nchw, (0, 2, 3, 1))

    def conv(z, w, b, stride):
        p = k - 1
        zp = jnp.pad(z, ((0, 0), (p, p), (p, p), (0, 0)), mode="wrap")
        w_hwio = jnp.transpose(w, (2, 3, 1, 0))
        out = lax.conv_general_dilated(
            zp, w_hwio, window_strides=(stride, stride), padding="VALID",
            dimension_numbers=("NHWC", "HWIO", "NHWC"))
        return out + b

    def lrelu(z):
        return jnp.where(z >= 0, z, NEG_SLOPE * z)

    z = lrelu(conv(x, *params["c1"], s))
    z = lrelu(conv(z, *params["c2"], s))
    z = lax.reduce_window(z, jnp.float32(-jnp.inf), lax.max,
                          (1, 3, 3, 1), (1, 2, 2, 1), "VALID")
    z = lrelu(conv(z, *params["c3"], s))
    z = conv(z, *params["c4"], 1)
    z = lax.reduce_window(z, jnp.float32(0.0), lax.add,
                          (1, 3, 3, 1), (1, 2, 2, 1), "VALID") / 9.0
    return jnp.transpose(z, (0, 3, 1, 2))


if __name__ == "__main__":
    key = jax.random.PRNGKey(0)
    xkey, pkey = jax.random.split(key)
    params = init_params(pkey, EMBED_KERNEL)

    # batch=2, channels=4, spatial 16x16 (NCHW).  Default group folds the whole
    # batch into a single grid step (block-diagonal stacking).
    x = jax.random.normal(xkey, (2, 4, 16, 16), jnp.float32)
    fwd = jax.jit(embedder_forward)
    out = jax.block_until_ready(fwd(x, params))
    assert out.shape == (2, 8, 2, 2), out.shape
    ref = jax.block_until_ready(reference_forward(x, params))
    err = float(jnp.max(jnp.abs(out - ref)))
    assert jnp.allclose(out, ref, atol=2e-4, rtol=2e-4), err

    # batch=4 with 2 images per step (grid=(2,)): exercises the multi-step path
    # (on v7x both TensorCores get work through the "parallel" grid axis).
    x4 = jax.random.normal(jax.random.PRNGKey(1), (4, 4, 16, 16), jnp.float32)
    fwd2 = jax.jit(functools.partial(embedder_forward, group_size=2))
    out4 = jax.block_until_ready(fwd2(x4, params))
    assert out4.shape == (4, 8, 2, 2), out4.shape
    ref4 = jax.block_until_ready(reference_forward(x4, params))
    err4 = float(jnp.max(jnp.abs(out4 - ref4)))
    assert jnp.allclose(out4, ref4, atol=2e-4, rtol=2e-4), err4

    print("KERNEL_OK")
</pallas_src>

<mosaic_0001>
module attributes {stable_mosaic.version = 11 : i64} {
  func.func @_embedder_kernel(%arg0: i32, %arg1: memref<1x32x64xf32, #tpu.memory_space<vmem>>, %arg2: memref<4x20x32xf32, #tpu.memory_space<vmem>>, %arg3: memref<4x64x320xf32, #tpu.memory_space<vmem>>, %arg4: memref<1x320xf32, #tpu.memory_space<vmem>>, %arg5: memref<4x14x20xf32, #tpu.memory_space<vmem>>, %arg6: memref<4x320x224xf32, #tpu.memory_space<vmem>>, %arg7: memref<1x224xf32, #tpu.memory_space<vmem>>, %arg8: memref<4x6x12xf32, #tpu.memory_space<vmem>>, %arg9: memref<4x160x96xf32, #tpu.memory_space<vmem>>, %arg10: memref<1x96xf32, #tpu.memory_space<vmem>>, %arg11: memref<4x4x6xf32, #tpu.memory_space<vmem>>, %arg12: memref<4x96x16xf32, #tpu.memory_space<vmem>>, %arg13: memref<1x16xf32, #tpu.memory_space<vmem>>, %arg14: memref<1x4x16xf32, #tpu.memory_space<vmem>>) attributes {dimension_semantics = [#tpu.dimension_semantics<parallel>], iteration_bounds = array<i64: 1>, scalar_prefetch = 0 : i64, scratch_operands = 0 : i64, tpu.core_type = #tpu.core_type<tc>, window_params = [{transform_indices = @transform_0, window_bounds = array<i64: 1, 32, 64>}, {pipeline_mode = #tpu.pipeline_mode<synchronous>, transform_indices = @transform_1, window_bounds = array<i64: 4, 20, 32>}, {pipeline_mode = #tpu.pipeline_mode<synchronous>, transform_indices = @transform_2, window_bounds = array<i64: 4, 64, 320>}, {pipeline_mode = #tpu.pipeline_mode<synchronous>, transform_indices = @transform_3, window_bounds = array<i64: 1, 320>}, {pipeline_mode = #tpu.pipeline_mode<synchronous>, transform_indices = @transform_4, window_bounds = array<i64: 4, 14, 20>}, {pipeline_mode = #tpu.pipeline_mode<synchronous>, transform_indices = @transform_5, window_bounds = array<i64: 4, 320, 224>}, {pipeline_mode = #tpu.pipeline_mode<synchronous>, transform_indices = @transform_6, window_bounds = array<i64: 1, 224>}, {pipeline_mode = #tpu.pipeline_mode<synchronous>, transform_indices = @transform_7, window_bounds = array<i64: 4, 6, 12>}, {pipeline_mode = #tpu.pipeline_mode<synchronous>, transform_indices = @transform_8, window_bounds = array<i64: 4, 160, 96>}, {pipeline_mode = #tpu.pipeline_mode<synchronous>, transform_indices = @transform_9, window_bounds = array<i64: 1, 96>}, {pipeline_mode = #tpu.pipeline_mode<synchronous>, transform_indices = @transform_10, window_bounds = array<i64: 4, 4, 6>}, {pipeline_mode = #tpu.pipeline_mode<synchronous>, transform_indices = @transform_11, window_bounds = array<i64: 4, 96, 16>}, {pipeline_mode = #tpu.pipeline_mode<synchronous>, transform_indices = @transform_12, window_bounds = array<i64: 1, 16>}, {transform_indices = @transform_13, window_bounds = array<i64: 1, 4, 16>}]} {
    %c0 = arith.constant 0 : index
    %c0_0 = arith.constant 0 : index
    %c0_1 = arith.constant 0 : index
    %0 = vector.load %arg1[%c0, %c0_0, %c0_1] : memref<1x32x64xf32, #tpu.memory_space<vmem>>, vector<1x32x64xf32>
    %1 = vector.shape_cast %0 : vector<1x32x64xf32> to vector<32x64xf32>
    %c0_2 = arith.constant 0 : index
    %c0_3 = arith.constant 0 : index
    %c0_4 = arith.constant 0 : index
    %2 = vector.load %arg2[%c0_2, %c0_3, %c0_4] : memref<4x20x32xf32, #tpu.memory_space<vmem>>, vector<1x20x32xf32>
    %3 = vector.shape_cast %2 : vector<1x20x32xf32> to vector<20x32xf32>
    %cst = arith.constant dense<0.000000e+00> : vector<20x64xf32>
    %4 = tpu.matmul %3, %1, %cst {dimension_numbers = #tpu.dot_dimension_numbers<[1], [0], [0], [1], [0, 0, 1, 1], [], []>} : vector<20x32xf32>, vector<32x64xf32>, vector<20x64xf32> -> vector<20x64xf32>
    %c0_5 = arith.constant 0 : index
    %c0_6 = arith.constant 0 : index
    %c0_7 = arith.constant 0 : index
    %5 = vector.load %arg3[%c0_5, %c0_6, %c0_7] : memref<4x64x320xf32, #tpu.memory_space<vmem>>, vector<1x64x320xf32>
    %6 = vector.shape_cast %5 : vector<1x64x320xf32> to vector<64x320xf32>
    %cst_8 = arith.constant dense<0.000000e+00> : vector<20x320xf32>
    %7 = tpu.matmul %4, %6, %cst_8 {dimension_numbers = #tpu.dot_dimension_numbers<[1], [0], [0], [1], [0, 0, 1, 1], [], []>} : vector<20x64xf32>, vector<64x320xf32>, vector<20x320xf32> -> vector<20x320xf32>
    %c1 = arith.constant 1 : index
    %c0_9 = arith.constant 0 : index
    %c0_10 = arith.constant 0 : index
    %8 = vector.load %arg2[%c1, %c0_9, %c0_10] : memref<4x20x32xf32, #tpu.memory_space<vmem>>, vector<1x20x32xf32>
    %9 = vector.shape_cast %8 : vector<1x20x32xf32> to vector<20x32xf32>
    %cst_11 = arith.constant dense<0.000000e+00> : vector<20x64xf32>
    %10 = tpu.matmul %9, %1, %cst_11 {dimension_numbers = #tpu.dot_dimension_numbers<[1], [0], [0], [1], [0, 0, 1, 1], [], []>} : vector<20x32xf32>, vector<32x64xf32>, vector<20x64xf32> -> vector<20x64xf32>
    %c1_12 = arith.constant 1 : index
    %c0_13 = arith.constant 0 : index
    %c0_14 = arith.constant 0 : index
    %11 = vector.load %arg3[%c1_12, %c0_13, %c0_14] : memref<4x64x320xf32, #tpu.memory_space<vmem>>, vector<1x64x320xf32>
    %12 = vector.shape_cast %11 : vector<1x64x320xf32> to vector<64x320xf32>
    %cst_15 = arith.constant dense<0.000000e+00> : vector<20x320xf32>
    %13 = tpu.matmul %10, %12, %cst_15 {dimension_numbers = #tpu.dot_dimension_numbers<[1], [0], [0], [1], [0, 0, 1, 1], [], []>} : vector<20x64xf32>, vector<64x320xf32>, vector<20x320xf32> -> vector<20x320xf32>
    %14 = arith.addf %7, %13 : vector<20x320xf32>
    %c2 = arith.constant 2 : index
    %c0_16 = arith.constant 0 : index
    %c0_17 = arith.constant 0 : index
    %15 = vector.load %arg2[%c2, %c0_16, %c0_17] : memref<4x20x32xf32, #tpu.memory_space<vmem>>, vector<1x20x32xf32>
    %16 = vector.shape_cast %15 : vector<1x20x32xf32> to vector<20x32xf32>
    %cst_18 = arith.constant dense<0.000000e+00> : vector<20x64xf32>
    %17 = tpu.matmul %16, %1, %cst_18 {dimension_numbers = #tpu.dot_dimension_numbers<[1], [0], [0], [1], [0, 0, 1, 1], [], []>} : vector<20x32xf32>, vector<32x64xf32>, vector<20x64xf32> -> vector<20x64xf32>
    %c2_19 = arith.constant 2 : index
    %c0_20 = arith.constant 0 : index
    %c0_21 = arith.constant 0 : index
    %18 = vector.load %arg3[%c2_19, %c0_20, %c0_21] : memref<4x64x320xf32, #tpu.memory_space<vmem>>, vector<1x64x320xf32>
    %19 = vector.shape_cast %18 : vector<1x64x320xf32> to vector<64x320xf32>
    %cst_22 = arith.constant dense<0.000000e+00> : vector<20x320xf32>
    %20 = tpu.matmul %17, %19, %cst_22 {dimension_numbers = #tpu.dot_dimension_numbers<[1], [0], [0], [1], [0, 0, 1, 1], [], []>} : vector<20x64xf32>, vector<64x320xf32>, vector<20x320xf32> -> vector<20x320xf32>
    %21 = arith.addf %14, %20 : vector<20x320xf32>
    %c3 = arith.constant 3 : index
    %c0_23 = arith.constant 0 : index
    %c0_24 = arith.constant 0 : index
    %22 = vector.load %arg2[%c3, %c0_23, %c0_24] : memref<4x20x32xf32, #tpu.memory_space<vmem>>, vector<1x20x32xf32>
    %23 = vector.shape_cast %22 : vector<1x20x32xf32> to vector<20x32xf32>
    %cst_25 = arith.constant dense<0.000000e+00> : vector<20x64xf32>
    %24 = tpu.matmul %23, %1, %cst_25 {dimension_numbers = #tpu.dot_dimension_numbers<[1], [0], [0], [1], [0, 0, 1, 1], [], []>} : vector<20x32xf32>, vector<32x64xf32>, vector<20x64xf32> -> vector<20x64xf32>
    %c3_26 = arith.constant 3 : index
    %c0_27 = arith.constant 0 : index
    %c0_28 = arith.constant 0 : index
    %25 = vector.load %arg3[%c3_26, %c0_27, %c0_28] : memref<4x64x320xf32, #tpu.memory_space<vmem>>, vector<1x64x320xf32>
    %26 = vector.shape_cast %25 : vector<1x64x320xf32> to vector<64x320xf32>
    %cst_29 = arith.constant dense<0.000000e+00> : vector<20x320xf32>
    %27 = tpu.matmul %24, %26, %cst_29 {dimension_numbers = #tpu.dot_dimension_numbers<[1], [0], [0], [1], [0, 0, 1, 1], [], []>} : vector<20x64xf32>, vector<64x320xf32>, vector<20x320xf32> -> vector<20x320xf32>
    %28 = arith.addf %21, %27 : vector<20x320xf32>
    %c0_30 = arith.constant 0 : index
    %c0_31 = arith.constant 0 : index
    %29 = vector.load %arg4[%c0_30, %c0_31] : memref<1x320xf32, #tpu.memory_space<vmem>>, vector<1x320xf32>
    %30 = vector.broadcast %29 : vector<1x320xf32> to vector<20x320xf32>
    %31 = arith.addf %28, %30 : vector<20x320xf32>
    %cst_32 = arith.constant 0.00999999977 : f32
    %32 = vector.broadcast %cst_32 : f32 to vector<20x320xf32>
    %33 = arith.mulf %32, %31 : vector<20x320xf32>
    %34 = arith.maximumf %31, %33 : vector<20x320xf32>
    %c0_33 = arith.constant 0 : index
    %c0_34 = arith.constant 0 : index
    %c0_35 = arith.constant 0 : index
    %35 = vector.load %arg5[%c0_33, %c0_34, %c0_35] : memref<4x14x20xf32, #tpu.memory_space<vmem>>, vector<1x14x20xf32>
    %36 = vector.shape_cast %35 : vector<1x14x20xf32> to vector<14x20xf32>
    %cst_36 = arith.constant dense<0.000000e+00> : vector<14x320xf32>
    %37 = tpu.matmul %36, %34, %cst_36 {dimension_numbers = #tpu.dot_dimension_numbers<[1], [0], [0], [1], [0, 0, 1, 1], [], []>} : vector<14x20xf32>, vector<20x320xf32>, vector<14x320xf32> -> vector<14x320xf32>
    %c0_37 = arith.constant 0 : index
    %c0_38 = arith.constant 0 : index
    %c0_39 = arith.constant 0 : index
    %38 = vector.load %arg6[%c0_37, %c0_38, %c0_39] : memref<4x320x224xf32, #tpu.memory_space<vmem>>, vector<1x320x224xf32>
    %39 = vector.shape_cast %38 : vector<1x320x224xf32> to vector<320x224xf32>
    %cst_40 = arith.constant dense<0.000000e+00> : vector<14x224xf32>
    %40 = tpu.matmul %37, %39, %cst_40 {dimension_numbers = #tpu.dot_dimension_numbers<[1], [0], [0], [1], [0, 0, 1, 1], [], []>} : vector<14x320xf32>, vector<320x224xf32>, vector<14x224xf32> -> vector<14x224xf32>
    %c1_41 = arith.constant 1 : index
    %c0_42 = arith.constant 0 : index
    %c0_43 = arith.constant 0 : index
    %41 = vector.load %arg5[%c1_41, %c0_42, %c0_43] : memref<4x14x20xf32, #tpu.memory_space<vmem>>, vector<1x14x20xf32>
    %42 = vector.shape_cast %41 : vector<1x14x20xf32> to vector<14x20xf32>
    %cst_44 = arith.constant dense<0.000000e+00> : vector<14x320xf32>
    %43 = tpu.matmul %42, %34, %cst_44 {dimension_numbers = #tpu.dot_dimension_numbers<[1], [0], [0], [1], [0, 0, 1, 1], [], []>} : vector<14x20xf32>, vector<20x320xf32>, vector<14x320xf32> -> vector<14x320xf32>
    %c1_45 = arith.constant 1 : index
    %c0_46 = arith.constant 0 : index
    %c0_47 = arith.constant 0 : index
    %44 = vector.load %arg6[%c1_45, %c0_46, %c0_47] : memref<4x320x224xf32, #tpu.memory_space<vmem>>, vector<1x320x224xf32>
    %45 = vector.shape_cast %44 : vector<1x320x224xf32> to vector<320x224xf32>
    %cst_48 = arith.constant dense<0.000000e+00> : vector<14x224xf32>
    %46 = tpu.matmul %43, %45, %cst_48 {dimension_numbers = #tpu.dot_dimension_numbers<[1], [0], [0], [1], [0, 0, 1, 1], [], []>} : vector<14x320xf32>, vector<320x224xf32>, vector<14x224xf32> -> vector<14x224xf32>
    %47 = arith.addf %40, %46 : vector<14x224xf32>
    %c2_49 = arith.constant 2 : index
    %c0_50 = arith.constant 0 : index
    %c0_51 = arith.constant 0 : index
    %48 = vector.load %arg5[%c2_49, %c0_50, %c0_51] : memref<4x14x20xf32, #tpu.memory_space<vmem>>, vector<1x14x20xf32>
    %49 = vector.shape_cast %48 : vector<1x14x20xf32> to vector<14x20xf32>
    %cst_52 = arith.constant dense<0.000000e+00> : vector<14x320xf32>
    %50 = tpu.matmul %49, %34, %cst_52 {dimension_numbers = #tpu.dot_dimension_numbers<[1], [0], [0], [1], [0, 0, 1, 1], [], []>} : vector<14x20xf32>, vector<20x320xf32>, vector<14x320xf32> -> vector<14x320xf32>
    %c2_53 = arith.constant 2 : index
    %c0_54 = arith.constant 0 : index
    %c0_55 = arith.constant 0 : index
    %51 = vector.load %arg6[%c2_53, %c0_54, %c0_55] : memref<4x320x224xf32, #tpu.memory_space<vmem>>, vector<1x320x224xf32>
    %52 = vector.shape_cast %51 : vector<1x320x224xf32> to vector<320x224xf32>
    %cst_56 = arith.constant dense<0.000000e+00> : vector<14x224xf32>
    %53 = tpu.matmul %50, %52, %cst_56 {dimension_numbers = #tpu.dot_dimension_numbers<[1], [0], [0], [1], [0, 0, 1, 1], [], []>} : vector<14x320xf32>, vector<320x224xf32>, vector<14x224xf32> -> vector<14x224xf32>
    %54 = arith.addf %47, %53 : vector<14x224xf32>
    %c3_57 = arith.constant 3 : index
    %c0_58 = arith.constant 0 : index
    %c0_59 = arith.constant 0 : index
    %55 = vector.load %arg5[%c3_57, %c0_58, %c0_59] : memref<4x14x20xf32, #tpu.memory_space<vmem>>, vector<1x14x20xf32>
    %56 = vector.shape_cast %55 : vector<1x14x20xf32> to vector<14x20xf32>
    %cst_60 = arith.constant dense<0.000000e+00> : vector<14x320xf32>
    %57 = tpu.matmul %56, %34, %cst_60 {dimension_numbers = #tpu.dot_dimension_numbers<[1], [0], [0], [1], [0, 0, 1, 1], [], []>} : vector<14x20xf32>, vector<20x320xf32>, vector<14x320xf32> -> vector<14x320xf32>
    %c3_61 = arith.constant 3 : index
    %c0_62 = arith.constant 0 : index
    %c0_63 = arith.constant 0 : index
    %58 = vector.load %arg6[%c3_61, %c0_62, %c0_63] : memref<4x320x224xf32, #tpu.memory_space<vmem>>, vector<1x320x224xf32>
    %59 = vector.shape_cast %58 : vector<1x320x224xf32> to vector<320x224xf32>
    %cst_64 = arith.constant dense<0.000000e+00> : vector<14x224xf32>
    %60 = tpu.matmul %57, %59, %cst_64 {dimension_numbers = #tpu.dot_dimension_numbers<[1], [0], [0], [1], [0, 0, 1, 1], [], []>} : vector<14x320xf32>, vector<320x224xf32>, vector<14x224xf32> -> vector<14x224xf32>
    %61 = arith.addf %54, %60 : vector<14x224xf32>
    %c0_65 = arith.constant 0 : index
    %c0_66 = arith.constant 0 : index
    %62 = vector.load %arg7[%c0_65, %c0_66] : memref<1x224xf32, #tpu.memory_space<vmem>>, vector<1x224xf32>
    %63 = vector.broadcast %62 : vector<1x224xf32> to vector<14x224xf32>
    %64 = arith.addf %61, %63 : vector<14x224xf32>
    %cst_67 = arith.constant 0.00999999977 : f32
    %65 = vector.broadcast %cst_67 : f32 to vector<14x224xf32>
    %66 = arith.mulf %65, %64 : vector<14x224xf32>
    %67 = arith.maximumf %64, %66 : vector<14x224xf32>
    %68 = vector.extract_strided_slice %67 {offsets = [0, 0], sizes = [12, 224], strides = [1, 1]} : vector<14x224xf32> to vector<12x224xf32>
    %69 = vector.extract_strided_slice %67 {offsets = [1, 0], sizes = [12, 224], strides = [1, 1]} : vector<14x224xf32> to vector<12x224xf32>
    %70 = arith.maximumf %68, %69 : vector<12x224xf32>
    %71 = vector.extract_strided_slice %67 {offsets = [2, 0], sizes = [12, 224], strides = [1, 1]} : vector<14x224xf32> to vector<12x224xf32>
    %72 = arith.maximumf %70, %71 : vector<12x224xf32>
    %73 = vector.extract_strided_slice %72 {offsets = [0, 0], sizes = [12, 160], strides = [1, 1]} : vector<12x224xf32> to vector<12x160xf32>
    %74 = vector.extract_strided_slice %72 {offsets = [0, 32], sizes = [12, 160], strides = [1, 1]} : vector<12x224xf32> to vector<12x160xf32>
    %75 = arith.maximumf %73, %74 : vector<12x160xf32>
    %76 = vector.extract_strided_slice %72 {offsets = [0, 64], sizes = [12, 160], strides = [1, 1]} : vector<12x224xf32> to vector<12x160xf32>
    %77 = arith.maximumf %75, %76 : vector<12x160xf32>
    %c0_68 = arith.constant 0 : index
    %c0_69 = arith.constant 0 : index
    %c0_70 = arith.constant 0 : index
    %78 = vector.load %arg8[%c0_68, %c0_69, %c0_70] : memref<4x6x12xf32, #tpu.memory_space<vmem>>, vector<1x6x12xf32>
    %79 = vector.shape_cast %78 : vector<1x6x12xf32> to vector<6x12xf32>
    %cst_71 = arith.constant dense<0.000000e+00> : vector<6x160xf32>
    %80 = tpu.matmul %79, %77, %cst_71 {dimension_numbers = #tpu.dot_dimension_numbers<[1], [0], [0], [1], [0, 0, 1, 1], [], []>} : vector<6x12xf32>, vector<12x160xf32>, vector<6x160xf32> -> vector<6x160xf32>
    %c0_72 = arith.constant 0 : index
    %c0_73 = arith.constant 0 : index
    %c0_74 = arith.constant 0 : index
    %81 = vector.load %arg9[%c0_72, %c0_73, %c0_74] : memref<4x160x96xf32, #tpu.memory_space<vmem>>, vector<1x160x96xf32>
    %82 = vector.shape_cast %81 : vector<1x160x96xf32> to vector<160x96xf32>
    %cst_75 = arith.constant dense<0.000000e+00> : vector<6x96xf32>
    %83 = tpu.matmul %80, %82, %cst_75 {dimension_numbers = #tpu.dot_dimension_numbers<[1], [0], [0], [1], [0, 0, 1, 1], [], []>} : vector<6x160xf32>, vector<160x96xf32>, vector<6x96xf32> -> vector<6x96xf32>
    %c1_76 = arith.constant 1 : index
    %c0_77 = arith.constant 0 : index
    %c0_78 = arith.constant 0 : index
    %84 = vector.load %arg8[%c1_76, %c0_77, %c0_78] : memref<4x6x12xf32, #tpu.memory_space<vmem>>, vector<1x6x12xf32>
    %85 = vector.shape_cast %84 : vector<1x6x12xf32> to vector<6x12xf32>
    %cst_79 = arith.constant dense<0.000000e+00> : vector<6x160xf32>
    %86 = tpu.matmul %85, %77, %cst_79 {dimension_numbers = #tpu.dot_dimension_numbers<[1], [0], [0], [1], [0, 0, 1, 1], [], []>} : vector<6x12xf32>, vector<12x160xf32>, vector<6x160xf32> -> vector<6x160xf32>
    %c1_80 = arith.constant 1 : index
    %c0_81 = arith.constant 0 : index
    %c0_82 = arith.constant 0 : index
    %87 = vector.load %arg9[%c1_80, %c0_81, %c0_82] : memref<4x160x96xf32, #tpu.memory_space<vmem>>, vector<1x160x96xf32>
    %88 = vector.shape_cast %87 : vector<1x160x96xf32> to vector<160x96xf32>
    %cst_83 = arith.constant dense<0.000000e+00> : vector<6x96xf32>
    %89 = tpu.matmul %86, %88, %cst_83 {dimension_numbers = #tpu.dot_dimension_numbers<[1], [0], [0], [1], [0, 0, 1, 1], [], []>} : vector<6x160xf32>, vector<160x96xf32>, vector<6x96xf32> -> vector<6x96xf32>
    %90 = arith.addf %83, %89 : vector<6x96xf32>
    %c2_84 = arith.constant 2 : index
    %c0_85 = arith.constant 0 : index
    %c0_86 = arith.constant 0 : index
    %91 = vector.load %arg8[%c2_84, %c0_85, %c0_86] : memref<4x6x12xf32, #tpu.memory_space<vmem>>, vector<1x6x12xf32>
    %92 = vector.shape_cast %91 : vector<1x6x12xf32> to vector<6x12xf32>
    %cst_87 = arith.constant dense<0.000000e+00> : vector<6x160xf32>
    %93 = tpu.matmul %92, %77, %cst_87 {dimension_numbers = #tpu.dot_dimension_numbers<[1], [0], [0], [1], [0, 0, 1, 1], [], []>} : vector<6x12xf32>, vector<12x160xf32>, vector<6x160xf32> -> vector<6x160xf32>
    %c2_88 = arith.constant 2 : index
    %c0_89 = arith.constant 0 : index
    %c0_90 = arith.constant 0 : index
    %94 = vector.load %arg9[%c2_88, %c0_89, %c0_90] : memref<4x160x96xf32, #tpu.memory_space<vmem>>, vector<1x160x96xf32>
    %95 = vector.shape_cast %94 : vector<1x160x96xf32> to vector<160x96xf32>
    %cst_91 = arith.constant dense<0.000000e+00> : vector<6x96xf32>
    %96 = tpu.matmul %93, %95, %cst_91 {dimension_numbers = #tpu.dot_dimension_numbers<[1], [0], [0], [1], [0, 0, 1, 1], [], []>} : vector<6x160xf32>, vector<160x96xf32>, vector<6x96xf32> -> vector<6x96xf32>
    %97 = arith.addf %90, %96 : vector<6x96xf32>
    %c3_92 = arith.constant 3 : index
    %c0_93 = arith.constant 0 : index
    %c0_94 = arith.constant 0 : index
    %98 = vector.load %arg8[%c3_92, %c0_93, %c0_94] : memref<4x6x12xf32, #tpu.memory_space<vmem>>, vector<1x6x12xf32>
    %99 = vector.shape_cast %98 : vector<1x6x12xf32> to vector<6x12xf32>
    %cst_95 = arith.constant dense<0.000000e+00> : vector<6x160xf32>
    %100 = tpu.matmul %99, %77, %cst_95 {dimension_numbers = #tpu.dot_dimension_numbers<[1], [0], [0], [1], [0, 0, 1, 1], [], []>} : vector<6x12xf32>, vector<12x160xf32>, vector<6x160xf32> -> vector<6x160xf32>
    %c3_96 = arith.constant 3 : index
    %c0_97 = arith.constant 0 : index
    %c0_98 = arith.constant 0 : index
    %101 = vector.load %arg9[%c3_96, %c0_97, %c0_98] : memref<4x160x96xf32, #tpu.memory_space<vmem>>, vector<1x160x96xf32>
    %102 = vector.shape_cast %101 : vector<1x160x96xf32> to vector<160x96xf32>
    %cst_99 = arith.constant dense<0.000000e+00> : vector<6x96xf32>
    %103 = tpu.matmul %100, %102, %cst_99 {dimension_numbers = #tpu.dot_dimension_numbers<[1], [0], [0], [1], [0, 0, 1, 1], [], []>} : vector<6x160xf32>, vector<160x96xf32>, vector<6x96xf32> -> vector<6x96xf32>
    %104 = arith.addf %97, %103 : vector<6x96xf32>
    %c0_100 = arith.constant 0 : index
    %c0_101 = arith.constant 0 : index
    %105 = vector.load %arg10[%c0_100, %c0_101] : memref<1x96xf32, #tpu.memory_space<vmem>>, vector<1x96xf32>
    %106 = vector.broadcast %105 : vector<1x96xf32> to vector<6x96xf32>
    %107 = arith.addf %104, %106 : vector<6x96xf32>
    %cst_102 = arith.constant 0.00999999977 : f32
    %108 = vector.broadcast %cst_102 : f32 to vector<6x96xf32>
    %109 = arith.mulf %108, %107 : vector<6x96xf32>
    %110 = arith.maximumf %107, %109 : vector<6x96xf32>
    %c0_103 = arith.constant 0 : index
    %c0_104 = arith.constant 0 : index
    %c0_105 = arith.constant 0 : index
    %111 = vector.load %arg11[%c0_103, %c0_104, %c0_105] : memref<4x4x6xf32, #tpu.memory_space<vmem>>, vector<1x4x6xf32>
    %112 = vector.shape_cast %111 : vector<1x4x6xf32> to vector<4x6xf32>
    %cst_106 = arith.constant dense<0.000000e+00> : vector<4x96xf32>
    %113 = tpu.matmul %112, %110, %cst_106 {dimension_numbers = #tpu.dot_dimension_numbers<[1], [0], [0], [1], [0, 0, 1, 1], [], []>} : vector<4x6xf32>, vector<6x96xf32>, vector<4x96xf32> -> vector<4x96xf32>
    %c0_107 = arith.constant 0 : index
    %c0_108 = arith.constant 0 : index
    %c0_109 = arith.constant 0 : index
    %114 = vector.load %arg12[%c0_107, %c0_108, %c0_109] : memref<4x96x16xf32, #tpu.memory_space<vmem>>, vector<1x96x16xf32>
    %115 = vector.shape_cast %114 : vector<1x96x16xf32> to vector<96x16xf32>
    %cst_110 = arith.constant dense<0.000000e+00> : vector<4x16xf32>
    %116 = tpu.matmul %113, %115, %cst_110 {dimension_numbers = #tpu.dot_dimension_numbers<[1], [0], [0], [1], [0, 0, 1, 1], [], []>} : vector<4x96xf32>, vector<96x16xf32>, vector<4x16xf32> -> vector<4x16xf32>
    %c1_111 = arith.constant 1 : index
    %c0_112 = arith.constant 0 : index
    %c0_113 = arith.constant 0 : index
    %117 = vector.load %arg11[%c1_111, %c0_112, %c0_113] : memref<4x4x6xf32, #tpu.memory_space<vmem>>, vector<1x4x6xf32>
    %118 = vector.shape_cast %117 : vector<1x4x6xf32> to vector<4x6xf32>
    %cst_114 = arith.constant dense<0.000000e+00> : vector<4x96xf32>
    %119 = tpu.matmul %118, %110, %cst_114 {dimension_numbers = #tpu.dot_dimension_numbers<[1], [0], [0], [1], [0, 0, 1, 1], [], []>} : vector<4x6xf32>, vector<6x96xf32>, vector<4x96xf32> -> vector<4x96xf32>
    %c1_115 = arith.constant 1 : index
    %c0_116 = arith.constant 0 : index
    %c0_117 = arith.constant 0 : index
    %120 = vector.load %arg12[%c1_115, %c0_116, %c0_117] : memref<4x96x16xf32, #tpu.memory_space<vmem>>, vector<1x96x16xf32>
    %121 = vector.shape_cast %120 : vector<1x96x16xf32> to vector<96x16xf32>
    %cst_118 = arith.constant dense<0.000000e+00> : vector<4x16xf32>
    %122 = tpu.matmul %119, %121, %cst_118 {dimension_numbers = #tpu.dot_dimension_numbers<[1], [0], [0], [1], [0, 0, 1, 1], [], []>} : vector<4x96xf32>, vector<96x16xf32>, vector<4x16xf32> -> vector<4x16xf32>
    %123 = arith.addf %116, %122 : vector<4x16xf32>
    %c2_119 = arith.constant 2 : index
    %c0_120 = arith.constant 0 : index
    %c0_121 = arith.constant 0 : index
    %124 = vector.load %arg11[%c2_119, %c0_120, %c0_121] : memref<4x4x6xf32, #tpu.memory_space<vmem>>, vector<1x4x6xf32>
    %125 = vector.shape_cast %124 : vector<1x4x6xf32> to vector<4x6xf32>
    %cst_122 = arith.constant dense<0.000000e+00> : vector<4x96xf32>
    %126 = tpu.matmul %125, %110, %cst_122 {dimension_numbers = #tpu.dot_dimension_numbers<[1], [0], [0], [1], [0, 0, 1, 1], [], []>} : vector<4x6xf32>, vector<6x96xf32>, vector<4x96xf32> -> vector<4x96xf32>
    %c2_123 = arith.constant 2 : index
    %c0_124 = arith.constant 0 : index
    %c0_125 = arith.constant 0 : index
    %127 = vector.load %arg12[%c2_123, %c0_124, %c0_125] : memref<4x96x16xf32, #tpu.memory_space<vmem>>, vector<1x96x16xf32>
    %128 = vector.shape_cast %127 : vector<1x96x16xf32> to vector<96x16xf32>
    %cst_126 = arith.constant dense<0.000000e+00> : vector<4x16xf32>
    %129 = tpu.matmul %126, %128, %cst_126 {dimension_numbers = #tpu.dot_dimension_numbers<[1], [0], [0], [1], [0, 0, 1, 1], [], []>} : vector<4x96xf32>, vector<96x16xf32>, vector<4x16xf32> -> vector<4x16xf32>
    %130 = arith.addf %123, %129 : vector<4x16xf32>
    %c3_127 = arith.constant 3 : index
    %c0_128 = arith.constant 0 : index
    %c0_129 = arith.constant 0 : index
    %131 = vector.load %arg11[%c3_127, %c0_128, %c0_129] : memref<4x4x6xf32, #tpu.memory_space<vmem>>, vector<1x4x6xf32>
    %132 = vector.shape_cast %131 : vector<1x4x6xf32> to vector<4x6xf32>
    %cst_130 = arith.constant dense<0.000000e+00> : vector<4x96xf32>
    %133 = tpu.matmul %132, %110, %cst_130 {dimension_numbers = #tpu.dot_dimension_numbers<[1], [0], [0], [1], [0, 0, 1, 1], [], []>} : vector<4x6xf32>, vector<6x96xf32>, vector<4x96xf32> -> vector<4x96xf32>
    %c3_131 = arith.constant 3 : index
    %c0_132 = arith.constant 0 : index
    %c0_133 = arith.constant 0 : index
    %134 = vector.load %arg12[%c3_131, %c0_132, %c0_133] : memref<4x96x16xf32, #tpu.memory_space<vmem>>, vector<1x96x16xf32>
    %135 = vector.shape_cast %134 : vector<1x96x16xf32> to vector<96x16xf32>
    %cst_134 = arith.constant dense<0.000000e+00> : vector<4x16xf32>
    %136 = tpu.matmul %133, %135, %cst_134 {dimension_numbers = #tpu.dot_dimension_numbers<[1], [0], [0], [1], [0, 0, 1, 1], [], []>} : vector<4x96xf32>, vector<96x16xf32>, vector<4x16xf32> -> vector<4x16xf32>
    %137 = arith.addf %130, %136 : vector<4x16xf32>
    %c0_135 = arith.constant 0 : index
    %c0_136 = arith.constant 0 : index
    %138 = vector.load %arg13[%c0_135, %c0_136] : memref<1x16xf32, #tpu.memory_space<vmem>>, vector<1x16xf32>
    %139 = vector.broadcast %138 : vector<1x16xf32> to vector<4x16xf32>
    %140 = arith.addf %137, %139 : vector<4x16xf32>
    %c0_137 = arith.constant 0 : index
    %c0_138 = arith.constant 0 : index
    %c0_139 = arith.constant 0 : index
    %141 = vector.load %arg14[%c0_137, %c0_138, %c0_139] : memref<1x4x16xf32, #tpu.memory_space<vmem>>, vector<1x4x16xf32>
    %142 = vector.shape_cast %141 : vector<1x4x16xf32> to vector<4x16xf32>
    %143 = vector.shape_cast %140 : vector<4x16xf32> to vector<1x4x16xf32>
    tpu.vector_store %arg14[%c0_137, %c0_138, %c0_139], %143 {strides = array<i32>} : memref<1x4x16xf32, #tpu.memory_space<vmem>>, vector<1x4x16xf32>,
    return
  }
  func.func @transform_0(%arg0: i32) -> (i32, i32, i32) {
    %c0_i32 = arith.constant 0 : i32
    %c0_i32_0 = arith.constant 0 : i32
    %c0_i32_1 = arith.constant 0 : i32
    return %arg0, %c0_i32, %c0_i32_0 : i32, i32, i32
  }
  func.func @transform_1(%arg0: i32) -> (i32, i32, i32) {
    %c0_i32 = arith.constant 0 : i32
    %c0_i32_0 = arith.constant 0 : i32
    %c0_i32_1 = arith.constant 0 : i32
    %c0_i32_2 = arith.constant 0 : i32
    return %c0_i32, %c0_i32_0, %c0_i32_1 : i32, i32, i32
  }
  func.func @transform_2(%arg0: i32) -> (i32, i32, i32) {
    %c0_i32 = arith.constant 0 : i32
    %c0_i32_0 = arith.constant 0 : i32
    %c0_i32_1 = arith.constant 0 : i32
    %c0_i32_2 = arith.constant 0 : i32
    return %c0_i32, %c0_i32_0, %c0_i32_1 : i32, i32, i32
  }
  func.func @transform_3(%arg0: i32) -> (i32, i32) {
    %c0_i32 = arith.constant 0 : i32
    %c0_i32_0 = arith.constant 0 : i32
    %c0_i32_1 = arith.constant 0 : i32
    return %c0_i32, %c0_i32_0 : i32, i32
  }
  func.func @transform_4(%arg0: i32) -> (i32, i32, i32) {
    %c0_i32 = arith.constant 0 : i32
    %c0_i32_0 = arith.constant 0 : i32
    %c0_i32_1 = arith.constant 0 : i32
    %c0_i32_2 = arith.constant 0 : i32
    return %c0_i32, %c0_i32_0, %c0_i32_1 : i32, i32, i32
  }
  func.func @transform_5(%arg0: i32) -> (i32, i32, i32) {
    %c0_i32 = arith.constant 0 : i32
    %c0_i32_0 = arith.constant 0 : i32
    %c0_i32_1 = arith.constant 0 : i32
    %c0_i32_2 = arith.constant 0 : i32
    return %c0_i32, %c0_i32_0, %c0_i32_1 : i32, i32, i32
  }
  func.func @transform_6(%arg0: i32) -> (i32, i32) {
    %c0_i32 = arith.constant 0 : i32
    %c0_i32_0 = arith.constant 0 : i32
    %c0_i32_1 = arith.constant 0 : i32
    return %c0_i32, %c0_i32_0 : i32, i32
  }
  func.func @transform_7(%arg0: i32) -> (i32, i32, i32) {
    %c0_i32 = arith.constant 0 : i32
    %c0_i32_0 = arith.constant 0 : i32
    %c0_i32_1 = arith.constant 0 : i32
    %c0_i32_2 = arith.constant 0 : i32
    return %c0_i32, %c0_i32_0, %c0_i32_1 : i32, i32, i32
  }
  func.func @transform_8(%arg0: i32) -> (i32, i32, i32) {
    %c0_i32 = arith.constant 0 : i32
    %c0_i32_0 = arith.constant 0 : i32
    %c0_i32_1 = arith.constant 0 : i32
    %c0_i32_2 = arith.constant 0 : i32
    return %c0_i32, %c0_i32_0, %c0_i32_1 : i32, i32, i32
  }
  func.func @transform_9(%arg0: i32) -> (i32, i32) {
    %c0_i32 = arith.constant 0 : i32
    %c0_i32_0 = arith.constant 0 : i32
    %c0_i32_1 = arith.constant 0 : i32
    return %c0_i32, %c0_i32_0 : i32, i32
  }
  func.func @transform_10(%arg0: i32) -> (i32, i32, i32) {
    %c0_i32 = arith.constant 0 : i32
    %c0_i32_0 = arith.constant 0 : i32
    %c0_i32_1 = arith.constant 0 : i32
    %c0_i32_2 = arith.constant 0 : i32
    return %c0_i32, %c0_i32_0, %c0_i32_1 : i32, i32, i32
  }
  func.func @transform_11(%arg0: i32) -> (i32, i32, i32) {
    %c0_i32 = arith.constant 0 : i32
    %c0_i32_0 = arith.constant 0 : i32
    %c0_i32_1 = arith.constant 0 : i32
    %c0_i32_2 = arith.constant 0 : i32
    return %c0_i32, %c0_i32_0, %c0_i32_1 : i32, i32, i32
  }
  func.func @transform_12(%arg0: i32) -> (i32, i32) {
    %c0_i32 = arith.constant 0 : i32
    %c0_i32_0 = arith.constant 0 : i32
    %c0_i32_1 = arith.constant 0 : i32
    return %c0_i32, %c0_i32_0 : i32, i32
  }
  func.func @transform_13(%arg0: i32) -> (i32, i32, i32) {
    %c0_i32 = arith.constant 0 : i32
    %c0_i32_0 = arith.constant 0 : i32
    %c0_i32_1 = arith.constant 0 : i32
    return %arg0, %c0_i32, %c0_i32_0 : i32, i32, i32
  }
}

</mosaic_0001>

<bundles_post_ra>
// kernel: tile.23
= control target key start
LH: loop header
LB: loop body
LE: loop exit
PB: predicated region body
PF: predicated region fallthrough
CT: control target
= control target key end

     0   :  { %s28_s0 = inlined_call_operand.vmem [shape: f32[32], index: 0, kind: input, shape index: {}]   ;;  %s29_s1 = inlined_call_operand.vmem [shape: f32[10,32], index: 1, kind: output, shape index: {}]  }
   0x1   :  { %v4_v0 = vld [vmem:[%s28_s0] ss:$0 sm:$0xff] }
   0x2   :  { %5 = vst [vmem:[%s29_s1] sm:$0xff] %v4_v0  ;;  %8 = vst [vmem:[%s29_s1 + $0x8] sm:$0xff] %v4_v0 }

// kernel: tile.24
= control target key start
LH: loop header
LB: loop body
LE: loop exit
PB: predicated region body
PF: predicated region fallthrough
CT: control target
= control target key end

     0   :  { %s6_s6 = smov 3  ;;  %s13_s11 = smov 3  ;;  %vm3_vm0 = vcmask 261120   ;;  %vm10_vm1 = vcmask 1048320   ;;  %vm17_vm2 = vcmask 785920   ;;  %vm23_vm3 = vcmask 523520   ;;  %s89_s0 = inlined_call_operand.vmem [shape: f32[10,32], index: 0, kind: input, shape index: {}]   ;;  %s90_s1 = inlined_call_operand.vmem [shape: f32[1,320], index: 1, kind: output, shape index: {}]  }
   0x1   :  { %v49_v0 = vld [vmem:[%s89_s0 + $0x1] ss:$4 sm:$0x7]   ;;  %v47_v1 = vld [vmem:[%s89_s0 + $0x3] ss:$4 sm:%s6_s6]   ;;  %s55_s12 = smov 96  }
   0x2   :  { %8 = vrot.lane.b32.xlu0 %v47_v1, %s55_s12  ;;  %v2_v2 = vld [vmem:[%s89_s0] ss:$4 sm:$0x7]   ;;  %v48_v3 = vld [vmem:[%s89_s0 + $0x2] ss:$4 sm:%s13_s11]   ;;  %s56_s0 = smov 32  }
   0x3   :  { %21 = vrot.lane.b32.xlu1 %v49_v0, %s56_s0  ;;  %4 = vst.msk [vmem:[#allocation0] ss:$8 sm:$0x7] %vm3_vm0, %v2_v2   ;;  %s57_s17 = smov 64  }
   0x6   :  { %15 = vrot.lane.b32.xlu0 %v48_v3, %s57_s17 }
  0x74   :  { %v9_v4 = vpop.permute.xlu0 %8  }
  0x75   :  { %11 = vst.msk [vmem:[#allocation0] ss:$8 sm:$0x3] %vm10_vm1, %v9_v4   ;;  %v22_v5 = vpop.permute.xlu1 %21  }
  0x78   :  { %v16_v6 = vpop.permute.xlu0 %15  }
  0x79   :  { %18 = vst.msk [vmem:[#allocation0] ss:$8 sm:$0x3] %vm17_vm2, %v16_v6  }
  0x7a   :  { %24 = vst.msk [vmem:[#allocation0] ss:$8 sm:$0x7] %vm23_vm3, %v22_v5  }
  0x81   :  { %v29_v7 = vld [vmem:[#allocation0] sm:$0x1]  ;;  %v34_v8 = vld [vmem:[#allocation0 + $0x8] sm:$0x1]  ;;  %v40_v9 = vld [vmem:[#allocation0 + $0x10] sm:$0x1] }
  0x82   :  { %32 = vst [vmem:[%s90_s1] sm:$0x1] %v29_v7  ;;  %50 = vst [vmem:[%s90_s1 + $0x1] sm:$0x1] %v34_v8 }
  0x83   :  { %51 = vst [vmem:[%s90_s1 + $0x2] sm:$0x1] %v40_v9 }

// kernel: tile.28
= control target key start
LH: loop header
LB: loop body
LE: loop exit
PB: predicated region body
PF: predicated region fallthrough
CT: control target
= control target key end

     0   :  { %s22_s0 = inlined_call_operand.vmem [shape: f32[32], index: 0, kind: input, shape index: {}]   ;;  %s23_s1 = inlined_call_operand.vmem [shape: f32[7,32], index: 1, kind: output, shape index: {}]  }
   0x1   :  { %v4_v0 = vld [vmem:[%s22_s0] ss:$0 sm:$0xff] }
   0x2   :  { %5 = vst [vmem:[%s23_s1] sm:$0xff] %v4_v0 }

// kernel: tile.29
= control target key start
LH: loop header
LB: loop body
LE: loop exit
PB: predicated region body
PF: predicated region fallthrough
CT: control target
= control target key end

     0   :  { %s13_s8 = smov 3  ;;  %s47_s9 = smov 96   ;;  %vm4_vm0 = vcmask 261120   ;;  %vm10_vm1 = vcmask 1048320   ;;  %vm17_vm2 = vcmask 785920   ;;  %vm24_vm3 = vcmask 523520   ;;  %s78_s0 = inlined_call_operand.vmem [shape: f32[7,32], index: 0, kind: input, shape index: {}]   ;;  %s79_s1 = inlined_call_operand.vmem [shape: f32[1,224], index: 1, kind: output, shape index: {}]  }
   0x1   :  { %v40_v0 = vld [vmem:[%s78_s0 + $0x3] sm:$0x1]   ;;  %s20_s10 = smov 3  ;;  %v41_v1 = vld [vmem:[%s78_s0 + $0x2] ss:$4 sm:%s13_s8]   ;;  %s2_s15 = smov 3 }
   0x2   :  { %8 = vrot.lane.b32.xlu0 %v40_v0, %s47_s9  ;;  %v42_v2 = vld [vmem:[%s78_s0 + $0x1] ss:$4 sm:%s20_s10]   ;;  %s48_s16 = smov 32  }
   0x3   :  { %22 = vrot.lane.b32.xlu1 %v42_v2, %s48_s16  ;;  %v3_v3 = vld [vmem:[%s78_s0] ss:$4 sm:%s2_s15]   ;;  %s49_s0 = smov 64  }
   0x4   :  { %5 = vst.msk [vmem:[#allocation0] ss:$8 sm:$0x3] %vm4_vm0, %v3_v3  }
   0x6   :  { %15 = vrot.lane.b32.xlu0 %v41_v1, %s49_s0 }
  0x74   :  { %v9_v4 = vpop.permute.xlu0 %8  }
  0x75   :  { %11 = vst.msk [vmem:[#allocation0] sm:$0x1] %vm10_vm1, %v9_v4   ;;  %v23_v5 = vpop.permute.xlu1 %22  }
  0x78   :  { %v16_v6 = vpop.permute.xlu0 %15  }
  0x79   :  { %18 = vst.msk [vmem:[#allocation0] ss:$8 sm:$0x3] %vm17_vm2, %v16_v6  }
  0x7a   :  { %25 = vst.msk [vmem:[#allocation0] ss:$8 sm:$0x3] %vm24_vm3, %v23_v5  }
  0x81   :  { %v30_v7 = vld [vmem:[#allocation0] sm:$0x1]  ;;  %v35_v8 = vld [vmem:[#allocation0 + $0x8] sm:$0x1] }
  0x82   :  { %33 = vst [vmem:[%s79_s1] sm:$0x1] %v30_v7  ;;  %43 = vst [vmem:[%s79_s1 + $0x1] sm:$0x1] %v35_v8 }

// kernel: tile.33
= control target key start
LH: loop header
LB: loop body
LE: loop exit
PB: predicated region body
PF: predicated region fallthrough
CT: control target
= control target key end

     0   :  { %s22_s0 = inlined_call_operand.vmem [shape: f32[32], index: 0, kind: input, shape index: {}]   ;;  %s23_s1 = inlined_call_operand.vmem [shape: f32[3,32], index: 1, kind: output, shape index: {}]  }
   0x1   :  { %v4_v0 = vld [vmem:[%s22_s0] ss:$0 sm:$0xff] }
   0x2   :  { %5 = vst [vmem:[%s23_s1] sm:$0xf] %v4_v0 }

// kernel: tile.34
= control target key start
LH: loop header
LB: loop body
LE: loop exit
PB: predicated region body
PF: predicated region fallthrough
CT: control target
= control target key end

     0   :  { %vm8_vm0 = vcmask 261120   ;;  %s33_s8 = smov 32   ;;  %vm14_vm1 = vcmask 785920   ;;  %vm20_vm2 = vcmask 523520   ;;  %s50_s0 = inlined_call_operand.vmem [shape: f32[3,32], index: 0, kind: input, shape index: {}]   ;;  %s51_s1 = inlined_call_operand.vmem [shape: f32[1,96], index: 1, kind: output, shape index: {}]  }
   0x1   :  { %v5_v0 = vld [vmem:[%s50_s0] sm:$0xf]  ;;  %s32_s0 = smov 64  }
   0x2   :  { %6 = vst [vmem:[#allocation1] sm:$0xf] %v5_v0 }
   0x9   :  { %v11_v1 = vld [vmem:[#allocation1 + $0x2] sm:$0x1]   ;;  %v7_v2 = vld [vmem:[#allocation1] sm:$0x1]   ;;  %v17_v3 = vld [vmem:[#allocation1 + $0x1] sm:$0x1]  }
   0xa   :  { %12 = vrot.lane.b32.xlu0 %v11_v1, %s32_s0  ;;  %9 = vst.msk [vmem:[#allocation0] sm:$0x1] %vm8_vm0, %v7_v2  }
   0xe   :  { %18 = vrot.lane.b32.xlu0 %v17_v3, %s33_s8 }
  0x7c   :  { %v13_v4 = vpop.permute.xlu0 %12  }
  0x7d   :  { %15 = vst.msk [vmem:[#allocation0] sm:$0x1] %vm14_vm1, %v13_v4  }
  0x80   :  { %v19_v5 = vpop.permute.xlu0 %18  }
  0x81   :  { %21 = vst.msk [vmem:[#allocation0] sm:$0x1] %vm20_vm2, %v19_v5  }
  0x88   :  { %v26_v6 = vld [vmem:[#allocation0] sm:$0x1] }
  0x89   :  { %29 = vst [vmem:[%s51_s1] sm:$0x1] %v26_v6 }

// kernel: tile.38
= control target key start
LH: loop header
LB: loop body
LE: loop exit
PB: predicated region body
PF: predicated region fallthrough
CT: control target
= control target key end

     0   :  { %s22_s0 = inlined_call_operand.vmem [shape: f32[8], index: 0, kind: input, shape index: {}]   ;;  %s23_s1 = inlined_call_operand.vmem [shape: f32[2,8], index: 1, kind: output, shape index: {}]  }
   0x1   :  { %v4_v0 = vld [vmem:[%s22_s0] ss:$0 sm:$0xff] }
   0x2   :  { %5 = vst [vmem:[%s23_s1] sm:$0x3] %v4_v0 }

// kernel: tile.39
= control target key start
LH: loop header
LB: loop body
LE: loop exit
PB: predicated region body
PF: predicated region fallthrough
CT: control target
= control target key end

     0   :  { %vm8_vm0 = vcmask 64512   ;;  %vm14_vm1 = vcmask 130112   ;;  %s42_s0 = inlined_call_operand.vmem [shape: f32[2,8], index: 0, kind: input, shape index: {}]   ;;  %s43_s1 = inlined_call_operand.vmem [shape: f32[1,16], index: 1, kind: output, shape index: {}]  }
   0x1   :  { %v5_v0 = vld [vmem:[%s42_s0] sm:$0x3]  ;;  %s25_s0 = smov 8  }
   0x2   :  { %6 = vst [vmem:[#allocation1] sm:$0x3] %v5_v0 }
   0x9   :  { %v11_v1 = vld [vmem:[#allocation1 + $0x1] sm:$0x1]   ;;  %v7_v2 = vld [vmem:[#allocation1] sm:$0x1]  }
   0xa   :  { %12 = vrot.lane.b32.xlu0 %v11_v1, %s25_s0  ;;  %9 = vst.msk [vmem:[#allocation0] sm:$0x1] %vm8_vm0, %v7_v2  }
  0x7c   :  { %v13_v3 = vpop.permute.xlu0 %12  }
  0x7d   :  { %15 = vst.msk [vmem:[#allocation0] sm:$0x1] %vm14_vm1, %v13_v3  }
  0x84   :  { %v20_v4 = vld [vmem:[#allocation0] sm:$0x1] }
  0x85   :  { %23 = vst [vmem:[%s43_s1] sm:$0x1] %v20_v4 }

// kernel: embedder_forward.1
= control target key start
LH: loop header
LB: loop body
LE: loop exit
PB: predicated region body
PF: predicated region fallthrough
CT: control target
= control target key end

     0   :  { %v5372_v0 = vmov 0.0   ;;  %vm5373_vm0 = vmmov 0   ;;  %vm51_vm1 = vcmask 261120   ;;  %vm283_vm2 = vcmask 523264   ;;  %s7801_s0 = inlined_call_operand.vmem [shape: f32[1,32,64], index: 0, kind: input, shape index: {}]   ;;  %s7802_s1 = inlined_call_operand.vmem [shape: f32[4,20,32], index: 1, kind: input, shape index: {}]   ;;  %s7803_s2 = inlined_call_operand.vmem [shape: f32[4,64,320], index: 2, kind: input, shape index: {}]   ;;  %s7804_s4 = inlined_call_operand.vmem [shape: f32[4,14,20], index: 4, kind: input, shape index: {}]   ;;  %s7805_s3 = inlined_call_operand.vmem [shape: f32[1,320], index: 3, kind: input, shape index: {}]   ;;  %s7806_s5 = inlined_call_operand.vmem [shape: f32[4,320,224], index: 5, kind: input, shape index: {}]   ;;  %s7807_s6 = inlined_call_operand.vmem [shape: f32[1,224], index: 6, kind: input, shape index: {}]   ;;  %s7808_s8 = inlined_call_operand.vmem [shape: f32[4,160,96], index: 8, kind: input, shape index: {}]   ;;  %s7809_s7 = inlined_call_operand.vmem [shape: f32[4,6,12], index: 7, kind: input, shape index: {}]   ;;  %s7810_s11 = inlined_call_operand.vmem [shape: f32[4,96,16], index: 11, kind: input, shape index: {}]   ;;  %s7811_s9 = inlined_call_operand.vmem [shape: f32[1,96], index: 9, kind: input, shape index: {}]   ;;  %s7812_s10 = inlined_call_operand.vmem [shape: f32[4,4,6], index: 10, kind: input, shape index: {}]   ;;  %s7813_s12 = inlined_call_operand.vmem [shape: f32[1,16], index: 12, kind: input, shape index: {}]   ;;  %s7814_s13 = inlined_call_operand.vmem [shape: f32[1,4,16], index: 13, kind: output, shape index: {}]  }
   0x1   :  { %5053 = vmatprep.subr.mxu1 %v5372_v0  ;;  %v5450_v1 = vld [vmem:[%s7801_s0 + $0x18] sm:$0xff]  ;;  %v5455_v2 = vld [vmem:[%s7801_s0 + $0x10] sm:$0xff]  ;;  %5061 = vmatprep.mubr.msk.f32.mxu1 %vm5373_vm0, %v5372_v0  ;;  %v5465_v3 = vld [vmem:[%s7801_s0 + $0x8] sm:$0xff]  ;;  %vm1272_vm3 = vcmask 162816   ;;  %vm1279_vm4 = vcmask 1043456   ;;  %vm2923_vm5 = vcmask 1046528  }
   0x2   :  { %5054 = vmatpush3.msra.mxu1 %v5450_v1  ;;  %5036 = vmatprep.subr.mxu0 %v5372_v0  ;;  %v5474_v4 = vld [vmem:[%s7801_s0] sm:$0xff]  ;;  %v4356_v5 = vld [vmem:[%s7802_s1 + $0x18] sm:$0xff]  ;;  %v4384_v7 = vld [vmem:[%s7803_s2 + $0x170] sm:$0xff]  ;;  %vm2938_vm6 = vcmask 1045504   ;;  %vm2965_vm7 = vcmask 785408   ;;  %vm2995_vm8 = vcmask 97280  }
   0x3   :  { %5055 = vmatprep.subr.mxu1 %v5372_v0  ;;  %5037 = vmatpush3.msra.mxu0 %v5450_v1  ;;  %v48_v6 = vld [vmem:[%s7802_s1] sm:$0xff]  ;;  %v4383_v9 = vld [vmem:[%s7803_s2 + $0x168] sm:$0xff]  ;;  %v4385_v10 = vld [vmem:[%s7803_s2 + $0x178] sm:$0xff]  ;;  %vm3692_vm9 = vcmask 48128   ;;  %vm4347_vm10 = vcmask 125952  }
   0x4   :  { %5056 = vmatpush3.msra.mxu1 %v5455_v2  ;;  %5038 = vmatprep.subr.mxu0 %v5372_v0  ;;  %v4357_v8 = vld [vmem:[%s7802_s1 + $0x20] sm:$0xff]  ;;  %v49_v11 = vld [vmem:[%s7802_s1 + $0x8] sm:$0xff]  ;;  %v4381_v12 = vld [vmem:[%s7803_s2 + $0x158] sm:$0xff] }
   0x5   :  { %5057 = vmatprep.subr.mxu1 %v5372_v0  ;;  %5039 = vmatpush3.msra.mxu0 %v5455_v2  ;;  %v4358_v13 = vld [vmem:[%s7802_s1 + $0x28] sm:$0xf]  ;;  %v4380_v14 = vld [vmem:[%s7803_s2 + $0x150] sm:$0xff]  ;;  %v4382_v15 = vld [vmem:[%s7803_s2 + $0x160] sm:$0xff] }
   0x6   :  { %5058 = vmatpush3.msra.mxu1 %v5465_v3  ;;  %5040 = vmatprep.subr.mxu0 %v5372_v0  ;;  %v4378_v16 = vld [vmem:[%s7803_s2 + $0x140] sm:$0xff]  ;;  %v50_v17 = vld [vmem:[%s7802_s1 + $0x10] sm:$0xf]  ;;  %v4377_v18 = vld [vmem:[%s7803_s2 + $0x138] sm:$0xff] }
   0x7   :  { %5059 = vmatprep.subr.mxu1 %v5372_v0  ;;  %5041 = vmatpush3.msra.mxu0 %v5465_v3  ;;  %v4379_v19 = vld [vmem:[%s7803_s2 + $0x148] sm:$0xff]  ;;  %v4374_v21 = vld [vmem:[%s7803_s2 + $0x120] sm:$0xff]  ;;  %v4376_v22 = vld [vmem:[%s7803_s2 + $0x130] sm:$0xff] }
   0x8   :  { %5060 = vmatpush3.msra.mxu1 %v5474_v4  ;;  %5042 = vmatprep.subr.mxu0 %v5372_v0  ;;  %v4375_v20 = vld [vmem:[%s7803_s2 + $0x128] sm:$0xff]  ;;  %v4372_v23 = vld [vmem:[%s7803_s2 + $0x110] sm:$0xff]  ;;  %v4373_v25 = vld [vmem:[%s7803_s2 + $0x118] sm:$0xff] }
   0x9   :  { %5062 = vmatmul.mubr.msk.f32.vlgmr.msra.gmra.mxu1 %vm51_vm1, %v4356_v5  ;;  %5043 = vmatpush3.msra.mxu0 %v5474_v4  ;;  %v4371_v24 = vld [vmem:[%s7803_s2 + $0x108] sm:$0xff]  ;;  %v4369_v26 = vld [vmem:[%s7803_s2 + $0xf8] sm:$0xff]  ;;  %v4368_v27 = vld [vmem:[%s7803_s2 + $0xf0] sm:$0xff] }
   0xa   :  { %5064 = vmatprep.mubr.msk.f32.mxu1 %vm5373_vm0, %v5372_v0  ;;  %5044 = vmatprep.mubr.msk.f32.mxu0 %vm5373_vm0, %v5372_v0  ;;  %v4370_v28 = vld [vmem:[%s7803_s2 + $0x100] sm:$0xff]  ;;  %v4365_v30 = vld [vmem:[%s7803_s2 + $0xd8] sm:$0xff]  ;;  %v4367_v31 = vld [vmem:[%s7803_s2 + $0xe8] sm:$0xff] }
   0xb   :  { %5045 = vmatmul.mubr.msk.f32.vlgmr.msra.gmra.mxu0 %vm51_vm1, %v48_v6  ;;  %309 = vmatprep.subr.mxu0 %v4384_v7  ;;  %v4366_v29 = vld [vmem:[%s7803_s2 + $0xe0] sm:$0xff]  ;;  %v4363_v32 = vld [vmem:[%s7803_s2 + $0xc8] sm:$0xff]  ;;  %v4364_v34 = vld [vmem:[%s7803_s2 + $0xd0] sm:$0xff] }
   0xc   :  { %5047 = vmatprep.mubr.msk.f32.mxu0 %vm5373_vm0, %v5372_v0  ;;  %5070 = vmatprep.subr.mxu1 %v5372_v0  ;;  %v4362_v33 = vld [vmem:[%s7803_s2 + $0xc0] sm:$0xff]  ;;  %v163_v35 = vld [vmem:[%s7803_s2 + $0xb0] sm:$0xff]  ;;  %v162_v36 = vld [vmem:[%s7803_s2 + $0xa8] sm:$0xff] }
   0xd   :  { %5065 = vmatmul.mubr.msk.f32.gmra.mxu1 %vm51_vm1, %v4357_v8  ;;  %310 = vmatpush1.msra.mxu0 %v4383_v9  ;;  %v164_v37 = vld [vmem:[%s7803_s2 + $0xb8] sm:$0xff]  ;;  %v159_v40 = vld [vmem:[%s7803_s2 + $0x90] sm:$0xff]  ;;  %v161_v41 = vld [vmem:[%s7803_s2 + $0xa0] sm:$0xff] }
   0xe   :  { %5067 = vmatprep.mubr.msk.f32.mxu1 %vm5373_vm0, %v5372_v0  ;;  %5071 = vmatpush3.msra.mxu1 %v4385_v10  ;;  %v160_v39 = vld [vmem:[%s7803_s2 + $0x98] sm:$0xff]  ;;  %v157_v43 = vld [vmem:[%s7803_s2 + $0x80] sm:$0xff]  ;;  %v158_v47 = vld [vmem:[%s7803_s2 + $0x88] sm:$0xff] }
   0xf   :  { %5048 = vmatmul.mubr.msk.f32.gmra.mxu0 %vm51_vm1, %v49_v11  ;;  %311 = vmatprep.subr.mxu0 %v4381_v12  ;;  %v156_v46 = vld [vmem:[%s7803_s2 + $0x78] sm:$0xff]  ;;  %v154_v49 = vld [vmem:[%s7803_s2 + $0x68] sm:$0xff]  ;;  %v153_v52 = vld [vmem:[%s7803_s2 + $0x60] sm:$0xff] }
  0x10   :  { %5050 = vmatprep.mubr.msk.f32.mxu0 %vm5373_vm0, %v5372_v0  ;;  %5072 = vmatprep.subr.mxu1 %v5372_v0  ;;  %v155_v53 = vld [vmem:[%s7803_s2 + $0x70] sm:$0xff]  ;;  %v150_v57 = vld [vmem:[%s7803_s2 + $0x48] sm:$0xff]  ;;  %v152_v58 = vld [vmem:[%s7803_s2 + $0x58] sm:$0xff] }
  0x11   :  { %5068 = vmatmul.mubr.msk.f32.gmra.mxu1 %vm51_vm1, %v4358_v13  ;;  %312 = vmatpush1.msra.mxu0 %v4380_v14  ;;  %v151_v54 = vld [vmem:[%s7803_s2 + $0x50] sm:$0xff]  ;;  %v148_v61 = vld [vmem:[%s7803_s2 + $0x38] sm:$0xff]  ;;  %v149_v5 = vld [vmem:[%s7803_s2 + $0x40] sm:$0xff] }
  0x12   :  { %5073 = vmatpush3.msra.mxu1 %v4382_v15  ;;  %313 = vmatprep.subr.mxu0 %v4378_v16  ;;  %v147_v63 = vld [vmem:[%s7803_s2 + $0x30] sm:$0xff]  ;;  %v145_v6 = vld [vmem:[%s7803_s2 + $0x20] sm:$0xff]  ;;  %v144_v7 = vld [vmem:[%s7803_s2 + $0x18] sm:$0xff] }
  0x13   :  { %5051 = vmatmul.mubr.msk.f32.gmra.mxu0 %vm51_vm1, %v50_v17  ;;  %5074 = vmatprep.subr.mxu1 %v5372_v0  ;;  %v146_v8 = vld [vmem:[%s7803_s2 + $0x28] sm:$0xff]  ;;  %v141_v10 = vld [vmem:[%s7803_s2] sm:$0xff]  ;;  %v143_v11 = vld [vmem:[%s7803_s2 + $0x10] sm:$0xff] }
  0x14   :  { %314 = vmatpush1.msra.mxu0 %v4377_v18  ;;  %5075 = vmatpush3.msra.mxu1 %v4379_v19  ;;  %v142_v9 = vld [vmem:[%s7803_s2 + $0x8] sm:$0xff]  ;;  %v4398_v12 = vld [vmem:[%s7802_s1 + $0x30] sm:$0xff]  ;;  %v4399_v13 = vld [vmem:[%s7802_s1 + $0x38] sm:$0xff] }
  0x15   :  { %315 = vmatprep.subr.mxu0 %v4375_v20  ;;  %5076 = vmatprep.subr.mxu1 %v5372_v0  ;;  %v4400_v14 = vld [vmem:[%s7802_s1 + $0x40] sm:$0xf]  ;;  %v4426_v15 = vld [vmem:[%s7803_s2 + $0x230] sm:$0xff]  ;;  %v4425_v16 = vld [vmem:[%s7803_s2 + $0x228] sm:$0xff] }
  0x16   :  { %316 = vmatpush1.msra.mxu0 %v4374_v21  ;;  %5077 = vmatpush3.msra.mxu1 %v4376_v22  ;;  %v4427_v17 = vld [vmem:[%s7803_s2 + $0x238] sm:$0xff]  ;;  %v4422_v19 = vld [vmem:[%s7803_s2 + $0x210] sm:$0xff]  ;;  %v4424_v20 = vld [vmem:[%s7803_s2 + $0x220] sm:$0xff] }
  0x17   :  { %317 = vmatprep.subr.mxu0 %v4372_v23  ;;  %5078 = vmatprep.subr.mxu1 %v5372_v0  ;;  %v4423_v18 = vld [vmem:[%s7803_s2 + $0x218] sm:$0xff]  ;;  %v4420_v21 = vld [vmem:[%s7803_s2 + $0x200] sm:$0xff]  ;;  %v4421_v23 = vld [vmem:[%s7803_s2 + $0x208] sm:$0xff] }
  0x18   :  { %318 = vmatpush1.msra.mxu0 %v4371_v24  ;;  %5079 = vmatpush3.msra.mxu1 %v4373_v25  ;;  %v4419_v22 = vld [vmem:[%s7803_s2 + $0x1f8] sm:$0xff]  ;;  %v4417_v24 = vld [vmem:[%s7803_s2 + $0x1e8] sm:$0xff]  ;;  %v4416_v25 = vld [vmem:[%s7803_s2 + $0x1e0] sm:$0xff] }
  0x19   :  { %319 = vmatprep.subr.mxu0 %v4369_v26  ;;  %5080 = vmatprep.subr.mxu1 %v5372_v0  ;;  %v4418_v26 = vld [vmem:[%s7803_s2 + $0x1f0] sm:$0xff] }
  0x1a   :  { %320 = vmatpush1.msra.mxu0 %v4368_v27  ;;  %5081 = vmatpush3.msra.mxu1 %v4370_v28  ;;  %v4414_v27 = vld [vmem:[%s7803_s2 + $0x1d0] sm:$0xff]  ;;  %v4413_v28 = vld [vmem:[%s7803_s2 + $0x1c8] sm:$0xff] }
  0x1b   :  { %321 = vmatprep.subr.mxu0 %v4366_v29  ;;  %5082 = vmatprep.subr.mxu1 %v5372_v0  ;;  %v4415_v29 = vld [vmem:[%s7803_s2 + $0x1d8] sm:$0xff] }
  0x1c   :  { %322 = vmatpush1.msra.mxu0 %v4365_v30  ;;  %5083 = vmatpush3.msra.mxu1 %v4367_v31  ;;  %v4411_v30 = vld [vmem:[%s7803_s2 + $0x1b8] sm:$0xff]  ;;  %v4410_v31 = vld [vmem:[%s7803_s2 + $0x1b0] sm:$0xff] }
  0x1d   :  { %323 = vmatprep.subr.mxu0 %v4363_v32  ;;  %5084 = vmatprep.subr.mxu1 %v5372_v0  ;;  %v4412_v32 = vld [vmem:[%s7803_s2 + $0x1c0] sm:$0xff] }
  0x1e   :  { %324 = vmatpush1.msra.mxu0 %v4362_v33  ;;  %5085 = vmatpush3.msra.mxu1 %v4364_v34  ;;  %v4408_v33 = vld [vmem:[%s7803_s2 + $0x1a0] sm:$0xff]  ;;  %v4407_v34 = vld [vmem:[%s7803_s2 + $0x198] sm:$0xff] }
  0x1f   :  { %357 = vmatprep.mubr.f32.mxu0 %v5372_v0  ;;  %5086 = vmatprep.mubr.msk.f32.mxu1 %vm5373_vm0, %v5372_v0 }
  0x20   :  { %5095 = vmatprep.subr.mxu1 %v5372_v0  ;;  %481 = vmatprep.subr.mxu0 %v163_v35  ;;  %v4409_v35 = vld [vmem:[%s7803_s2 + $0x1a8] sm:$0xff] }
  0xc9   :  { %v244_v38 = vpop.f32.mrf.mxu1 }
  0xca   :  { %4386 = vmatmul.mubr.msk.f32.vlgmr.msra.gmra.mxu0 %vm283_vm2, %v244_v38  ;;  %5087 = vmatmul.mubr.msk.f32.vlgmr.msra.gmra.mxu1 %vm283_vm2, %v244_v38  ;;  %v4406_v38 = vld [vmem:[%s7803_s2 + $0x190] sm:$0xff] }
  0xcb   :  { %482 = vmatpush1.msra.mxu0 %v162_v36  ;;  %5096 = vmatpush3.msra.mxu1 %v164_v37  ;;  %v5063_v42 = vpop.f32.mrf.mxu1  ;;  %v5625_v44 = vpop.f32.mrf.mxu0  ;;  %v4405_v36 = vld [vmem:[%s7803_s2 + $0x188] sm:$0xff]  ;;  %v4404_v37 = vld [vmem:[%s7803_s2 + $0x180] sm:$0xff] }
  0xcc   :  { %483 = vmatprep.subr.mxu0 %v160_v39  ;;  %5097 = vmatprep.subr.mxu1 %v5372_v0  ;;  %v4462_v39 = vld [vmem:[%s7803_s2 + $0x2f0] sm:$0xff] }
  0xcd   :  { %484 = vmatpush1.msra.mxu0 %v159_v40  ;;  %5098 = vmatpush3.msra.mxu1 %v161_v41  ;;  %v249_v45 = vpop.f32.mrf.mxu1  ;;  %v5046_v48 = vpop.f32.mrf.mxu0 }
  0xce   :  { %485 = vmatprep.subr.mxu0 %v157_v43  ;;  %5099 = vmatprep.subr.mxu1 %v5372_v0 }
  0xcf   :  { %363 = vmatprep.mubr.f32.mxu0 %v5372_v0  ;;  %5089 = vmatprep.mubr.msk.f32.mxu1 %vm5373_vm0, %v5372_v0  ;;  %v5066_v50 = vpop.f32.mrf.mxu1  ;;  %v132_v51 = vpop.f32.mrf.mxu0 }
  0xd0   :  { %486 = vmatpush1.msra.mxu0 %v156_v46  ;;  %5100 = vmatpush3.msra.mxu1 %v158_v47 }
  0xd1   :  { %4387 = vmatmul.mubr.msk.f32.gmra.mxu0 %vm283_vm2, %v249_v45  ;;  %5090 = vmatmul.mubr.msk.f32.gmra.mxu1 %vm283_vm2, %v249_v45  ;;  %v254_v55 = vpop.f32.mrf.mxu1  ;;  %v5049_v56 = vpop.f32.mrf.mxu0 }
  0xd2   :  { %487 = vmatprep.subr.mxu0 %v154_v49  ;;  %5101 = vmatprep.subr.mxu1 %v5372_v0 }
  0xd3   :  { %488 = vmatpush1.msra.mxu0 %v153_v52  ;;  %5102 = vmatpush3.msra.mxu1 %v155_v53  ;;  %v5069_v59 = vpop.f32.mrf.mxu1  ;;  %v137_v60 = vpop.f32.mrf.mxu0 }
  0xd4   :  { %489 = vmatprep.subr.mxu0 %v151_v54  ;;  %5103 = vmatprep.subr.mxu1 %v5372_v0 }
  0xd5   :  { %369 = vmatprep.mubr.f32.mxu0 %v5372_v0  ;;  %5092 = vmatprep.mubr.msk.f32.mxu1 %vm5373_vm0, %v5372_v0  ;;  %v5052_v62 = vpop.f32.mrf.mxu0 }
  0xd6   :  { %490 = vmatpush1.msra.mxu0 %v150_v57  ;;  %5104 = vmatpush3.msra.mxu1 %v152_v58 }
  0xd7   :  { %4388 = vmatmul.mubr.msk.f32.gmra.mxu0 %vm283_vm2, %v254_v55  ;;  %5093 = vmatmul.mubr.msk.f32.gmra.mxu1 %vm283_vm2, %v254_v55 }
  0xd8   :  { %491 = vmatprep.subr.mxu0 %v148_v61  ;;  %5105 = vmatprep.subr.mxu1 %v5372_v0 }
  0xd9   :  { %492 = vmatpush1.msra.mxu0 %v147_v63  ;;  %5106 = vmatpush3.msra.mxu1 %v149_v5 }
  0xda   :  { %493 = vmatprep.subr.mxu0 %v145_v6  ;;  %5107 = vmatprep.subr.mxu1 %v5372_v0 }
  0xdb   :  { %494 = vmatpush1.msra.mxu0 %v144_v7  ;;  %5108 = vmatpush3.msra.mxu1 %v146_v8 }
  0xdc   :  { %495 = vmatprep.subr.mxu0 %v142_v9  ;;  %5109 = vmatprep.subr.mxu1 %v5372_v0 }
  0xdd   :  { %496 = vmatpush1.msra.mxu0 %v141_v10  ;;  %529 = vmatprep.mubr.f32.mxu0 %v5372_v0 }
  0xde   :  { %5110 = vmatpush3.msra.mxu1 %v143_v11  ;;  %5111 = vmatprep.mubr.msk.f32.mxu1 %vm5373_vm0, %v5372_v0 }
  0xdf   :  { %4392 = vmatmul.mubr.msk.f32.vlgmr.msra.gmra.mxu0 %vm283_vm2, %v5625_v44  ;;  %5112 = vmatmul.mubr.msk.f32.vlgmr.msra.gmra.mxu1 %vm283_vm2, %v5625_v44 }
  0xe0   :  { %535 = vmatprep.mubr.f32.mxu0 %v5372_v0  ;;  %5114 = vmatprep.mubr.msk.f32.mxu1 %vm5373_vm0, %v5372_v0 }
  0xe1   :  { %5120 = vmatprep.subr.mxu0 %v5372_v0  ;;  %771 = vmatprep.subr.mxu1 %v4426_v15  ;;  %v4461_v15 = vld [vmem:[%s7803_s2 + $0x2e8] sm:$0xff] }
  0xe2   :  { %5121 = vmatpush3.msra.mxu0 %v5450_v1  ;;  %772 = vmatpush1.msra.mxu1 %v4425_v16  ;;  %v4459_v16 = vld [vmem:[%s7803_s2 + $0x2d8] sm:$0xff] }
  0xe3   :  { %4393 = vmatmul.mubr.msk.f32.gmra.mxu0 %vm283_vm2, %v132_v51  ;;  %5115 = vmatmul.mubr.msk.f32.gmra.mxu1 %vm283_vm2, %v132_v51 }
  0xe4   :  { %5122 = vmatprep.subr.mxu0 %v5372_v0  ;;  %541 = vmatprep.mubr.f32.mxu0 %v5372_v0 }
  0xe5   :  { %5117 = vmatprep.mubr.msk.f32.mxu1 %vm5373_vm0, %v5372_v0  ;;  %5123 = vmatpush3.msra.mxu0 %v5455_v2 }
  0xe6   :  { %5124 = vmatprep.subr.mxu0 %v5372_v0  ;;  %773 = vmatprep.subr.mxu1 %v4423_v18 }
  0xe7   :  { %4394 = vmatmul.mubr.msk.f32.gmra.mxu0 %vm283_vm2, %v137_v60  ;;  %5118 = vmatmul.mubr.msk.f32.gmra.mxu1 %vm283_vm2, %v137_v60 }
  0xe8   :  { %5125 = vmatpush3.msra.mxu0 %v5465_v3  ;;  %5128 = vmatprep.mubr.msk.f32.mxu0 %vm5373_vm0, %v5372_v0 }
  0xe9   :  { %5126 = vmatprep.subr.mxu0 %v5372_v0  ;;  %819 = vmatprep.mubr.f32.mxu1 %v5372_v0 }
  0xea   :  { %5127 = vmatpush3.msra.mxu0 %v5474_v4  ;;  %774 = vmatpush1.msra.mxu1 %v4422_v19 }
  0xeb   :  { %5129 = vmatmul.mubr.msk.f32.vlgmr.msra.gmra.mxu0 %vm51_vm1, %v4398_v12  ;;  %5137 = vmatprep.subr.mxu0 %v5372_v0 }
  0xec   :  { %5131 = vmatprep.mubr.msk.f32.mxu0 %vm5373_vm0, %v5372_v0  ;;  %5138 = vmatpush3.msra.mxu0 %v4427_v17 }
  0xed   :  { %5139 = vmatprep.subr.mxu0 %v5372_v0  ;;  %775 = vmatprep.subr.mxu1 %v4420_v21  ;;  %v4434_v21 = vld [vmem:[%s7802_s1 + $0x48] sm:$0xff] }
  0xee   :  { %5140 = vmatpush3.msra.mxu0 %v4424_v20  ;;  %776 = vmatpush1.msra.mxu1 %v4419_v22  ;;  %v4458_v22 = vld [vmem:[%s7803_s2 + $0x2d0] sm:$0xff] }
  0xef   :  { %5132 = vmatmul.mubr.msk.f32.gmra.mxu0 %vm51_vm1, %v4399_v13  ;;  %5141 = vmatprep.subr.mxu0 %v5372_v0 }
  0xf0   :  { %5134 = vmatprep.mubr.msk.f32.mxu0 %vm5373_vm0, %v5372_v0  ;;  %5142 = vmatpush3.msra.mxu0 %v4421_v23  ;;  %v4460_v23 = vld [vmem:[%s7803_s2 + $0x2e0] sm:$0xff] }
  0xf1   :  { %777 = vmatprep.subr.mxu1 %v4417_v24  ;;  %5143 = vmatprep.subr.mxu0 %v5372_v0  ;;  %v4456_v24 = vld [vmem:[%s7803_s2 + $0x2c0] sm:$0xff] }
  0xf2   :  { %778 = vmatpush1.msra.mxu1 %v4416_v25  ;;  %5144 = vmatpush3.msra.mxu0 %v4418_v26  ;;  %v4455_v25 = vld [vmem:[%s7803_s2 + $0x2b8] sm:$0xff]  ;;  %v4457_v26 = vld [vmem:[%s7803_s2 + $0x2c8] sm:$0xff] }
  0xf3   :  { %5135 = vmatmul.mubr.msk.f32.gmra.mxu0 %vm51_vm1, %v4400_v14  ;;  %779 = vmatprep.subr.mxu1 %v4414_v27  ;;  %v4453_v27 = vld [vmem:[%s7803_s2 + $0x2a8] sm:$0xff] }
  0xf4   :  { %5153 = vmatprep.mubr.msk.f32.mxu0 %vm5373_vm0, %v5372_v0  ;;  %5145 = vmatprep.subr.mxu0 %v5372_v0 }
  0xf5   :  { %780 = vmatpush1.msra.mxu1 %v4413_v28  ;;  %5146 = vmatpush3.msra.mxu0 %v4415_v29  ;;  %v4452_v28 = vld [vmem:[%s7803_s2 + $0x2a0] sm:$0xff]  ;;  %v4454_v29 = vld [vmem:[%s7803_s2 + $0x2b0] sm:$0xff] }
  0xf6   :  { %781 = vmatprep.subr.mxu1 %v4411_v30  ;;  %5147 = vmatprep.subr.mxu0 %v5372_v0  ;;  %v4450_v30 = vld [vmem:[%s7803_s2 + $0x290] sm:$0xff] }
  0xf7   :  { %782 = vmatpush1.msra.mxu1 %v4410_v31  ;;  %5148 = vmatpush3.msra.mxu0 %v4412_v32  ;;  %v4449_v31 = vld [vmem:[%s7803_s2 + $0x288] sm:$0xff]  ;;  %v4451_v32 = vld [vmem:[%s7803_s2 + $0x298] sm:$0xff] }
  0xf8   :  { %783 = vmatprep.subr.mxu1 %v4408_v33  ;;  %5149 = vmatprep.subr.mxu0 %v5372_v0  ;;  %v4447_v33 = vld [vmem:[%s7803_s2 + $0x278] sm:$0xff] }
  0xf9   :  { %784 = vmatpush1.msra.mxu1 %v4407_v34  ;;  %5150 = vmatpush3.msra.mxu0 %v4409_v35  ;;  %v4446_v34 = vld [vmem:[%s7803_s2 + $0x270] sm:$0xff]  ;;  %v4448_v35 = vld [vmem:[%s7803_s2 + $0x280] sm:$0xff] }
  0xfa   :  { %785 = vmatprep.subr.mxu1 %v4405_v36  ;;  %5151 = vmatprep.subr.mxu0 %v5372_v0  ;;  %v4444_v36 = vld [vmem:[%s7803_s2 + $0x260] sm:$0xff] }
  0xfb   :  { %786 = vmatpush1.msra.mxu1 %v4404_v37  ;;  %5152 = vmatpush3.msra.mxu0 %v4406_v38  ;;  %v4443_v37 = vld [vmem:[%s7803_s2 + $0x258] sm:$0xff]  ;;  %v4445_v38 = vld [vmem:[%s7803_s2 + $0x268] sm:$0xff] }
  0xfc   :  { %5162 = vmatprep.subr.mxu1 %v5372_v0  ;;  %1070 = vmatprep.subr.mxu0 %v4462_v39  ;;  %v4441_v39 = vld [vmem:[%s7803_s2 + $0x248] sm:$0xff] }
 0x18a   :  { %v359_v40 = vpop.f32.mrf.mxu0  ;;  %v442_v41 = vpop.f32.mrf.mxu1 }
 0x18c   :  { %v5088_v42 = vpop.f32.mrf.mxu1  ;;  %v361_v43 = vpop.f32.mrf.mxu0 }
 0x191   :  { %v365_v44 = vpop.f32.mrf.mxu0  ;;  %v447_v45 = vpop.f32.mrf.mxu1 }
 0x193   :  { %v5091_v46 = vpop.f32.mrf.mxu1  ;;  %v367_v47 = vpop.f32.mrf.mxu0 }
 0x197   :  { %v452_v48 = vpop.f32.mrf.mxu1  ;;  %v371_v49 = vpop.f32.mrf.mxu0 }
 0x199   :  { %v5094_v50 = vpop.f32.mrf.mxu1  ;;  %v373_v51 = vpop.f32.mrf.mxu0 }
 0x19f   :  { %v531_v52 = vpop.f32.mrf.mxu0  ;;  %v614_v53 = vpop.f32.mrf.mxu1 }
 0x1a0   :  { %v5825_v54 = vadd.f32 %v531_v52, %v359_v40  ;;  %v5827_v55 = vadd.f32 %v614_v53, %v442_v41  ;;  %v4440_v40 = vld [vmem:[%s7803_s2 + $0x240] sm:$0xff]  ;;  %v4442_v41 = vld [vmem:[%s7803_s2 + $0x250] sm:$0xff] }
 0x1a1   :  { %v533_v56 = vpop.f32.mrf.mxu0  ;;  %v5113_v57 = vpop.f32.mrf.mxu1 }
 0x1a2   :  { %v5829_v58 = vadd.f32 %v533_v56, %v361_v43 }
 0x1a3   :  { %v537_v59 = vpop.f32.mrf.mxu0  ;;  %v619_v60 = vpop.f32.mrf.mxu1 }
 0x1a4   :  { %v5831_v61 = vadd.f32 %v537_v59, %v365_v44  ;;  %v5833_v62 = vadd.f32 %v619_v60, %v447_v45 }
 0x1a5   :  { %v539_v63 = vpop.f32.mrf.mxu0  ;;  %v5116_v5 = vpop.f32.mrf.mxu1 }
 0x1a6   :  { %v5835_v6 = vadd.f32 %v539_v63, %v367_v47 }
 0x1a7   :  { %v543_v7 = vpop.f32.mrf.mxu0  ;;  %v624_v8 = vpop.f32.mrf.mxu1 }
 0x1a8   :  { %v5837_v9 = vadd.f32 %v543_v7, %v371_v49  ;;  %v5839_v10 = vadd.f32 %v624_v8, %v452_v48 }
 0x1a9   :  { %v545_v11 = vpop.f32.mrf.mxu0  ;;  %v5119_v12 = vpop.f32.mrf.mxu1 }
 0x1aa   :  { %v5841_v13 = vadd.f32 %v545_v11, %v373_v51  ;;  %v1228_v11 = vlaneseq }
 0x1ab   :  { %v707_v14 = vpop.f32.mrf.mxu0 }
 0x1ac   :  { %4428 = vmatmul.mubr.msk.f32.vlgmr.msra.gmra.mxu1 %vm283_vm2, %v707_v14  ;;  %5154 = vmatmul.mubr.msk.f32.vlgmr.msra.gmra.mxu0 %vm283_vm2, %v707_v14  ;;  %v5991_v12 = vshrl.u32 %v1228_v11, 7  ;;  %v4564_v11 = vld [vmem:[%s7806_s5 + $0x4f0] sm:$0xff] }
 0x1ad   :  { %v5130_v17 = vpop.f32.mrf.mxu0  ;;  %825 = vmatprep.mubr.f32.mxu1 %v5372_v0  ;;  %5156 = vmatprep.mubr.msk.f32.mxu0 %vm5373_vm0, %v5372_v0 }
 0x1ae   :  { %5163 = vmatpush3.msra.mxu1 %v5450_v1  ;;  %1071 = vmatpush1.msra.mxu0 %v4461_v15  ;;  %v1238_v15 = vsub.s32 2, %v5991_v12 }
 0x1af   :  { %v712_v18 = vpop.f32.mrf.mxu0  ;;  %5164 = vmatprep.subr.mxu1 %v5372_v0  ;;  %1072 = vmatprep.subr.mxu0 %v4459_v16 }
 0x1b0   :  { %4429 = vmatmul.mubr.msk.f32.gmra.mxu1 %vm283_vm2, %v712_v18  ;;  %5157 = vmatmul.mubr.msk.f32.gmra.mxu0 %vm283_vm2, %v712_v18  ;;  %v1226_v18 = vld [vmem:[%s7805_s3] sm:$0x7] }
 0x1b1   :  { %v5133_v19 = vpop.f32.mrf.mxu0  ;;  %831 = vmatprep.mubr.f32.mxu1 %v5372_v0  ;;  %5159 = vmatprep.mubr.msk.f32.mxu0 %vm5373_vm0, %v5372_v0 }
 0x1b2   :  { %5165 = vmatpush3.msra.mxu1 %v5455_v2  ;;  %v4463_v2 = vld [vmem:[%s7803_s2 + $0x2f8] sm:$0xff]  ;;  %1073 = vmatpush1.msra.mxu0 %v4458_v22  ;;  %v1230_v19 = vsub.s32 0, %v5991_v12  ;;  %s5375_s2 = smov 64  }
 0x1b3   :  { %v717_v20 = vpop.f32.mrf.mxu0  ;;  %5166 = vmatprep.subr.mxu1 %v5372_v0  ;;  %1074 = vmatprep.subr.mxu0 %v4456_v24 }
 0x1b4   :  { %4430 = vmatmul.mubr.msk.f32.gmra.mxu1 %vm283_vm2, %v717_v20  ;;  %5160 = vmatmul.mubr.msk.f32.gmra.mxu0 %vm283_vm2, %v717_v20  ;;  %v1234_v20 = vsub.s32 1, %v5991_v12  ;;  %v1231_v24 = vrot.slane %v1226_v18, %v1230_v19 }
 0x1b5   :  { %v5136_v1 = vpop.f32.mrf.mxu0  ;;  %5167 = vmatpush3.msra.mxu1 %v5465_v3  ;;  %5170 = vmatprep.mubr.msk.f32.mxu1 %vm5373_vm0, %v5372_v0  ;;  %v4435_v3 = vld [vmem:[%s7802_s1 + $0x50] sm:$0xff] }
 0x1b6   :  { %5168 = vmatprep.subr.mxu1 %v5372_v0  ;;  %1118 = vmatprep.mubr.f32.mxu0 %v5372_v0 }
 0x1b7   :  { %5169 = vmatpush3.msra.mxu1 %v5474_v4  ;;  %v4436_v4 = vld [vmem:[%s7802_s1 + $0x58] sm:$0xf]  ;;  %1075 = vmatpush1.msra.mxu0 %v4455_v25  ;;  %v1235_v25 = vrot.slane %v1226_v18, %v1234_v20 }
 0x1b8   :  { %5171 = vmatmul.mubr.msk.f32.vlgmr.msra.gmra.mxu1 %vm51_vm1, %v4434_v21  ;;  %5179 = vmatprep.subr.mxu1 %v5372_v0 }
 0x1b9   :  { %5173 = vmatprep.mubr.msk.f32.mxu1 %vm5373_vm0, %v5372_v0  ;;  %5180 = vmatpush3.msra.mxu1 %v4463_v2 }
 0x1ba   :  { %5181 = vmatprep.subr.mxu1 %v5372_v0  ;;  %1076 = vmatprep.subr.mxu0 %v4453_v27 }
 0x1bb   :  { %5182 = vmatpush3.msra.mxu1 %v4460_v23  ;;  %1077 = vmatpush1.msra.mxu0 %v4452_v28 }
 0x1bc   :  { %5174 = vmatmul.mubr.msk.f32.gmra.mxu1 %vm51_vm1, %v4435_v3  ;;  %5183 = vmatprep.subr.mxu1 %v5372_v0  ;;  %v1239_v3 = vrot.slane %v1226_v18, %v1238_v15  ;;  %v4514_v15 = vld [vmem:[%s7806_s5 + $0x360] sm:$0xff]  ;;  %v4561_v18 = vld [vmem:[%s7806_s5 + $0x4d8] sm:$0xff] }
 0x1bd   :  { %5176 = vmatprep.mubr.msk.f32.mxu1 %vm5373_vm0, %v5372_v0  ;;  %5184 = vmatpush3.msra.mxu1 %v4457_v26 }
 0x1be   :  { %5185 = vmatprep.subr.mxu1 %v5372_v0  ;;  %1078 = vmatprep.subr.mxu0 %v4450_v30 }
 0x1bf   :  { %5186 = vmatpush3.msra.mxu1 %v4454_v29  ;;  %1079 = vmatpush1.msra.mxu0 %v4449_v31 }
 0x1c0   :  { %5177 = vmatmul.mubr.msk.f32.gmra.mxu1 %vm51_vm1, %v4436_v4  ;;  %5187 = vmatprep.subr.mxu1 %v5372_v0 }
 0x1c1   :  { %5195 = vmatprep.mubr.msk.f32.mxu1 %vm5373_vm0, %v5372_v0  ;;  %5188 = vmatpush3.msra.mxu1 %v4451_v32 }
 0x1c2   :  { %1080 = vmatprep.subr.mxu0 %v4447_v33  ;;  %5189 = vmatprep.subr.mxu1 %v5372_v0 }
 0x1c3   :  { %1081 = vmatpush1.msra.mxu0 %v4446_v34  ;;  %5190 = vmatpush3.msra.mxu1 %v4448_v35 }
 0x1c4   :  { %1082 = vmatprep.subr.mxu0 %v4444_v36  ;;  %5191 = vmatprep.subr.mxu1 %v5372_v0 }
 0x1c5   :  { %1083 = vmatpush1.msra.mxu0 %v4443_v37  ;;  %5192 = vmatpush3.msra.mxu1 %v4445_v38 }
 0x1c6   :  { %1084 = vmatprep.subr.mxu0 %v4441_v39  ;;  %5193 = vmatprep.subr.mxu1 %v5372_v0 }
 0x1c7   :  { %1085 = vmatpush1.msra.mxu0 %v4440_v40  ;;  %5194 = vmatpush3.msra.mxu1 %v4442_v41 }
 0x26c   :  { %v821_v42 = vpop.f32.mrf.mxu1  ;;  %v904_v43 = vpop.f32.mrf.mxu0 }
 0x26d   :  { %v5961_v44 = vadd.f32 %v821_v42, %v5825_v54  ;;  %v920_v45 = vadd.f32 %v904_v43, %v5827_v55 }
 0x26e   :  { %v823_v46 = vpop.f32.mrf.mxu1  ;;  %v5155_v47 = vpop.f32.mrf.mxu0 }
 0x26f   :  { %v919_v48 = vadd.f32 %v823_v46, %v5829_v58 }
 0x270   :  { %v827_v49 = vpop.f32.mrf.mxu1  ;;  %v909_v50 = vpop.f32.mrf.mxu0 }
 0x271   :  { %v921_v51 = vadd.f32 %v827_v49, %v5831_v61  ;;  %v923_v52 = vadd.f32 %v909_v50, %v5833_v62 }
 0x272   :  { %v829_v53 = vpop.f32.mrf.mxu1  ;;  %v5158_v56 = vpop.f32.mrf.mxu0 }
 0x273   :  { %v922_v57 = vadd.f32 %v829_v53, %v5835_v6 }
 0x274   :  { %v833_v59 = vpop.f32.mrf.mxu1  ;;  %v914_v60 = vpop.f32.mrf.mxu0 }
 0x275   :  { %v924_v54 = vadd.f32 %v833_v59, %v5837_v9  ;;  %v926_v55 = vadd.f32 %v914_v60, %v5839_v10  ;;  %v5987_v10 = vld [vmem:[%s7804_s4] sm:$0xff] }
 0x276   :  { %v835_v63 = vpop.f32.mrf.mxu1  ;;  %v5161_v5 = vpop.f32.mrf.mxu0 }
 0x277   :  { %v925_v58 = vadd.f32 %v835_v63, %v5841_v13 }
 0x278   :  { %v1006_v7 = vpop.f32.mrf.mxu1 }
 0x279   :  { %4464 = vmatmul.mubr.msk.f32.vlgmr.msra.gmra.mxu0 %vm283_vm2, %v1006_v7  ;;  %5196 = vmatmul.mubr.msk.f32.vlgmr.msra.gmra.mxu1 %vm283_vm2, %v1006_v7  ;;  %v1271_v7 = vld [vmem:[%s7804_s4 + $0x8] sm:$0x3f] }
 0x27a   :  { %v5172_v61 = vpop.f32.mrf.mxu1  ;;  %1124 = vmatprep.mubr.f32.mxu0 %v5372_v0  ;;  %5198 = vmatprep.mubr.msk.f32.mxu1 %vm5373_vm0, %v5372_v0 }
 0x27c   :  { %v1011_v62 = vpop.f32.mrf.mxu1 }
 0x27d   :  { %4465 = vmatmul.mubr.msk.f32.gmra.mxu0 %vm283_vm2, %v1011_v62  ;;  %5199 = vmatmul.mubr.msk.f32.gmra.mxu1 %vm283_vm2, %v1011_v62  ;;  %v4477_v62 = vld [vmem:[%s7804_s4 + $0x10] sm:$0xff] }
 0x27e   :  { %v5175_v6 = vpop.f32.mrf.mxu1  ;;  %1130 = vmatprep.mubr.f32.mxu0 %v5372_v0  ;;  %5201 = vmatprep.mubr.msk.f32.mxu1 %vm5373_vm0, %v5372_v0 }
 0x27f   :  { %v4517_v6 = vld [vmem:[%s7806_s5 + $0x378] sm:$0xff] }
 0x280   :  { %v1016_v8 = vpop.f32.mrf.mxu1 }
 0x281   :  { %4466 = vmatmul.mubr.msk.f32.gmra.mxu0 %vm283_vm2, %v1016_v8  ;;  %5202 = vmatmul.mubr.msk.f32.gmra.mxu1 %vm283_vm2, %v1016_v8  ;;  %v4565_v8 = vld [vmem:[%s7806_s5 + $0x4f8] sm:$0xff] }
 0x282   :  { %v5178_v9 = vpop.f32.mrf.mxu1  ;;  %1353 = vmatprep.mubr.f32.mxu0 %v5372_v0  ;;  %5210 = vmatprep.mubr.msk.f32.mxu1 %vm1272_vm3, %v5987_v10 }
 0x283   :  { %v4478_v9 = vld [vmem:[%s7804_s4 + $0x18] sm:$0x3f] }
 0x339   :  { %v1120_v13 = vpop.f32.mrf.mxu0  ;;  %v1203_v14 = vpop.f32.mrf.mxu1 }
 0x33a   :  { %v1219_v2 = vadd.f32 %v1203_v14, %v920_v45  ;;  %v1217_v34 = vadd.f32 %v1120_v13, %v5961_v44  ;;  %v4515_v13 = vld [vmem:[%s7806_s5 + $0x368] sm:$0xff] }
 0x33b   :  { %v1122_v16 = vpop.f32.mrf.mxu0  ;;  %v5197_v17 = vpop.f32.mrf.mxu1  ;;  %v4563_v14 = vld [vmem:[%s7806_s5 + $0x4e8] sm:$0xff] }
 0x33c   :  { %v1218_v30 = vadd.f32 %v1122_v16, %v919_v48  ;;  %v1245_v35 = vadd.f32 %v1239_v3, %v1219_v2  ;;  %v1243_v49 = vadd.f32 %v1231_v24, %v1217_v34  ;;  %v4562_v16 = vld [vmem:[%s7806_s5 + $0x4e0] sm:$0xff]  ;;  %v4513_v17 = vld [vmem:[%s7806_s5 + $0x358] sm:$0xff]  ;;  %v4511_v2 = vld [vmem:[%s7806_s5 + $0x348] sm:$0xff] }
 0x33d   :  { %v1126_v1 = vpop.f32.mrf.mxu0  ;;  %v1208_v21 = vpop.f32.mrf.mxu1  ;;  %v4496_v34 = vld [vmem:[%s7806_s5 + $0x2d0] sm:$0xff] }
 0x33e   :  { %v1222_v4 = vadd.f32 %v1208_v21, %v923_v52  ;;  %v1220_v26 = vadd.f32 %v1126_v1, %v921_v51  ;;  %v1244_v43 = vadd.f32 %v1235_v25, %v1218_v30  ;;  %v1254_v48 = vmul.f32 0.01, %v1245_v35  ;;  %v4512_v1 = vld [vmem:[%s7806_s5 + $0x350] sm:$0xff] }
 0x33f   :  { %v1128_v22 = vpop.f32.mrf.mxu0  ;;  %v5200_v23 = vpop.f32.mrf.mxu1  ;;  %v1252_v60 = vmul.f32 0.01, %v1243_v49  ;;  %v4560_v21 = vld [vmem:[%s7806_s5 + $0x4d0] sm:$0xff] }
 0x340   :  { %v1221_v27 = vadd.f32 %v1128_v22, %v922_v57  ;;  %v1248_v31 = vadd.f32 %v1239_v3, %v1222_v4  ;;  %v1246_v42 = vadd.f32 %v1231_v24, %v1220_v26  ;;  %v1253_v56 = vmul.f32 0.01, %v1244_v43  ;;  %v4509_v4 = vld [vmem:[%s7806_s5 + $0x338] sm:$0xff]  ;;  %v4508_v22 = vld [vmem:[%s7806_s5 + $0x330] sm:$0xff]  ;;  %v4507_v23 = vld [vmem:[%s7806_s5 + $0x328] sm:$0xff] }
 0x341   :  { %v1132_v28 = vpop.f32.mrf.mxu0  ;;  %v1213_v29 = vpop.f32.mrf.mxu1  ;;  %v6035_v61 = vmax.f32 %v1243_v49, %v1252_v60  ;;  %v4504_v26 = vld [vmem:[%s7806_s5 + $0x310] sm:$0xff]  ;;  %v4547_v49 = vld [vmem:[%s7806_s5 + $0x468] sm:$0xff] }
 0x342   :  { %v1223_v32 = vadd.f32 %v1132_v28, %v924_v54  ;;  %v1225_v33 = vadd.f32 %v1213_v29, %v926_v55  ;;  %v1247_v38 = vadd.f32 %v1235_v25, %v1221_v27  ;;  %v1257_v45 = vmul.f32 0.01, %v1248_v31  ;;  %v4503_v27 = vld [vmem:[%s7806_s5 + $0x308] sm:$0xff]  ;;  %v4502_v28 = vld [vmem:[%s7806_s5 + $0x300] sm:$0xff]  ;;  %v4501_v29 = vld [vmem:[%s7806_s5 + $0x2f8] sm:$0xff] }
 0x343   :  { %v1134_v36 = vpop.f32.mrf.mxu0  ;;  %v5203_v37 = vpop.f32.mrf.mxu1  ;;  %v1255_v53 = vmul.f32 0.01, %v1246_v42  ;;  %v6016_v55 = vmax.f32 %v1245_v35, %v1254_v48  ;;  %v4500_v30 = vld [vmem:[%s7806_s5 + $0x2f0] sm:$0xff]  ;;  %v4495_v35 = vld [vmem:[%s7806_s5 + $0x2c8] sm:$0xff]  ;;  %v4545_v48 = vld [vmem:[%s7806_s5 + $0x458] sm:$0xff] }
 0x344   :  { %v1249_v39 = vadd.f32 %v1231_v24, %v1223_v32  ;;  %v1251_v40 = vadd.f32 %v1239_v3, %v1225_v33  ;;  %v1224_v41 = vadd.f32 %v1134_v36, %v925_v58  ;;  %v1256_v51 = vmul.f32 0.01, %v1247_v38  ;;  %v4510_v3 = vld [vmem:[%s7806_s5 + $0x340] sm:$0xff]  ;;  %v4497_v33 = vld [vmem:[%s7806_s5 + $0x2d8] sm:$0xff]  ;;  %v4540_v60 = vld [vmem:[%s7806_s5 + $0x430] sm:$0xff] }
 0x345   :  { %v6006_v57 = vmax.f32 %v1248_v31, %v1257_v45  ;;  %v6023_v5 = vmax.f32 %v1246_v42, %v1255_v53  ;;  %v6028_v58 = vmax.f32 %v1244_v43, %v1253_v56  ;;  %v4506_v24 = vld [vmem:[%s7806_s5 + $0x320] sm:$0xff]  ;;  %v4499_v31 = vld [vmem:[%s7806_s5 + $0x2e8] sm:$0xff]  ;;  %v4493_v37 = vld [vmem:[%s7806_s5 + $0x2b8] sm:$0xff] }
 0x346   :  { %v1260_v46 = vmul.f32 0.01, %v1251_v40  ;;  %v1250_v47 = vadd.f32 %v1235_v25, %v1224_v41  ;;  %v1258_v50 = vmul.f32 0.01, %v1249_v39  ;;  %v6018_v63 = vmax.f32 %v1247_v38, %v1256_v51  ;;  %v4505_v25 = vld [vmem:[%s7806_s5 + $0x318] sm:$0xff]  ;;  %v4498_v32 = vld [vmem:[%s7806_s5 + $0x2e0] sm:$0xff] }
 0x347   :  { %v4494_v36 = vld [vmem:[%s7806_s5 + $0x2c0] sm:$0xff]  ;;  %v4492_v38 = vld [vmem:[%s7806_s5 + $0x2b0] sm:$0xff]  ;;  %v4489_v41 = vld [vmem:[%s7806_s5 + $0x298] sm:$0xff] }
 0x348   :  { %v6004_v52 = vmax.f32 %v1251_v40, %v1260_v46  ;;  %v1259_v44 = vmul.f32 0.01, %v1250_v47  ;;  %v6012_v54 = vmax.f32 %v1249_v39, %v1258_v50  ;;  %v4491_v39 = vld [vmem:[%s7806_s5 + $0x2a8] sm:$0xff]  ;;  %v4490_v40 = vld [vmem:[%s7806_s5 + $0x2a0] sm:$0xff]  ;;  %v4488_v42 = vld [vmem:[%s7806_s5 + $0x290] sm:$0xff] }
 0x349   :  { %v4487_v43 = vld [vmem:[%s7806_s5 + $0x288] sm:$0xff]  ;;  %v4486_v45 = vld [vmem:[%s7806_s5 + $0x280] sm:$0xff]  ;;  %v4549_v46 = vld [vmem:[%s7806_s5 + $0x478] sm:$0xff] }
 0x34a   :  { %v6008_v59 = vmax.f32 %v1250_v47, %v1259_v44  ;;  %5204 = vmatprep.subr.msk.mxu1 %vm1279_vm4, %v6004_v52  ;;  %v4548_v47 = vld [vmem:[%s7806_s5 + $0x470] sm:$0xff]  ;;  %v4546_v50 = vld [vmem:[%s7806_s5 + $0x460] sm:$0xff]  ;;  %v4543_v44 = vld [vmem:[%s7806_s5 + $0x448] sm:$0xff] }
 0x34b   :  { %5205 = vmatpush3.msk.msra.mxu1 %vm1279_vm4, %v6004_v52  ;;  %v4544_v51 = vld [vmem:[%s7806_s5 + $0x450] sm:$0xff]  ;;  %v4542_v53 = vld [vmem:[%s7806_s5 + $0x440] sm:$0xff]  ;;  %v4541_v56 = vld [vmem:[%s7806_s5 + $0x438] sm:$0xff] }
 0x34c   :  { %4470 = vmatprep.subr.msk.mxu0 %vm1279_vm4, %v6008_v59  ;;  %5206 = vmatprep.subr.mxu1 %v6006_v57 }
 0x34d   :  { %4471 = vmatpush1.msk.msra.mxu0 %vm1279_vm4, %v6012_v54  ;;  %5207 = vmatpush3.msra.mxu1 %v6006_v57 }
 0x34e   :  { %1317 = vmatprep.subr.mxu0 %v6018_v63  ;;  %5208 = vmatprep.subr.mxu1 %v6016_v55 }
 0x34f   :  { %1318 = vmatpush1.msra.mxu0 %v6023_v5  ;;  %5209 = vmatpush3.msra.mxu1 %v6016_v55 }
 0x350   :  { %1319 = vmatprep.subr.mxu0 %v6028_v58  ;;  %4479 = vmatprep.subr.msk.mxu1 %vm1279_vm4, %v6008_v59 }
 0x351   :  { %1320 = vmatpush1.msra.mxu0 %v6035_v61  ;;  %5211 = vmatmul.mubr.msk.f32.vlgmr.msra.gmra.mxu1 %vm1272_vm3, %v1271_v7 }
 0x352   :  { %4480 = vmatpush1.msk.msra.mxu1 %vm1279_vm4, %v6012_v54  ;;  %4472 = vmatmul.mubr.msk.f32.vlgmr.msra.gmra.mxu0 %vm1272_vm3, %v5987_v10  ;;  %v4516_v10 = vld [vmem:[%s7806_s5 + $0x370] sm:$0xff] }
 0x353   :  { %1558 = vmatprep.subr.mxu1 %v6018_v63  ;;  %5213 = vmatprep.subr.msk.mxu0 %vm1279_vm4, %v6004_v52 }
 0x354   :  { %1559 = vmatpush1.msra.mxu1 %v6023_v5  ;;  %5214 = vmatpush3.msk.msra.mxu0 %vm1279_vm4, %v6004_v52 }
 0x355   :  { %1560 = vmatprep.subr.mxu1 %v6028_v58  ;;  %5215 = vmatprep.subr.mxu0 %v6006_v57 }
 0x356   :  { %1359 = vmatprep.mubr.f32.mxu0 %v5372_v0  ;;  %1561 = vmatpush1.msra.mxu1 %v6035_v61 }
 0x357   :  { %1594 = vmatprep.mubr.f32.mxu1 %v5372_v0  ;;  %5216 = vmatpush3.msra.mxu0 %v6006_v57 }
 0x358   :  { %4473 = vmatmul.mubr.msk.f32.gmra.mxu0 %vm1272_vm3, %v1271_v7  ;;  %4481 = vmatmul.mubr.msk.f32.vlgmr.msra.gmra.mxu1 %vm1272_vm3, %v4477_v62  ;;  %v4539_v7 = vld [vmem:[%s7806_s5 + $0x428] sm:$0xff] }
 0x359   :  { %5217 = vmatprep.subr.mxu0 %v6016_v55  ;;  %5219 = vmatprep.mubr.msk.f32.mxu0 %vm1272_vm3, %v4477_v62  ;;  %v4538_v62 = vld [vmem:[%s7806_s5 + $0x420] sm:$0xff] }
 0x35a   :  { %5218 = vmatpush3.msra.mxu0 %v6016_v55  ;;  %1600 = vmatprep.mubr.f32.mxu1 %v5372_v0 }
 0x35b   :  { %1769 = vmatprep.subr.mxu1 %v4517_v6  ;;  %1862 = vmatprep.subr.mxu0 %v4565_v8  ;;  %v4537_v6 = vld [vmem:[%s7806_s5 + $0x418] sm:$0xff]  ;;  %v4536_v8 = vld [vmem:[%s7806_s5 + $0x410] sm:$0xff] }
 0x35c   :  { %5220 = vmatmul.mubr.msk.f32.vlgmr.msra.gmra.mxu0 %vm1272_vm3, %v4478_v9  ;;  %4482 = vmatmul.mubr.msk.f32.gmra.mxu1 %vm1272_vm3, %v4478_v9  ;;  %v4535_v9 = vld [vmem:[%s7806_s5 + $0x408] sm:$0xff] }
 0x35d   :  { %1770 = vmatpush1.msra.mxu1 %v4516_v10  ;;  %1863 = vmatpush1.msra.mxu0 %v4564_v11  ;;  %v4534_v10 = vld [vmem:[%s7806_s5 + $0x400] sm:$0xff]  ;;  %v4533_v11 = vld [vmem:[%s7806_s5 + $0x3f8] sm:$0xff] }
 0x35e   :  { %1771 = vmatprep.subr.mxu1 %v4515_v13  ;;  %1864 = vmatprep.subr.mxu0 %v4563_v14  ;;  %v4532_v13 = vld [vmem:[%s7806_s5 + $0x3f0] sm:$0xff]  ;;  %v4531_v14 = vld [vmem:[%s7806_s5 + $0x3e8] sm:$0xff] }
 0x35f   :  { %1772 = vmatpush1.msra.mxu1 %v4514_v15  ;;  %1865 = vmatpush1.msra.mxu0 %v4562_v16  ;;  %v4530_v15 = vld [vmem:[%s7806_s5 + $0x3e0] sm:$0xff]  ;;  %v4529_v16 = vld [vmem:[%s7806_s5 + $0x3d8] sm:$0xff] }
 0x360   :  { %1773 = vmatprep.subr.mxu1 %v4513_v17  ;;  %1866 = vmatprep.subr.mxu0 %v4561_v18  ;;  %v4528_v17 = vld [vmem:[%s7806_s5 + $0x3d0] sm:$0xff]  ;;  %v4527_v18 = vld [vmem:[%s7806_s5 + $0x3c8] sm:$0xff] }
 0x361   :  { %1774 = vmatpush1.msra.mxu1 %v4512_v1  ;;  %1867 = vmatpush1.msra.mxu0 %v4560_v21  ;;  %v4526_v1 = vld [vmem:[%s7806_s5 + $0x3c0] sm:$0xff]  ;;  %v4525_v21 = vld [vmem:[%s7806_s5 + $0x3b8] sm:$0xff] }
 0x362   :  { %1775 = vmatprep.subr.mxu1 %v4511_v2  ;;  %1910 = vmatprep.mubr.f32.mxu0 %v5372_v0  ;;  %v4524_v2 = vld [vmem:[%s7806_s5 + $0x3b0] sm:$0xff] }
 0x363   :  { %1776 = vmatpush1.msra.mxu1 %v4510_v3  ;;  %v4559_v3 = vld [vmem:[%s7806_s5 + $0x4c8] sm:$0xff] }
 0x364   :  { %1777 = vmatprep.subr.mxu1 %v4509_v4  ;;  %1868 = vmatprep.subr.mxu0 %v4559_v3  ;;  %v4523_v4 = vld [vmem:[%s7806_s5 + $0x3a8] sm:$0xff] }
 0x365   :  { %1778 = vmatpush1.msra.mxu1 %v4508_v22  ;;  %v4558_v22 = vld [vmem:[%s7806_s5 + $0x4c0] sm:$0xff]  ;;  %v1462_v3 = vld [vmem:[%s7806_s5 + $0xa8] sm:$0xff] }
 0x366   :  { %1779 = vmatprep.subr.mxu1 %v4507_v23  ;;  %1869 = vmatpush1.msra.mxu0 %v4558_v22  ;;  %v4522_v23 = vld [vmem:[%s7806_s5 + $0x3a0] sm:$0xff] }
 0x367   :  { %1780 = vmatpush1.msra.mxu1 %v4506_v24  ;;  %v4557_v24 = vld [vmem:[%s7806_s5 + $0x4b8] sm:$0xff]  ;;  %v1461_v22 = vld [vmem:[%s7806_s5 + $0xa0] sm:$0xff] }
 0x368   :  { %1781 = vmatprep.subr.mxu1 %v4505_v25  ;;  %1870 = vmatprep.subr.mxu0 %v4557_v24  ;;  %v4521_v25 = vld [vmem:[%s7806_s5 + $0x398] sm:$0xff] }
 0x369   :  { %1782 = vmatpush1.msra.mxu1 %v4504_v26  ;;  %v4556_v26 = vld [vmem:[%s7806_s5 + $0x4b0] sm:$0xff]  ;;  %v1460_v24 = vld [vmem:[%s7806_s5 + $0x98] sm:$0xff] }
 0x36a   :  { %1783 = vmatprep.subr.mxu1 %v4503_v27  ;;  %1871 = vmatpush1.msra.mxu0 %v4556_v26  ;;  %v4520_v27 = vld [vmem:[%s7806_s5 + $0x390] sm:$0xff] }
 0x36b   :  { %1784 = vmatpush1.msra.mxu1 %v4502_v28  ;;  %v4555_v28 = vld [vmem:[%s7806_s5 + $0x4a8] sm:$0xff]  ;;  %v1459_v26 = vld [vmem:[%s7806_s5 + $0x90] sm:$0xff] }
 0x36c   :  { %1785 = vmatprep.subr.mxu1 %v4501_v29  ;;  %v4519_v29 = vld [vmem:[%s7806_s5 + $0x388] sm:$0xff]  ;;  %1872 = vmatprep.subr.mxu0 %v4555_v28  ;;  %v1457_v28 = vld [vmem:[%s7806_s5 + $0x80] sm:$0xff] }
 0x36d   :  { %1786 = vmatpush1.msra.mxu1 %v4500_v30  ;;  %v4554_v30 = vld [vmem:[%s7806_s5 + $0x4a0] sm:$0xff] }
 0x36e   :  { %1787 = vmatprep.subr.mxu1 %v4499_v31  ;;  %1873 = vmatpush1.msra.mxu0 %v4554_v30  ;;  %v4518_v31 = vld [vmem:[%s7806_s5 + $0x380] sm:$0xff]  ;;  %v1455_v30 = vld [vmem:[%s7806_s5 + $0x70] sm:$0xff] }
 0x36f   :  { %1788 = vmatpush1.msra.mxu1 %v4498_v32  ;;  %v4553_v32 = vld [vmem:[%s7806_s5 + $0x498] sm:$0xff] }
 0x370   :  { %1789 = vmatprep.subr.mxu1 %v4497_v33  ;;  %1874 = vmatprep.subr.mxu0 %v4553_v32  ;;  %v4552_v33 = vld [vmem:[%s7806_s5 + $0x490] sm:$0xff]  ;;  %v1453_v32 = vld [vmem:[%s7806_s5 + $0x60] sm:$0xff] }
 0x371   :  { %1790 = vmatpush1.msra.mxu1 %v4496_v34  ;;  %v1520_v34 = vld [vmem:[%s7806_s5 + $0x278] sm:$0xff]  ;;  %1875 = vmatpush1.msra.mxu0 %v4552_v33 }
 0x372   :  { %1791 = vmatprep.subr.mxu1 %v4495_v35  ;;  %v4551_v35 = vld [vmem:[%s7806_s5 + $0x488] sm:$0xff]  ;;  %v1452_v33 = vld [vmem:[%s7806_s5 + $0x58] sm:$0xff] }
 0x373   :  { %1792 = vmatpush1.msra.mxu1 %v4494_v36  ;;  %1876 = vmatprep.subr.mxu0 %v4551_v35  ;;  %v4550_v36 = vld [vmem:[%s7806_s5 + $0x480] sm:$0xff]  ;;  %v1450_v35 = vld [vmem:[%s7806_s5 + $0x48] sm:$0xff] }
 0x374   :  { %1793 = vmatprep.subr.mxu1 %v4493_v37  ;;  %1877 = vmatpush1.msra.mxu0 %v4550_v36  ;;  %v1472_v37 = vld [vmem:[%s7806_s5 + $0xf8] sm:$0xff]  ;;  %v1449_v36 = vld [vmem:[%s7806_s5 + $0x40] sm:$0xff] }
 0x375   :  { %1794 = vmatpush1.msra.mxu1 %v4492_v38  ;;  %1929 = vmatprep.subr.mxu0 %v1472_v37  ;;  %v1448_v37 = vld [vmem:[%s7806_s5 + $0x38] sm:$0xff] }
 0x376   :  { %1795 = vmatprep.subr.mxu1 %v4491_v39 }
 0x377   :  { %1796 = vmatpush1.msra.mxu1 %v4490_v40 }
 0x378   :  { %1797 = vmatprep.subr.mxu1 %v4489_v41 }
 0x379   :  { %1798 = vmatpush1.msra.mxu1 %v4488_v42 }
 0x37a   :  { %1799 = vmatprep.subr.mxu1 %v4487_v43 }
 0x37b   :  { %1800 = vmatpush1.msra.mxu1 %v4486_v45 }
 0x37c   :  { %1801 = vmatprep.subr.mxu1 %v4549_v46 }
 0x37d   :  { %1802 = vmatpush2.msra.mxu1 %v4548_v47  ;;  %v1519_v47 = vld [vmem:[%s7806_s5 + $0x270] sm:$0xff] }
 0x37e   :  { %1803 = vmatprep.subr.mxu1 %v4547_v49  ;;  %v1518_v49 = vld [vmem:[%s7806_s5 + $0x268] sm:$0xff] }
 0x37f   :  { %1804 = vmatpush2.msra.mxu1 %v4546_v50 }
 0x380   :  { %1805 = vmatprep.subr.mxu1 %v4545_v48  ;;  %v1517_v48 = vld [vmem:[%s7806_s5 + $0x260] sm:$0xff] }
 0x381   :  { %1806 = vmatpush2.msra.mxu1 %v4544_v51 }
 0x382   :  { %1807 = vmatprep.subr.mxu1 %v4543_v44  ;;  %v1471_v44 = vld [vmem:[%s7806_s5 + $0xf0] sm:$0xff] }
 0x383   :  { %1808 = vmatpush2.msra.mxu1 %v4542_v53  ;;  %v1516_v53 = vld [vmem:[%s7806_s5 + $0x258] sm:$0xff] }
 0x384   :  { %1809 = vmatprep.subr.mxu1 %v4541_v56 }
 0x385   :  { %1810 = vmatpush2.msra.mxu1 %v4540_v60  ;;  %v1470_v60 = vld [vmem:[%s7806_s5 + $0xe8] sm:$0xff] }
 0x386   :  { %1811 = vmatprep.subr.mxu1 %v4539_v7  ;;  %v1515_v7 = vld [vmem:[%s7806_s5 + $0x250] sm:$0xff] }
 0x387   :  { %1812 = vmatpush2.msra.mxu1 %v4538_v62  ;;  %v1469_v62 = vld [vmem:[%s7806_s5 + $0xe0] sm:$0xff] }
 0x388   :  { %1813 = vmatprep.subr.mxu1 %v4537_v6  ;;  %v1514_v6 = vld [vmem:[%s7806_s5 + $0x248] sm:$0xff] }
 0x389   :  { %1814 = vmatpush2.msra.mxu1 %v4536_v8 }
 0x38a   :  { %1815 = vmatprep.subr.mxu1 %v4535_v9  ;;  %v1468_v9 = vld [vmem:[%s7806_s5 + $0xd8] sm:$0xff] }
 0x38b   :  { %1816 = vmatpush2.msra.mxu1 %v4534_v10  ;;  %v1513_v10 = vld [vmem:[%s7806_s5 + $0x240] sm:$0xff] }
 0x38c   :  { %1817 = vmatprep.subr.mxu1 %v4533_v11  ;;  %v1467_v11 = vld [vmem:[%s7806_s5 + $0xd0] sm:$0xff] }
 0x38d   :  { %1818 = vmatpush2.msra.mxu1 %v4532_v13  ;;  %v1512_v13 = vld [vmem:[%s7806_s5 + $0x238] sm:$0xff] }
 0x38e   :  { %1819 = vmatprep.subr.mxu1 %v4531_v14  ;;  %v1466_v14 = vld [vmem:[%s7806_s5 + $0xc8] sm:$0xff] }
 0x38f   :  { %1820 = vmatpush2.msra.mxu1 %v4530_v15  ;;  %v1511_v15 = vld [vmem:[%s7806_s5 + $0x230] sm:$0xff] }
 0x390   :  { %1821 = vmatprep.subr.mxu1 %v4529_v16  ;;  %v1465_v16 = vld [vmem:[%s7806_s5 + $0xc0] sm:$0xff] }
 0x391   :  { %1822 = vmatpush2.msra.mxu1 %v4528_v17  ;;  %v1510_v17 = vld [vmem:[%s7806_s5 + $0x228] sm:$0xff] }
 0x392   :  { %1823 = vmatprep.subr.mxu1 %v4527_v18  ;;  %v1464_v18 = vld [vmem:[%s7806_s5 + $0xb8] sm:$0xff] }
 0x393   :  { %1824 = vmatpush2.msra.mxu1 %v4526_v1  ;;  %v1509_v1 = vld [vmem:[%s7806_s5 + $0x220] sm:$0xff] }
 0x394   :  { %1825 = vmatprep.subr.mxu1 %v4525_v21  ;;  %v1463_v21 = vld [vmem:[%s7806_s5 + $0xb0] sm:$0xff] }
 0x395   :  { %1826 = vmatpush2.msra.mxu1 %v4524_v2  ;;  %v1508_v2 = vld [vmem:[%s7806_s5 + $0x218] sm:$0xff] }
 0x396   :  { %1827 = vmatprep.subr.mxu1 %v4523_v4  ;;  %v1507_v4 = vld [vmem:[%s7806_s5 + $0x210] sm:$0xff] }
 0x397   :  { %1828 = vmatpush2.msra.mxu1 %v4522_v23  ;;  %v1506_v23 = vld [vmem:[%s7806_s5 + $0x208] sm:$0xff] }
 0x398   :  { %1829 = vmatprep.subr.mxu1 %v4521_v25  ;;  %v1505_v25 = vld [vmem:[%s7806_s5 + $0x200] sm:$0xff] }
 0x399   :  { %1830 = vmatpush2.msra.mxu1 %v4520_v27  ;;  %v1458_v27 = vld [vmem:[%s7806_s5 + $0x88] sm:$0xff] }
 0x39a   :  { %1831 = vmatprep.subr.mxu1 %v4519_v29  ;;  %v1456_v29 = vld [vmem:[%s7806_s5 + $0x78] sm:$0xff] }
 0x39b   :  { %1832 = vmatpush2.msra.mxu1 %v4518_v31  ;;  %v1454_v31 = vld [vmem:[%s7806_s5 + $0x68] sm:$0xff] }
 0x39c   :  { %2022 = vmatprep.subr.mxu1 %v1520_v34  ;;  %v1451_v34 = vld [vmem:[%s7806_s5 + $0x50] sm:$0xff] }
 0x411   :  { %v6321_v38 = vpop.f32.mrf.mxu1 }
 0x412   :  { %v6323_v39 = vpop.f32.mrf.mxu0 }
 0x413   :  { %v6325_v41 = vpop.f32.mrf.mxu1 }
 0x414   :  { %v1357_v40 = vpop.f32.mrf.mxu0 }
 0x418   :  { %v6327_v42 = vpop.f32.mrf.mxu0  ;;  %v1596_v43 = vpop.f32.mrf.mxu1 }
 0x41a   :  { %v6329_v45 = vpop.f32.mrf.mxu0  ;;  %v1598_v46 = vpop.f32.mrf.mxu1 }
 0x41b   :  { %1833 = vmatprep.mubr.f32.mxu1 %v1598_v46  ;;  %v1444_v46 = vld [vmem:[%s7806_s5 + $0x18] sm:$0xff] }
 0x41c   :  { %v5221_v50 = vpop.f32.mrf.mxu0  ;;  %1834 = vmatmul.mubr.f32.vlgmr.msra.gmra.mxu1 %v1596_v43  ;;  %v1602_v51 = vpop.f32.mrf.mxu1  ;;  %v1446_v43 = vld [vmem:[%s7806_s5 + $0x28] sm:$0xff] }
 0x41d   :  { %2023 = vmatpush1.msra.mxu1 %v1519_v47  ;;  %v1443_v47 = vld [vmem:[%s7806_s5 + $0x10] sm:$0xff] }
 0x41e   :  { %2024 = vmatprep.subr.mxu1 %v1518_v49  ;;  %v1673_v56 = vpop.f32.mrf.mxu0  ;;  %v1604_v8 = vpop.f32.mrf.mxu1  ;;  %v1442_v49 = vld [vmem:[%s7806_s5 + $0x8] sm:$0xff] }
 0x41f   :  { %2025 = vmatpush1.msra.mxu1 %v1517_v48  ;;  %4566 = vmatmul.mubr.msk.f32.vlgmr.msra.gmra.mxu0 %vm283_vm2, %v1673_v56  ;;  %v6498_v48 = vld [vmem:[%s7804_s4 + $0x28] sm:$0x3f]  ;;  %v1501_v56 = vld [vmem:[%s7806_s5 + $0x1e0] sm:$0xff] }
 0x420   :  { %1930 = vmatpush1.msra.mxu0 %v1471_v44  ;;  %2026 = vmatprep.subr.mxu1 %v1516_v53  ;;  %v1503_v44 = vld [vmem:[%s7806_s5 + $0x1f0] sm:$0xff]  ;;  %v1502_v53 = vld [vmem:[%s7806_s5 + $0x1e8] sm:$0xff] }
 0x421   :  { %1931 = vmatprep.subr.mxu0 %v1470_v60  ;;  %2027 = vmatpush1.msra.mxu1 %v1515_v7  ;;  %v1500_v60 = vld [vmem:[%s7806_s5 + $0x1d8] sm:$0xff]  ;;  %v1499_v7 = vld [vmem:[%s7806_s5 + $0x1d0] sm:$0xff] }
 0x422   :  { %1932 = vmatpush1.msra.mxu0 %v1469_v62  ;;  %2028 = vmatprep.subr.mxu1 %v1514_v6  ;;  %v1498_v62 = vld [vmem:[%s7806_s5 + $0x1c8] sm:$0xff]  ;;  %v1497_v6 = vld [vmem:[%s7806_s5 + $0x1c0] sm:$0xff] }
 0x423   :  { %1839 = vmatprep.mubr.f32.mxu1 %v1604_v8  ;;  %1916 = vmatprep.mubr.f32.mxu0 %v5372_v0  ;;  %v1496_v8 = vld [vmem:[%s7806_s5 + $0x1b8] sm:$0xff] }
 0x424   :  { %1933 = vmatprep.subr.mxu0 %v1468_v9  ;;  %2029 = vmatpush1.msra.mxu1 %v1513_v10  ;;  %v1495_v9 = vld [vmem:[%s7806_s5 + $0x1b0] sm:$0xff]  ;;  %v1494_v10 = vld [vmem:[%s7806_s5 + $0x1a8] sm:$0xff] }
 0x425   :  { %1840 = vmatmul.mubr.f32.gmra.mxu1 %v1602_v51  ;;  %4567 = vmatmul.mubr.msk.f32.gmra.mxu0 %vm283_vm2, %v5221_v50  ;;  %v1441_v50 = vld [vmem:[%s7806_s5] sm:$0xff]  ;;  %v1504_v51 = vld [vmem:[%s7806_s5 + $0x1f8] sm:$0xff] }
 0x426   :  { %1934 = vmatpush1.msra.mxu0 %v1467_v11  ;;  %2030 = vmatprep.subr.mxu1 %v1512_v13  ;;  %v1493_v11 = vld [vmem:[%s7806_s5 + $0x1a0] sm:$0xff]  ;;  %v1492_v13 = vld [vmem:[%s7806_s5 + $0x198] sm:$0xff] }
 0x427   :  { %1935 = vmatprep.subr.mxu0 %v1466_v14  ;;  %1993 = vmatprep.mubr.f32.mxu0 %v1357_v40  ;;  %v1447_v40 = vld [vmem:[%s7806_s5 + $0x30] sm:$0xff] }
 0x428   :  { %2031 = vmatpush1.msra.mxu1 %v1511_v15  ;;  %1936 = vmatpush1.msra.mxu0 %v1465_v16  ;;  %v1491_v14 = vld [vmem:[%s7806_s5 + $0x190] sm:$0xff]  ;;  %v1490_v15 = vld [vmem:[%s7806_s5 + $0x188] sm:$0xff]  ;;  %v1489_v16 = vld [vmem:[%s7806_s5 + $0x180] sm:$0xff] }
 0x429   :  { %2032 = vmatprep.subr.mxu1 %v1510_v17  ;;  %1937 = vmatprep.subr.mxu0 %v1464_v18  ;;  %v1488_v17 = vld [vmem:[%s7806_s5 + $0x178] sm:$0xff]  ;;  %v1487_v18 = vld [vmem:[%s7806_s5 + $0x170] sm:$0xff] }
 0x42a   :  { %2033 = vmatpush1.msra.mxu1 %v1509_v1  ;;  %1938 = vmatpush1.msra.mxu0 %v1463_v21  ;;  %v1486_v1 = vld [vmem:[%s7806_s5 + $0x168] sm:$0xff]  ;;  %v1485_v21 = vld [vmem:[%s7806_s5 + $0x160] sm:$0xff] }
 0x42b   :  { %2034 = vmatprep.subr.mxu1 %v1508_v2  ;;  %1939 = vmatprep.subr.mxu0 %v1462_v3  ;;  %v1484_v2 = vld [vmem:[%s7806_s5 + $0x158] sm:$0xff]  ;;  %v1483_v3 = vld [vmem:[%s7806_s5 + $0x150] sm:$0xff] }
 0x42c   :  { %2035 = vmatpush1.msra.mxu1 %v1507_v4  ;;  %1940 = vmatpush1.msra.mxu0 %v1461_v22  ;;  %v1482_v4 = vld [vmem:[%s7806_s5 + $0x148] sm:$0xff]  ;;  %v1481_v22 = vld [vmem:[%s7806_s5 + $0x140] sm:$0xff] }
 0x42d   :  { %2036 = vmatprep.subr.mxu1 %v1506_v23  ;;  %1941 = vmatprep.subr.mxu0 %v1460_v24  ;;  %v1480_v23 = vld [vmem:[%s7806_s5 + $0x138] sm:$0xff]  ;;  %v1479_v24 = vld [vmem:[%s7806_s5 + $0x130] sm:$0xff] }
 0x42e   :  { %2037 = vmatpush1.msra.mxu1 %v1505_v25  ;;  %1942 = vmatpush1.msra.mxu0 %v1459_v26  ;;  %v1478_v25 = vld [vmem:[%s7806_s5 + $0x128] sm:$0xff]  ;;  %v1477_v26 = vld [vmem:[%s7806_s5 + $0x120] sm:$0xff] }
 0x42f   :  { %2070 = vmatprep.mubr.f32.mxu1 %v5372_v0  ;;  %4572 = vmatprep.subr.msk.mxu1 %vm1279_vm4, %v6008_v59 }
 0x430   :  { %1943 = vmatprep.subr.mxu0 %v1458_v27  ;;  %4568 = vmatmul.mubr.msk.f32.vlgmr.msra.gmra.mxu1 %vm283_vm2, %v6325_v41  ;;  %v6472_v41 = vld [vmem:[%s7804_s4 + $0x20] sm:$0xff]  ;;  %v1476_v27 = vld [vmem:[%s7806_s5 + $0x118] sm:$0xff] }
 0x431   :  { %4573 = vmatpush1.msk.msra.mxu1 %vm1279_vm4, %v6012_v54  ;;  %1944 = vmatpush1.msra.mxu0 %v1457_v28  ;;  %v1475_v28 = vld [vmem:[%s7806_s5 + $0x110] sm:$0xff] }
 0x432   :  { %2120 = vmatprep.subr.mxu1 %v6018_v63  ;;  %1945 = vmatprep.subr.mxu0 %v1456_v29  ;;  %v1474_v29 = vld [vmem:[%s7806_s5 + $0x108] sm:$0xff] }
 0x433   :  { %2121 = vmatpush1.msra.mxu1 %v6023_v5  ;;  %1946 = vmatpush1.msra.mxu0 %v1455_v30  ;;  %v1473_v30 = vld [vmem:[%s7806_s5 + $0x100] sm:$0xff] }
 0x434   :  { %2122 = vmatprep.subr.mxu1 %v6028_v58  ;;  %1947 = vmatprep.subr.mxu0 %v1454_v31  ;;  %v4658_v31 = vld [vmem:[%s7806_s5 + $0x778] sm:$0xff] }
 0x435   :  { %2123 = vmatpush1.msra.mxu1 %v6035_v61  ;;  %1948 = vmatpush1.msra.mxu0 %v1453_v32  ;;  %v4608_v32 = vld [vmem:[%s7806_s5 + $0x5e8] sm:$0xff] }
 0x436   :  { %1949 = vmatprep.subr.mxu0 %v1452_v33  ;;  %2076 = vmatprep.mubr.f32.mxu1 %v5372_v0  ;;  %v4656_v33 = vld [vmem:[%s7806_s5 + $0x768] sm:$0xff] }
 0x437   :  { %1950 = vmatpush1.msra.mxu0 %v1451_v34  ;;  %4569 = vmatmul.mubr.msk.f32.gmra.mxu1 %vm283_vm2, %v6321_v38  ;;  %v1445_v38 = vld [vmem:[%s7806_s5 + $0x20] sm:$0xff] }
 0x438   :  { %1951 = vmatprep.subr.mxu0 %v1450_v35  ;;  %2156 = vmatprep.mubr.f32.mxu1 %v5372_v0  ;;  %v4607_v34 = vld [vmem:[%s7806_s5 + $0x5e0] sm:$0xff] }
 0x439   :  { %1952 = vmatpush1.msra.mxu0 %v1449_v36  ;;  %v4655_v35 = vld [vmem:[%s7806_s5 + $0x760] sm:$0xff]  ;;  %v4606_v36 = vld [vmem:[%s7806_s5 + $0x5d8] sm:$0xff] }
 0x43a   :  { %1953 = vmatprep.subr.mxu0 %v1448_v37  ;;  %v4654_v37 = vld [vmem:[%s7806_s5 + $0x758] sm:$0xff] }
 0x43b   :  { %1954 = vmatpush1.msra.mxu0 %v1447_v40  ;;  %4574 = vmatmul.mubr.msk.f32.vlgmr.msra.gmra.mxu1 %vm1272_vm3, %v6472_v41  ;;  %v4605_v40 = vld [vmem:[%s7806_s5 + $0x5d0] sm:$0xff] }
 0x43c   :  { %1955 = vmatprep.subr.mxu0 %v1446_v43  ;;  %2162 = vmatprep.mubr.f32.mxu1 %v5372_v0  ;;  %v4604_v43 = vld [vmem:[%s7806_s5 + $0x5c8] sm:$0xff] }
 0x43d   :  { %1956 = vmatpush1.msra.mxu0 %v1445_v38  ;;  %v4652_v38 = vld [vmem:[%s7806_s5 + $0x748] sm:$0xff] }
 0x43e   :  { %1957 = vmatprep.subr.mxu0 %v1444_v46  ;;  %v4603_v46 = vld [vmem:[%s7806_s5 + $0x5c0] sm:$0xff] }
 0x43f   :  { %1958 = vmatpush1.msra.mxu0 %v1443_v47  ;;  %4575 = vmatmul.mubr.msk.f32.gmra.mxu1 %vm1272_vm3, %v6498_v48  ;;  %v4651_v47 = vld [vmem:[%s7806_s5 + $0x740] sm:$0xff] }
 0x440   :  { %1959 = vmatprep.subr.mxu0 %v1442_v49  ;;  %v4602_v49 = vld [vmem:[%s7806_s5 + $0x5b8] sm:$0xff] }
 0x441   :  { %1960 = vmatpush1.msra.mxu0 %v1441_v50  ;;  %v4650_v50 = vld [vmem:[%s7806_s5 + $0x738] sm:$0xff] }
 0x442   :  { %1961 = vmatprep.subr.mxu0 %v1504_v51  ;;  %v4649_v51 = vld [vmem:[%s7806_s5 + $0x730] sm:$0xff] }
 0x443   :  { %1962 = vmatpush2.msra.mxu0 %v1503_v44  ;;  %v4600_v44 = vld [vmem:[%s7806_s5 + $0x5a8] sm:$0xff] }
 0x444   :  { %1963 = vmatprep.subr.mxu0 %v1502_v53  ;;  %v4648_v53 = vld [vmem:[%s7806_s5 + $0x728] sm:$0xff] }
 0x445   :  { %1964 = vmatpush2.msra.mxu0 %v1501_v56  ;;  %v4599_v56 = vld [vmem:[%s7806_s5 + $0x5a0] sm:$0xff] }
 0x446   :  { %1965 = vmatprep.subr.mxu0 %v1500_v60  ;;  %v4647_v60 = vld [vmem:[%s7806_s5 + $0x720] sm:$0xff] }
 0x447   :  { %1966 = vmatpush2.msra.mxu0 %v1499_v7  ;;  %v4598_v7 = vld [vmem:[%s7806_s5 + $0x598] sm:$0xff] }
 0x448   :  { %1967 = vmatprep.subr.mxu0 %v1498_v62  ;;  %v4646_v62 = vld [vmem:[%s7806_s5 + $0x718] sm:$0xff] }
 0x449   :  { %1968 = vmatpush2.msra.mxu0 %v1497_v6  ;;  %v4597_v6 = vld [vmem:[%s7806_s5 + $0x590] sm:$0xff] }
 0x44a   :  { %1969 = vmatprep.subr.mxu0 %v1496_v8  ;;  %v4645_v8 = vld [vmem:[%s7806_s5 + $0x710] sm:$0xff] }
 0x44b   :  { %1970 = vmatpush2.msra.mxu0 %v1495_v9  ;;  %v4596_v9 = vld [vmem:[%s7806_s5 + $0x588] sm:$0xff] }
 0x44c   :  { %1971 = vmatprep.subr.mxu0 %v1494_v10  ;;  %v4644_v10 = vld [vmem:[%s7806_s5 + $0x708] sm:$0xff] }
 0x44d   :  { %1972 = vmatpush2.msra.mxu0 %v1493_v11  ;;  %v4595_v11 = vld [vmem:[%s7806_s5 + $0x580] sm:$0xff] }
 0x44e   :  { %1973 = vmatprep.subr.mxu0 %v1492_v13  ;;  %v4643_v13 = vld [vmem:[%s7806_s5 + $0x700] sm:$0xff] }
 0x44f   :  { %1974 = vmatpush2.msra.mxu0 %v1491_v14  ;;  %v4594_v14 = vld [vmem:[%s7806_s5 + $0x578] sm:$0xff] }
 0x450   :  { %1975 = vmatprep.subr.mxu0 %v1490_v15  ;;  %v4593_v15 = vld [vmem:[%s7806_s5 + $0x570] sm:$0xff] }
 0x451   :  { %1976 = vmatpush2.msra.mxu0 %v1489_v16  ;;  %v4592_v16 = vld [vmem:[%s7806_s5 + $0x568] sm:$0xff] }
 0x452   :  { %1977 = vmatprep.subr.mxu0 %v1488_v17  ;;  %v4591_v17 = vld [vmem:[%s7806_s5 + $0x560] sm:$0xff] }
 0x453   :  { %1978 = vmatpush2.msra.mxu0 %v1487_v18  ;;  %v4590_v18 = vld [vmem:[%s7806_s5 + $0x558] sm:$0xff] }
 0x454   :  { %1979 = vmatprep.subr.mxu0 %v1486_v1  ;;  %v4589_v1 = vld [vmem:[%s7806_s5 + $0x550] sm:$0xff] }
 0x455   :  { %1980 = vmatpush2.msra.mxu0 %v1485_v21  ;;  %v4588_v21 = vld [vmem:[%s7806_s5 + $0x548] sm:$0xff] }
 0x456   :  { %1981 = vmatprep.subr.mxu0 %v1484_v2  ;;  %v4586_v2 = vld [vmem:[%s7806_s5 + $0x538] sm:$0xff] }
 0x457   :  { %1982 = vmatpush2.msra.mxu0 %v1483_v3  ;;  %v4585_v3 = vld [vmem:[%s7806_s5 + $0x530] sm:$0xff] }
 0x458   :  { %1983 = vmatprep.subr.mxu0 %v1482_v4  ;;  %v4584_v4 = vld [vmem:[%s7806_s5 + $0x528] sm:$0xff] }
 0x459   :  { %1984 = vmatpush2.msra.mxu0 %v1481_v22  ;;  %v4583_v22 = vld [vmem:[%s7806_s5 + $0x520] sm:$0xff] }
 0x45a   :  { %1985 = vmatprep.subr.mxu0 %v1480_v23  ;;  %v4582_v23 = vld [vmem:[%s7806_s5 + $0x518] sm:$0xff] }
 0x45b   :  { %1986 = vmatpush2.msra.mxu0 %v1479_v24  ;;  %v4581_v24 = vld [vmem:[%s7806_s5 + $0x510] sm:$0xff] }
 0x45c   :  { %1987 = vmatprep.subr.mxu0 %v1478_v25  ;;  %v4580_v25 = vld [vmem:[%s7806_s5 + $0x508] sm:$0xff] }
 0x45d   :  { %1988 = vmatpush2.msra.mxu0 %v1477_v26  ;;  %v4579_v26 = vld [vmem:[%s7806_s5 + $0x500] sm:$0xff] }
 0x45e   :  { %1989 = vmatprep.subr.mxu0 %v1476_v27  ;;  %v4642_v27 = vld [vmem:[%s7806_s5 + $0x6f8] sm:$0xff] }
 0x45f   :  { %1990 = vmatpush2.msra.mxu0 %v1475_v28  ;;  %v4641_v28 = vld [vmem:[%s7806_s5 + $0x6f0] sm:$0xff] }
 0x460   :  { %1991 = vmatprep.subr.mxu0 %v1474_v29  ;;  %v4640_v29 = vld [vmem:[%s7806_s5 + $0x6e8] sm:$0xff] }
 0x461   :  { %1992 = vmatpush2.msra.mxu0 %v1473_v30  ;;  %v4639_v30 = vld [vmem:[%s7806_s5 + $0x6e0] sm:$0xff] }
 0x462   :  { %1994 = vmatmul.mubr.f32.vlgmr.msra.gmra.mxu0 %v6323_v39  ;;  %5222 = vmatprep.subr.msk.mxu0 %vm1279_vm4, %v6004_v52  ;;  %v4657_v39 = vld [vmem:[%s7806_s5 + $0x770] sm:$0xff] }
 0x463   :  { %1999 = vmatprep.mubr.f32.mxu0 %v6329_v45  ;;  %5223 = vmatpush3.msk.msra.mxu0 %vm1279_vm4, %v6004_v52  ;;  %v4610_v45 = vld [vmem:[%s7806_s5 + $0x5f8] sm:$0xff] }
 0x464   :  { %5224 = vmatprep.subr.mxu0 %v6006_v57  ;;  %2331 = vmatprep.subr.mxu1 %v4610_v45  ;;  %v4636_v45 = vld [vmem:[%s7806_s5 + $0x6c8] sm:$0xff] }
 0x465   :  { %5225 = vmatpush3.msra.mxu0 %v6006_v57 }
 0x466   :  { %2000 = vmatmul.mubr.f32.gmra.mxu0 %v6327_v42  ;;  %5226 = vmatprep.subr.mxu0 %v6016_v55  ;;  %v4609_v42 = vld [vmem:[%s7806_s5 + $0x5f0] sm:$0xff] }
 0x467   :  { %5227 = vmatpush3.msra.mxu0 %v6016_v55  ;;  %5228 = vmatprep.mubr.msk.f32.mxu0 %vm1272_vm3, %v6472_v41  ;;  %v4653_v41 = vld [vmem:[%s7806_s5 + $0x750] sm:$0xff] }
 0x468   :  { %2424 = vmatprep.subr.mxu0 %v4658_v31  ;;  %2332 = vmatpush1.msra.mxu1 %v4609_v42  ;;  %v4638_v31 = vld [vmem:[%s7806_s5 + $0x6d8] sm:$0xff]  ;;  %v4635_v42 = vld [vmem:[%s7806_s5 + $0x6c0] sm:$0xff] }
 0x469   :  { %2333 = vmatprep.subr.mxu1 %v4608_v32  ;;  %v4634_v32 = vld [vmem:[%s7806_s5 + $0x6b8] sm:$0xff] }
 0x46a   :  { %5229 = vmatmul.mubr.msk.f32.vlgmr.msra.gmra.mxu0 %vm1272_vm3, %v6498_v48  ;;  %2334 = vmatpush1.msra.mxu1 %v4607_v34  ;;  %v4601_v48 = vld [vmem:[%s7806_s5 + $0x5b0] sm:$0xff]  ;;  %v4632_v34 = vld [vmem:[%s7806_s5 + $0x6a8] sm:$0xff] }
 0x46b   :  { %2425 = vmatpush1.msra.mxu0 %v4657_v39  ;;  %2335 = vmatprep.subr.mxu1 %v4606_v36  ;;  %v4637_v39 = vld [vmem:[%s7806_s5 + $0x6d0] sm:$0xff]  ;;  %v4630_v36 = vld [vmem:[%s7806_s5 + $0x698] sm:$0xff] }
 0x46c   :  { %2426 = vmatprep.subr.mxu0 %v4656_v33  ;;  %2336 = vmatpush1.msra.mxu1 %v4605_v40  ;;  %v4633_v33 = vld [vmem:[%s7806_s5 + $0x6b0] sm:$0xff]  ;;  %v4628_v40 = vld [vmem:[%s7806_s5 + $0x688] sm:$0xff] }
 0x46d   :  { %2427 = vmatpush1.msra.mxu0 %v4655_v35  ;;  %2337 = vmatprep.subr.mxu1 %v4604_v43  ;;  %v4631_v35 = vld [vmem:[%s7806_s5 + $0x6a0] sm:$0xff]  ;;  %v4626_v43 = vld [vmem:[%s7806_s5 + $0x678] sm:$0xff] }
 0x46e   :  { %2428 = vmatprep.subr.mxu0 %v4654_v37  ;;  %2338 = vmatpush1.msra.mxu1 %v4603_v46  ;;  %v4629_v37 = vld [vmem:[%s7806_s5 + $0x690] sm:$0xff]  ;;  %v4624_v46 = vld [vmem:[%s7806_s5 + $0x668] sm:$0xff] }
 0x46f   :  { %2429 = vmatpush1.msra.mxu0 %v4653_v41  ;;  %2339 = vmatprep.subr.mxu1 %v4602_v49  ;;  %v4627_v41 = vld [vmem:[%s7806_s5 + $0x680] sm:$0xff]  ;;  %v4622_v49 = vld [vmem:[%s7806_s5 + $0x658] sm:$0xff] }
 0x470   :  { %2430 = vmatprep.subr.mxu0 %v4652_v38  ;;  %2340 = vmatpush1.msra.mxu1 %v4601_v48  ;;  %v4625_v38 = vld [vmem:[%s7806_s5 + $0x670] sm:$0xff]  ;;  %v4620_v48 = vld [vmem:[%s7806_s5 + $0x648] sm:$0xff] }
 0x471   :  { %2431 = vmatpush1.msra.mxu0 %v4651_v47  ;;  %2341 = vmatprep.subr.mxu1 %v4600_v44  ;;  %v4623_v47 = vld [vmem:[%s7806_s5 + $0x660] sm:$0xff]  ;;  %v4618_v44 = vld [vmem:[%s7806_s5 + $0x638] sm:$0xff] }
 0x472   :  { %2432 = vmatprep.subr.mxu0 %v4650_v50  ;;  %2342 = vmatpush1.msra.mxu1 %v4599_v56  ;;  %v4621_v50 = vld [vmem:[%s7806_s5 + $0x650] sm:$0xff]  ;;  %v4616_v56 = vld [vmem:[%s7806_s5 + $0x628] sm:$0xff] }
 0x473   :  { %2433 = vmatpush1.msra.mxu0 %v4649_v51  ;;  %2343 = vmatprep.subr.mxu1 %v4598_v7  ;;  %v4619_v51 = vld [vmem:[%s7806_s5 + $0x640] sm:$0xff]  ;;  %v4614_v7 = vld [vmem:[%s7806_s5 + $0x618] sm:$0xff] }
 0x474   :  { %2434 = vmatprep.subr.mxu0 %v4648_v53  ;;  %2344 = vmatpush1.msra.mxu1 %v4597_v6  ;;  %v4617_v53 = vld [vmem:[%s7806_s5 + $0x630] sm:$0xff]  ;;  %v4612_v6 = vld [vmem:[%s7806_s5 + $0x608] sm:$0xff] }
 0x475   :  { %2435 = vmatpush1.msra.mxu0 %v4647_v60  ;;  %2345 = vmatprep.subr.mxu1 %v4596_v9  ;;  %v4615_v60 = vld [vmem:[%s7806_s5 + $0x620] sm:$0xff] }
 0x476   :  { %2436 = vmatprep.subr.mxu0 %v4646_v62  ;;  %2346 = vmatpush1.msra.mxu1 %v4595_v11  ;;  %v4613_v62 = vld [vmem:[%s7806_s5 + $0x610] sm:$0xff] }
 0x477   :  { %2437 = vmatpush1.msra.mxu0 %v4645_v8  ;;  %2347 = vmatprep.subr.mxu1 %v4594_v14  ;;  %v4611_v8 = vld [vmem:[%s7806_s5 + $0x600] sm:$0xff] }
 0x478   :  { %2438 = vmatprep.subr.mxu0 %v4644_v10  ;;  %2348 = vmatpush1.msra.mxu1 %v4593_v15 }
 0x479   :  { %2439 = vmatpush1.msra.mxu0 %v4643_v13  ;;  %2349 = vmatprep.subr.mxu1 %v4592_v16 }
 0x47a   :  { %4663 = vmatprep.subr.msk.mxu0 %vm1279_vm4, %v6008_v59  ;;  %2472 = vmatprep.mubr.f32.mxu0 %v5372_v0  ;;  %v4587_v59 = vld [vmem:[%s7806_s5 + $0x540] sm:$0xff] }
 0x47b   :  { %2350 = vmatpush1.msra.mxu1 %v4591_v17 }
 0x47c   :  { %2351 = vmatprep.subr.mxu1 %v4590_v18 }
 0x47d   :  { %2352 = vmatpush1.msra.mxu1 %v4589_v1 }
 0x47e   :  { %2353 = vmatprep.subr.mxu1 %v4588_v21 }
 0x47f   :  { %2354 = vmatpush1.msra.mxu1 %v4587_v59 }
 0x480   :  { %2355 = vmatprep.subr.mxu1 %v4586_v2 }
 0x481   :  { %2356 = vmatpush1.msra.mxu1 %v4585_v3 }
 0x482   :  { %2357 = vmatprep.subr.mxu1 %v4584_v4 }
 0x483   :  { %2358 = vmatpush1.msra.mxu1 %v4583_v22 }
 0x484   :  { %2359 = vmatprep.subr.mxu1 %v4582_v23 }
 0x485   :  { %2360 = vmatpush1.msra.mxu1 %v4581_v24 }
 0x486   :  { %2361 = vmatprep.subr.mxu1 %v4580_v25 }
 0x487   :  { %2362 = vmatpush1.msra.mxu1 %v4579_v26 }
 0x488   :  { %2363 = vmatprep.subr.mxu1 %v4642_v27 }
 0x489   :  { %2364 = vmatpush2.msra.mxu1 %v4641_v28 }
 0x48a   :  { %2365 = vmatprep.subr.mxu1 %v4640_v29 }
 0x48b   :  { %2366 = vmatpush2.msra.mxu1 %v4639_v30 }
 0x48c   :  { %2367 = vmatprep.subr.mxu1 %v4638_v31 }
 0x48d   :  { %2368 = vmatpush2.msra.mxu1 %v4637_v39 }
 0x48e   :  { %2369 = vmatprep.subr.mxu1 %v4636_v45 }
 0x48f   :  { %2370 = vmatpush2.msra.mxu1 %v4635_v42 }
 0x490   :  { %2371 = vmatprep.subr.mxu1 %v4634_v32 }
 0x491   :  { %2372 = vmatpush2.msra.mxu1 %v4633_v33 }
 0x492   :  { %2373 = vmatprep.subr.mxu1 %v4632_v34 }
 0x493   :  { %2374 = vmatpush2.msra.mxu1 %v4631_v35 }
 0x494   :  { %2375 = vmatprep.subr.mxu1 %v4630_v36 }
 0x495   :  { %2376 = vmatpush2.msra.mxu1 %v4629_v37 }
 0x496   :  { %2377 = vmatprep.subr.mxu1 %v4628_v40  ;;  %v4661_v40 = vld [vmem:[%s7804_s4 + $0x30] sm:$0xff] }
 0x497   :  { %2378 = vmatpush2.msra.mxu1 %v4627_v41  ;;  %v4694_v41 = vld [vmem:[%s7806_s5 + $0x840] sm:$0xff] }
 0x498   :  { %2379 = vmatprep.subr.mxu1 %v4626_v43  ;;  %v4693_v43 = vld [vmem:[%s7806_s5 + $0x838] sm:$0xff] }
 0x499   :  { %2380 = vmatpush2.msra.mxu1 %v4625_v38  ;;  %v4692_v38 = vld [vmem:[%s7806_s5 + $0x830] sm:$0xff] }
 0x49a   :  { %2381 = vmatprep.subr.mxu1 %v4624_v46  ;;  %v4691_v46 = vld [vmem:[%s7806_s5 + $0x828] sm:$0xff] }
 0x49b   :  { %2382 = vmatpush2.msra.mxu1 %v4623_v47  ;;  %v4690_v47 = vld [vmem:[%s7806_s5 + $0x820] sm:$0xff] }
 0x49c   :  { %2383 = vmatprep.subr.mxu1 %v4622_v49  ;;  %v4689_v49 = vld [vmem:[%s7806_s5 + $0x818] sm:$0xff] }
 0x49d   :  { %2384 = vmatpush2.msra.mxu1 %v4621_v50  ;;  %v4688_v50 = vld [vmem:[%s7806_s5 + $0x810] sm:$0xff] }
 0x49e   :  { %2385 = vmatprep.subr.mxu1 %v4620_v48  ;;  %v4687_v48 = vld [vmem:[%s7806_s5 + $0x808] sm:$0xff] }
 0x49f   :  { %2386 = vmatpush2.msra.mxu1 %v4619_v51  ;;  %v4686_v51 = vld [vmem:[%s7806_s5 + $0x800] sm:$0xff] }
 0x4a0   :  { %2387 = vmatprep.subr.mxu1 %v4618_v44  ;;  %v4685_v44 = vld [vmem:[%s7806_s5 + $0x7f8] sm:$0xff] }
 0x4a1   :  { %2388 = vmatpush2.msra.mxu1 %v4617_v53  ;;  %v4684_v53 = vld [vmem:[%s7806_s5 + $0x7f0] sm:$0xff] }
 0x4a2   :  { %2389 = vmatprep.subr.mxu1 %v4616_v56  ;;  %v4683_v56 = vld [vmem:[%s7806_s5 + $0x7e8] sm:$0xff] }
 0x4a3   :  { %2390 = vmatpush2.msra.mxu1 %v4615_v60  ;;  %v4682_v60 = vld [vmem:[%s7806_s5 + $0x7e0] sm:$0xff] }
 0x4a4   :  { %2391 = vmatprep.subr.mxu1 %v4614_v7  ;;  %v4681_v7 = vld [vmem:[%s7806_s5 + $0x7d8] sm:$0xff] }
 0x4a5   :  { %2392 = vmatpush2.msra.mxu1 %v4613_v62  ;;  %v4680_v62 = vld [vmem:[%s7806_s5 + $0x7d0] sm:$0xff] }
 0x4a6   :  { %2393 = vmatprep.subr.mxu1 %v4612_v6  ;;  %v4679_v6 = vld [vmem:[%s7806_s5 + $0x7c8] sm:$0xff] }
 0x4a7   :  { %2394 = vmatpush2.msra.mxu1 %v4611_v8  ;;  %v4678_v8 = vld [vmem:[%s7806_s5 + $0x7c0] sm:$0xff] }
 0x4dc   :  { %v1835_v9 = vpop.f32.mrf.mxu1 }
 0x4de   :  { %v1837_v11 = vpop.f32.mrf.mxu1 }
 0x4df   :  { %v1912_v10 = vpop.f32.mrf.mxu0 }
 0x4e0   :  { %v1913_v13 = vadd.f32 %v1912_v10, %v1835_v9  ;;  %v4677_v9 = vld [vmem:[%s7806_s5 + $0x7b8] sm:$0xff]  ;;  %v4676_v10 = vld [vmem:[%s7806_s5 + $0x7b0] sm:$0xff] }
 0x4e1   :  { %v1914_v14 = vpop.f32.mrf.mxu0 }
 0x4e2   :  { %v1915_v15 = vadd.f32 %v1914_v14, %v1837_v11  ;;  %v4675_v11 = vld [vmem:[%s7806_s5 + $0x7a8] sm:$0xff]  ;;  %v4673_v14 = vld [vmem:[%s7806_s5 + $0x798] sm:$0xff] }
 0x4e5   :  { %v1841_v16 = vpop.f32.mrf.mxu1  ;;  %v1918_v17 = vpop.f32.mrf.mxu0 }
 0x4e6   :  { %v1919_v18 = vadd.f32 %v1918_v17, %v1841_v16  ;;  %v4671_v16 = vld [vmem:[%s7806_s5 + $0x788] sm:$0xff]  ;;  %v4670_v17 = vld [vmem:[%s7806_s5 + $0x780] sm:$0xff] }
 0x4e7   :  { %v1843_v1 = vpop.f32.mrf.mxu1  ;;  %v1920_v21 = vpop.f32.mrf.mxu0 }
 0x4e8   :  { %v1921_v59 = vadd.f32 %v1920_v21, %v1843_v1  ;;  %v4732_v1 = vld [vmem:[%s7806_s5 + $0x970] sm:$0xff]  ;;  %v4731_v21 = vld [vmem:[%s7806_s5 + $0x968] sm:$0xff] }
 0x4f0   :  { %v2072_v2 = vpop.f32.mrf.mxu1 }
 0x4f2   :  { %v2074_v3 = vpop.f32.mrf.mxu1 }
 0x4f7   :  { %v2078_v4 = vpop.f32.mrf.mxu1 }
 0x4f9   :  { %v2080_v22 = vpop.f32.mrf.mxu1 }
 0x4fb   :  { %v2158_v23 = vpop.f32.mrf.mxu1 }
 0x4fd   :  { %v2160_v24 = vpop.f32.mrf.mxu1 }
 0x4fe   :  { %2395 = vmatprep.mubr.f32.mxu1 %v2160_v24  ;;  %v4724_v24 = vld [vmem:[%s7806_s5 + $0x930] sm:$0xff] }
 0x4ff   :  { %v2164_v25 = vpop.f32.mrf.mxu1  ;;  %2396 = vmatmul.mubr.f32.vlgmr.msra.gmra.mxu1 %v2158_v23  ;;  %v4725_v23 = vld [vmem:[%s7806_s5 + $0x938] sm:$0xff] }
 0x501   :  { %v2166_v26 = vpop.f32.mrf.mxu1 }
 0x502   :  { %2401 = vmatprep.mubr.f32.mxu1 %v2166_v26  ;;  %v4722_v26 = vld [vmem:[%s7806_s5 + $0x920] sm:$0xff] }
 0x503   :  { %2402 = vmatmul.mubr.f32.gmra.mxu1 %v2164_v25  ;;  %v4723_v25 = vld [vmem:[%s7806_s5 + $0x928] sm:$0xff] }
 0x504   :  { %2878 = vmatprep.mubr.f32.mxu1 %v5372_v0 }
 0x522   :  { %v1995_v27 = vpop.f32.mrf.mxu0 }
 0x523   :  { %v1996_v28 = vadd.f32 %v1995_v27, %v1913_v13  ;;  %v4674_v13 = vld [vmem:[%s7806_s5 + $0x7a0] sm:$0xff]  ;;  %v4721_v27 = vld [vmem:[%s7806_s5 + $0x918] sm:$0xff] }
 0x524   :  { %v1997_v29 = vpop.f32.mrf.mxu0 }
 0x525   :  { %v6857_v30 = vadd.f32 %v2072_v2, %v1996_v28  ;;  %v1998_v31 = vadd.f32 %v1997_v29, %v1915_v15  ;;  %v4672_v15 = vld [vmem:[%s7806_s5 + $0x790] sm:$0xff]  ;;  %v4729_v2 = vld [vmem:[%s7806_s5 + $0x958] sm:$0xff]  ;;  %v4719_v29 = vld [vmem:[%s7806_s5 + $0x908] sm:$0xff] }
 0x526   :  { %v2001_v39 = vpop.f32.mrf.mxu0  ;;  %v4720_v28 = vld [vmem:[%s7806_s5 + $0x910] sm:$0xff] }
 0x527   :  { %v6859_v45 = vadd.f32 %v2074_v3, %v1998_v31  ;;  %v2002_v42 = vadd.f32 %v2001_v39, %v1919_v18  ;;  %v4733_v18 = vld [vmem:[%s7806_s5 + $0x978] sm:$0xff]  ;;  %v4728_v3 = vld [vmem:[%s7806_s5 + $0x950] sm:$0xff]  ;;  %v4718_v31 = vld [vmem:[%s7806_s5 + $0x900] sm:$0xff] }
 0x528   :  { %v2003_v32 = vpop.f32.mrf.mxu0  ;;  %v4717_v39 = vld [vmem:[%s7806_s5 + $0x8f8] sm:$0xff] }
 0x529   :  { %v6861_v33 = vadd.f32 %v2078_v4, %v2002_v42  ;;  %v2004_v34 = vadd.f32 %v2003_v32, %v1921_v59  ;;  %v4730_v59 = vld [vmem:[%s7806_s5 + $0x960] sm:$0xff]  ;;  %v4727_v4 = vld [vmem:[%s7806_s5 + $0x948] sm:$0xff]  ;;  %v4716_v42 = vld [vmem:[%s7806_s5 + $0x8f0] sm:$0xff] }
 0x52a   :  { %v5230_v35 = vpop.f32.mrf.mxu0  ;;  %v4715_v32 = vld [vmem:[%s7806_s5 + $0x8e8] sm:$0xff] }
 0x52b   :  { %v6863_v36 = vadd.f32 %v2080_v22, %v2004_v34  ;;  %v4726_v22 = vld [vmem:[%s7806_s5 + $0x940] sm:$0xff] }
 0x52c   :  { %v2235_v37 = vpop.f32.mrf.mxu0  ;;  %v4714_v34 = vld [vmem:[%s7806_s5 + $0x8e0] sm:$0xff] }
 0x52d   :  { %4659 = vmatmul.mubr.msk.f32.vlgmr.msra.gmra.mxu0 %vm283_vm2, %v2235_v37  ;;  %v4712_v37 = vld [vmem:[%s7806_s5 + $0x8d0] sm:$0xff] }
 0x52e   :  { %4664 = vmatpush1.msk.msra.mxu0 %vm1279_vm4, %v6012_v54  ;;  %2478 = vmatprep.mubr.f32.mxu0 %v5372_v0  ;;  %v4662_v54 = vld [vmem:[%s7804_s4 + $0x38] sm:$0x3f] }
 0x52f   :  { %2526 = vmatprep.subr.mxu0 %v6018_v63  ;;  %v4701_v63 = vld [vmem:[%s7806_s5 + $0x878] sm:$0xff] }
 0x530   :  { %2527 = vmatpush1.msra.mxu0 %v6023_v5  ;;  %v4698_v5 = vld [vmem:[%s7806_s5 + $0x860] sm:$0xff] }
 0x531   :  { %2528 = vmatprep.subr.mxu0 %v6028_v58  ;;  %4660 = vmatmul.mubr.msk.f32.gmra.mxu0 %vm283_vm2, %v5230_v35  ;;  %v4696_v58 = vld [vmem:[%s7806_s5 + $0x850] sm:$0xff]  ;;  %v4713_v35 = vld [vmem:[%s7806_s5 + $0x8d8] sm:$0xff] }
 0x532   :  { %2529 = vmatpush1.msra.mxu0 %v6035_v61  ;;  %2562 = vmatprep.mubr.f32.mxu0 %v5372_v0  ;;  %v4695_v61 = vld [vmem:[%s7806_s5 + $0x848] sm:$0xff] }
 0x533   :  { %5231 = vmatprep.subr.msk.mxu0 %vm1279_vm4, %v6004_v52 }
 0x535   :  { %4665 = vmatmul.mubr.msk.f32.vlgmr.msra.gmra.mxu0 %vm1272_vm3, %v4661_v40 }
 0x536   :  { %5232 = vmatpush3.msk.msra.mxu0 %vm1279_vm4, %v6004_v52  ;;  %2568 = vmatprep.mubr.f32.mxu0 %v5372_v0  ;;  %v4700_v52 = vld [vmem:[%s7806_s5 + $0x870] sm:$0xff] }
 0x537   :  { %5233 = vmatprep.subr.mxu0 %v6006_v57 }
 0x538   :  { %5234 = vmatpush3.msra.mxu0 %v6006_v57  ;;  %v4699_v57 = vld [vmem:[%s7806_s5 + $0x868] sm:$0xff] }
 0x539   :  { %5235 = vmatprep.subr.mxu0 %v6016_v55  ;;  %4666 = vmatmul.mubr.msk.f32.gmra.mxu0 %vm1272_vm3, %v4662_v54 }
 0x53a   :  { %5236 = vmatpush3.msra.mxu0 %v6016_v55  ;;  %5237 = vmatprep.mubr.msk.f32.mxu0 %vm1272_vm3, %v4661_v40  ;;  %v4697_v55 = vld [vmem:[%s7806_s5 + $0x858] sm:$0xff]  ;;  %v4711_v40 = vld [vmem:[%s7806_s5 + $0x8c8] sm:$0xff] }
 0x53b   :  { %2737 = vmatprep.subr.mxu0 %v4701_v63  ;;  %v4710_v63 = vld [vmem:[%s7806_s5 + $0x8c0] sm:$0xff] }
 0x53d   :  { %5238 = vmatmul.mubr.msk.f32.vlgmr.msra.gmra.mxu0 %vm1272_vm3, %v4662_v54  ;;  %v4749_v54 = vld [vmem:[%s7806_s5 + $0x9f8] sm:$0xff] }
 0x53e   :  { %2738 = vmatpush1.msra.mxu0 %v4700_v52  ;;  %2830 = vmatprep.subr.mxu1 %v4749_v54  ;;  %v4748_v52 = vld [vmem:[%s7806_s5 + $0x9f0] sm:$0xff] }
 0x53f   :  { %2739 = vmatprep.subr.mxu0 %v4699_v57  ;;  %v4709_v57 = vld [vmem:[%s7806_s5 + $0x8b8] sm:$0xff]  ;;  %2831 = vmatpush1.msra.mxu1 %v4748_v52 }
 0x540   :  { %2740 = vmatpush1.msra.mxu0 %v4698_v5  ;;  %v4747_v5 = vld [vmem:[%s7806_s5 + $0x9e8] sm:$0xff] }
 0x541   :  { %2741 = vmatprep.subr.mxu0 %v4697_v55  ;;  %v4708_v55 = vld [vmem:[%s7806_s5 + $0x8b0] sm:$0xff]  ;;  %2832 = vmatprep.subr.mxu1 %v4747_v5 }
 0x542   :  { %2742 = vmatpush1.msra.mxu0 %v4696_v58  ;;  %v4746_v58 = vld [vmem:[%s7806_s5 + $0x9e0] sm:$0xff] }
 0x543   :  { %2743 = vmatprep.subr.mxu0 %v4695_v61  ;;  %v4707_v61 = vld [vmem:[%s7806_s5 + $0x8a8] sm:$0xff]  ;;  %2833 = vmatpush1.msra.mxu1 %v4746_v58 }
 0x544   :  { %2744 = vmatpush1.msra.mxu0 %v4694_v41  ;;  %v4745_v41 = vld [vmem:[%s7806_s5 + $0x9d8] sm:$0xff] }
 0x545   :  { %2745 = vmatprep.subr.mxu0 %v4693_v43  ;;  %v4706_v43 = vld [vmem:[%s7806_s5 + $0x8a0] sm:$0xff]  ;;  %2834 = vmatprep.subr.mxu1 %v4745_v41 }
 0x546   :  { %2746 = vmatpush1.msra.mxu0 %v4692_v38  ;;  %v4744_v38 = vld [vmem:[%s7806_s5 + $0x9d0] sm:$0xff] }
 0x547   :  { %2747 = vmatprep.subr.mxu0 %v4691_v46  ;;  %v4705_v46 = vld [vmem:[%s7806_s5 + $0x898] sm:$0xff]  ;;  %2835 = vmatpush1.msra.mxu1 %v4744_v38 }
 0x548   :  { %2748 = vmatpush1.msra.mxu0 %v4690_v47  ;;  %v4743_v47 = vld [vmem:[%s7806_s5 + $0x9c8] sm:$0xff] }
 0x549   :  { %2749 = vmatprep.subr.mxu0 %v4689_v49  ;;  %v4704_v49 = vld [vmem:[%s7806_s5 + $0x890] sm:$0xff]  ;;  %2836 = vmatprep.subr.mxu1 %v4743_v47 }
 0x54a   :  { %2750 = vmatpush1.msra.mxu0 %v4688_v50  ;;  %v4742_v50 = vld [vmem:[%s7806_s5 + $0x9c0] sm:$0xff] }
 0x54b   :  { %2751 = vmatprep.subr.mxu0 %v4687_v48  ;;  %v4703_v48 = vld [vmem:[%s7806_s5 + $0x888] sm:$0xff]  ;;  %2837 = vmatpush1.msra.mxu1 %v4742_v50 }
 0x54c   :  { %2752 = vmatpush1.msra.mxu0 %v4686_v51  ;;  %v4741_v51 = vld [vmem:[%s7806_s5 + $0x9b8] sm:$0xff] }
 0x54d   :  { %2753 = vmatprep.subr.mxu0 %v4685_v44  ;;  %v4702_v44 = vld [vmem:[%s7806_s5 + $0x880] sm:$0xff]  ;;  %2838 = vmatprep.subr.mxu1 %v4741_v51 }
 0x54e   :  { %2754 = vmatpush1.msra.mxu0 %v4684_v53  ;;  %v4740_v53 = vld [vmem:[%s7806_s5 + $0x9b0] sm:$0xff] }
 0x54f   :  { %2755 = vmatprep.subr.mxu0 %v4683_v56  ;;  %v4739_v56 = vld [vmem:[%s7806_s5 + $0x9a8] sm:$0xff]  ;;  %2839 = vmatpush1.msra.mxu1 %v4740_v53 }
 0x550   :  { %2756 = vmatpush1.msra.mxu0 %v4682_v60  ;;  %2840 = vmatprep.subr.mxu1 %v4739_v56  ;;  %v4738_v60 = vld [vmem:[%s7806_s5 + $0x9a0] sm:$0xff] }
 0x551   :  { %2757 = vmatprep.subr.mxu0 %v4681_v7  ;;  %2841 = vmatpush1.msra.mxu1 %v4738_v60  ;;  %v4737_v7 = vld [vmem:[%s7806_s5 + $0x998] sm:$0xff] }
 0x552   :  { %2758 = vmatpush1.msra.mxu0 %v4680_v62  ;;  %2842 = vmatprep.subr.mxu1 %v4737_v7  ;;  %v4736_v62 = vld [vmem:[%s7806_s5 + $0x990] sm:$0xff] }
 0x553   :  { %2759 = vmatprep.subr.mxu0 %v4679_v6  ;;  %v4735_v6 = vld [vmem:[%s7806_s5 + $0x988] sm:$0xff]  ;;  %2843 = vmatpush1.msra.mxu1 %v4736_v62 }
 0x554   :  { %2760 = vmatpush1.msra.mxu0 %v4678_v8  ;;  %2844 = vmatprep.subr.mxu1 %v4735_v6  ;;  %v4734_v8 = vld [vmem:[%s7806_s5 + $0x980] sm:$0xff] }
 0x555   :  { %2761 = vmatprep.subr.mxu0 %v4677_v9  ;;  %2845 = vmatpush1.msra.mxu1 %v4734_v8 }
 0x556   :  { %2762 = vmatpush1.msra.mxu0 %v4676_v10 }
 0x557   :  { %2763 = vmatprep.subr.mxu0 %v4675_v11 }
 0x558   :  { %2764 = vmatpush1.msra.mxu0 %v4674_v13 }
 0x559   :  { %2765 = vmatprep.subr.mxu0 %v4673_v14 }
 0x55a   :  { %2766 = vmatpush1.msra.mxu0 %v4672_v15 }
 0x55b   :  { %2767 = vmatprep.subr.mxu0 %v4671_v16 }
 0x55c   :  { %2768 = vmatpush1.msra.mxu0 %v4670_v17 }
 0x55d   :  { %2769 = vmatprep.subr.mxu0 %v4733_v18 }
 0x55e   :  { %2770 = vmatpush2.msra.mxu0 %v4732_v1 }
 0x55f   :  { %2771 = vmatprep.subr.mxu0 %v4731_v21 }
 0x560   :  { %2772 = vmatpush2.msra.mxu0 %v4730_v59 }
 0x561   :  { %2773 = vmatprep.subr.mxu0 %v4729_v2 }
 0x562   :  { %2774 = vmatpush2.msra.mxu0 %v4728_v3 }
 0x563   :  { %2775 = vmatprep.subr.mxu0 %v4727_v4 }
 0x564   :  { %2776 = vmatpush2.msra.mxu0 %v4726_v22 }
 0x565   :  { %2777 = vmatprep.subr.mxu0 %v4725_v23 }
 0x566   :  { %2778 = vmatpush2.msra.mxu0 %v4724_v24 }
 0x567   :  { %2779 = vmatprep.subr.mxu0 %v4723_v25 }
 0x568   :  { %2780 = vmatpush2.msra.mxu0 %v4722_v26 }
 0x569   :  { %2781 = vmatprep.subr.mxu0 %v4721_v27 }
 0x56a   :  { %2782 = vmatpush2.msra.mxu0 %v4720_v28 }
 0x56b   :  { %2783 = vmatprep.subr.mxu0 %v4719_v29 }
 0x56c   :  { %2784 = vmatpush2.msra.mxu0 %v4718_v31 }
 0x56d   :  { %2785 = vmatprep.subr.mxu0 %v4717_v39 }
 0x56e   :  { %2786 = vmatpush2.msra.mxu0 %v4716_v42 }
 0x56f   :  { %2787 = vmatprep.subr.mxu0 %v4715_v32 }
 0x570   :  { %2788 = vmatpush2.msra.mxu0 %v4714_v34 }
 0x571   :  { %2789 = vmatprep.subr.mxu0 %v4713_v35 }
 0x572   :  { %2790 = vmatpush2.msra.mxu0 %v4712_v37 }
 0x573   :  { %2791 = vmatprep.subr.mxu0 %v4711_v40 }
 0x574   :  { %2792 = vmatpush2.msra.mxu0 %v4710_v63 }
 0x575   :  { %2793 = vmatprep.subr.mxu0 %v4709_v57 }
 0x576   :  { %2794 = vmatpush2.msra.mxu0 %v4708_v55 }
 0x577   :  { %2795 = vmatprep.subr.mxu0 %v4707_v61 }
 0x578   :  { %2796 = vmatpush2.msra.mxu0 %v4706_v43 }
 0x579   :  { %2797 = vmatprep.subr.mxu0 %v4705_v46 }
 0x57a   :  { %2798 = vmatpush2.msra.mxu0 %v4704_v49 }
 0x57b   :  { %2799 = vmatprep.subr.mxu0 %v4703_v48 }
 0x57c   :  { %2800 = vmatpush2.msra.mxu0 %v4702_v44 }
 0x57d   :  { %3269 = vmatprep.subr.mxu0 %v5372_v0 }
 0x5bf   :  { %v2397_v9 = vpop.f32.mrf.mxu1 }
 0x5c1   :  { %v2399_v10 = vpop.f32.mrf.mxu1 }
 0x5c3   :  { %v2403_v13 = vpop.f32.mrf.mxu1 }
 0x5c5   :  { %v2405_v1 = vpop.f32.mrf.mxu1 }
 0x5ed   :  { %v2474_v11 = vpop.f32.mrf.mxu0 }
 0x5ee   :  { %v2475_v14 = vadd.f32 %v2474_v11, %v2397_v9 }
 0x5ef   :  { %v2476_v15 = vpop.f32.mrf.mxu0 }
 0x5f0   :  { %v2485_v16 = vadd.f32 %v2475_v14, %v6857_v30  ;;  %v2477_v17 = vadd.f32 %v2476_v15, %v2399_v10 }
 0x5f1   :  { %v2480_v18 = vpop.f32.mrf.mxu0 }
 0x5f2   :  { %v2486_v21 = vadd.f32 %v2477_v17, %v6859_v45  ;;  %v2481_v59 = vadd.f32 %v2480_v18, %v2403_v13 }
 0x5f3   :  { %v2482_v2 = vpop.f32.mrf.mxu0 }
 0x5f4   :  { %v2487_v3 = vadd.f32 %v2481_v59, %v6861_v33  ;;  %v2483_v4 = vadd.f32 %v2482_v2, %v2405_v1  ;;  %v3090_v59 = vld [vmem:[%s7808_s8 + $0x70] sm:$0xff]  ;;  %v3089_v2 = vld [vmem:[%s7808_s8 + $0x68] sm:$0xff] }
 0x5f5   :  { %v2564_v22 = vpop.f32.mrf.mxu0 }
 0x5f6   :  { %v2488_v23 = vadd.f32 %v2483_v4, %v6863_v36  ;;  %v2895_v36 = vld [vmem:[%s7807_s6] sm:$0x3]  ;;  %s5374_s6 = smov 96   ;;  %v3087_v4 = vld [vmem:[%s7808_s8 + $0x58] sm:$0xff] }
 0x5f7   :  { %v2566_v24 = vpop.f32.mrf.mxu0  ;;  %v2900_v31 = vrot.slane %v2895_v36, %v1230_v19  ;;  %v2904_v35 = vrot.slane %v2895_v36, %v1234_v20  ;;  %v3077_v36 = vld [vmem:[%s7808_s8 + $0x8] sm:$0xff] }
 0x5f8   :  { %2801 = vmatprep.mubr.f32.mxu0 %v2566_v24  ;;  %v3084_v24 = vld [vmem:[%s7808_s8 + $0x40] sm:$0xff] }
 0x5f9   :  { %v2570_v25 = vpop.f32.mrf.mxu0  ;;  %2802 = vmatmul.mubr.f32.vlgmr.msra.gmra.mxu0 %v2564_v22  ;;  %v3086_v22 = vld [vmem:[%s7808_s8 + $0x50] sm:$0xff] }
 0x5fb   :  { %v2572_v26 = vpop.f32.mrf.mxu0 }
 0x5fc   :  { %2807 = vmatprep.mubr.f32.mxu0 %v2572_v26  ;;  %v3082_v26 = vld [vmem:[%s7808_s8 + $0x30] sm:$0xff] }
 0x5fd   :  { %v5239_v30 = vpop.f32.mrf.mxu0  ;;  %2808 = vmatmul.mubr.f32.gmra.mxu0 %v2570_v25  ;;  %v3083_v25 = vld [vmem:[%s7808_s8 + $0x38] sm:$0xff] }
 0x5ff   :  { %v2641_v27 = vpop.f32.mrf.mxu0 }
 0x600   :  { %4750 = vmatmul.mubr.msk.f32.vlgmr.msra.gmra.mxu1 %vm283_vm2, %v2641_v27  ;;  %v3080_v27 = vld [vmem:[%s7808_s8 + $0x20] sm:$0xff] }
 0x601   :  { %2884 = vmatprep.mubr.f32.mxu1 %v5372_v0 }
 0x604   :  { %4751 = vmatmul.mubr.msk.f32.gmra.mxu1 %vm283_vm2, %v5239_v30  ;;  %v3081_v30 = vld [vmem:[%s7808_s8 + $0x28] sm:$0xff] }
 0x605   :  { %3069 = vmatprep.mubr.f32.mxu1 %v5372_v0 }
 0x6b9   :  { %v2803_v45 = vpop.f32.mrf.mxu0 }
 0x6bb   :  { %v2805_v33 = vpop.f32.mrf.mxu0 }
 0x6bd   :  { %v2809_v39 = vpop.f32.mrf.mxu0 }
 0x6bf   :  { %v2811_v52 = vpop.f32.mrf.mxu0 }
 0x6c0   :  { %v2880_v28 = vpop.f32.mrf.mxu1 }
 0x6c1   :  { %v2881_v29 = vadd.f32 %v2880_v28, %v2803_v45  ;;  %v3079_v45 = vld [vmem:[%s7808_s8 + $0x18] sm:$0xff]  ;;  %v3076_v28 = vld [vmem:[%s7808_s8] sm:$0xff] }
 0x6c2   :  { %v2882_v42 = vpop.f32.mrf.mxu1 }
 0x6c3   :  { %v2891_v32 = vadd.f32 %v2881_v29, %v2485_v16  ;;  %v2883_v34 = vadd.f32 %v2882_v42, %v2805_v33  ;;  %v3078_v33 = vld [vmem:[%s7808_s8 + $0x10] sm:$0xff]  ;;  %v3095_v29 = vld [vmem:[%s7808_s8 + $0x98] sm:$0xff] }
 0x6c4   :  { %v2886_v37 = vpop.f32.mrf.mxu1 }
 0x6c5   :  { %v2907_v40 = vadd.f32 %v2900_v31, %v2891_v32  ;;  %v2892_v54 = vadd.f32 %v2883_v34, %v2486_v21  ;;  %v2887_v63 = vadd.f32 %v2886_v37, %v2809_v39  ;;  %v3091_v21 = vld [vmem:[%s7808_s8 + $0x78] sm:$0xff] }
 0x6c6   :  { %v2888_v57 = vpop.f32.mrf.mxu1  ;;  %3270 = vmatpush1.msra.mxu0 %v3091_v21 }
 0x6c7   :  { %v2911_v5 = vmul.f32 0.01, %v2907_v40  ;;  %v2908_v55 = vadd.f32 %v2904_v35, %v2892_v54  ;;  %v2893_v58 = vadd.f32 %v2887_v63, %v2487_v3  ;;  %v2889_v61 = vadd.f32 %v2888_v57, %v2811_v52  ;;  %3271 = vmatprep.subr.mxu0 %v5372_v0  ;;  %v3088_v3 = vld [vmem:[%s7808_s8 + $0x60] sm:$0xff] }
 0x6c8   :  { %3272 = vmatpush1.msra.mxu0 %v3090_v59 }
 0x6c9   :  { %v2912_v41 = vmul.f32 0.01, %v2908_v55  ;;  %v2909_v43 = vadd.f32 %v2900_v31, %v2893_v58  ;;  %v2894_v19 = vadd.f32 %v2889_v61, %v2488_v23  ;;  %v2915_v38 = vmax.f32 %v2907_v40, %v2911_v5  ;;  %3273 = vmatprep.subr.mxu0 %v5372_v0  ;;  %v3085_v23 = vld [vmem:[%s7808_s8 + $0x48] sm:$0xff]  ;;  %v3094_v31 = vld [vmem:[%s7808_s8 + $0x90] sm:$0xff] }
 0x6ca   :  { %3274 = vmatpush1.msra.mxu0 %v3089_v2 }
 0x6cb   :  { %v2913_v46 = vmul.f32 0.01, %v2909_v43  ;;  %v2910_v47 = vadd.f32 %v2904_v35, %v2894_v19  ;;  %v2916_v49 = vmax.f32 %v2908_v55, %v2912_v41  ;;  %v2924_v20 = vrot.slane %v2915_v38, 1  ;;  %3275 = vmatprep.subr.mxu0 %v5372_v0 }
 0x6cc   :  { %v2939_v53 = vrot.slane %v2915_v38, 2  ;;  %3276 = vmatpush1.msra.mxu0 %v3088_v3  ;;  %v4781_v3 = vld [vmem:[%s7809_s7 + $0x10] sm:$0x3f] }
 0x6cd   :  { %v2917_v50 = vmax.f32 %v2909_v43, %v2913_v46  ;;  %v2914_v12 = vmul.f32 0.01, %v2910_v47  ;;  %v2927_v56 = vrot.slane %v2916_v49, 1  ;;  %v2942_v10 = vrot.slane %v2916_v49, 2  ;;  %3277 = vmatprep.subr.mxu0 %v5372_v0 }
 0x6ce   :  { %3278 = vmatpush1.msra.mxu0 %v3087_v4  ;;  %v4800_v4 = vld [vmem:[%s7808_s8 + $0x1b8] sm:$0xff] }
 0x6cf   :  { %v2918_v48 = vmax.f32 %v2910_v47, %v2914_v12  ;;  %v2925_v51 = vrot.slane %v2917_v50, 1  ;;  %v2940_v44 = vrot.slane %v2917_v50, 2  ;;  %3279 = vmatprep.subr.mxu0 %v5372_v0  ;;  %v2994_v47 = vld [vmem:[%s7809_s7] sm:$0x3f]  ;;  %v4773_v12 = vld [vmem:[%s7808_s8 + $0x110] sm:$0xff] }
 0x6d0   :  { %3280 = vmatpush1.msra.mxu0 %v3086_v22  ;;  %v4799_v22 = vld [vmem:[%s7808_s8 + $0x1b0] sm:$0xff] }
 0x6d1   :  { %v2936_v60 = vmax.f32 %v2917_v50, %v2925_v51  ;;  %v2926_v7 = vsel %vm2923_vm5, %v2924_v20, %v2925_v51  ;;  %v2941_v62 = vsel %vm2938_vm6, %v2939_v53, %v2940_v44  ;;  %v2928_v6 = vrot.slane %v2918_v48, 1  ;;  %3281 = vmatprep.subr.mxu0 %v5372_v0  ;;  %v4774_v50 = vld [vmem:[%s7808_s8 + $0x118] sm:$0xff]  ;;  %v4772_v20 = vld [vmem:[%s7808_s8 + $0x108] sm:$0xff] }
 0x6d2   :  { %v2934_v8 = vmax.f32 %v2915_v38, %v2926_v7  ;;  %v2943_v9 = vrot.slane %v2918_v48, 2  ;;  %3282 = vmatpush1.msra.mxu0 %v3085_v23  ;;  %v4770_v51 = vld [vmem:[%s7808_s8 + $0xf8] sm:$0xff]  ;;  %v4768_v53 = vld [vmem:[%s7808_s8 + $0xe8] sm:$0xff]  ;;  %v4765_v7 = vld [vmem:[%s7808_s8 + $0xd0] sm:$0xff] }
 0x6d3   :  { %v7151_v11 = vmax.f32 %v2936_v60, %v2940_v44  ;;  %v2929_v13 = vsel %vm2923_vm5, %v2927_v56, %v2928_v6  ;;  %v2937_v15 = vmax.f32 %v2918_v48, %v2928_v6  ;;  %3283 = vmatprep.subr.mxu0 %v5372_v0  ;;  %v4771_v48 = vld [vmem:[%s7808_s8 + $0x100] sm:$0xff]  ;;  %v4769_v44 = vld [vmem:[%s7808_s8 + $0xf0] sm:$0xff]  ;;  %v4766_v60 = vld [vmem:[%s7808_s8 + $0xd8] sm:$0xff] }
 0x6d4   :  { %v7153_v14 = vmax.f32 %v2934_v8, %v2941_v62  ;;  %v2935_v16 = vmax.f32 %v2916_v49, %v2929_v13  ;;  %v2944_v17 = vsel %vm2938_vm6, %v2942_v10, %v2943_v9  ;;  %3284 = vmatpush1.msra.mxu0 %v3084_v24  ;;  %v4755_v49 = vld [vmem:[%s7809_s7 + $0x8] sm:$0x3f]  ;;  %v4767_v56 = vld [vmem:[%s7808_s8 + $0xe0] sm:$0xff]  ;;  %v4762_v8 = vld [vmem:[%s7808_s8 + $0xb8] sm:$0xff] }
 0x6d5   :  { %2961 = vrot.lane.b32.xlu0 %v7151_v11, %s5374_s6  ;;  %v7160_v1 = vmax.f32 %v2937_v15, %v2943_v9  ;;  %3285 = vmatprep.subr.mxu0 %v5372_v0  ;;  %v4764_v62 = vld [vmem:[%s7808_s8 + $0xc8] sm:$0xff]  ;;  %v4763_v6 = vld [vmem:[%s7808_s8 + $0xc0] sm:$0xff]  ;;  %v4761_v9 = vld [vmem:[%s7808_s8 + $0xb0] sm:$0xff] }
 0x6d6   :  { %2957 = vrot.lane.b32.xlu1 %v7153_v14, %s5374_s6  ;;  %v7158_v18 = vmax.f32 %v2935_v16, %v2944_v17  ;;  %3286 = vmatpush1.msra.mxu0 %v3083_v25  ;;  %v4760_v10 = vld [vmem:[%s7808_s8 + $0xa8] sm:$0xff]  ;;  %v4778_v13 = vld [vmem:[%s7808_s8 + $0x138] sm:$0xff]  ;;  %v4775_v16 = vld [vmem:[%s7808_s8 + $0x120] sm:$0xff] }
 0x6d7   :  { %3287 = vmatprep.subr.mxu0 %v5372_v0  ;;  %v4776_v15 = vld [vmem:[%s7808_s8 + $0x128] sm:$0xff]  ;;  %v4797_v24 = vld [vmem:[%s7808_s8 + $0x1a0] sm:$0xff]  ;;  %v4796_v25 = vld [vmem:[%s7808_s8 + $0x198] sm:$0xff] }
 0x6d8   :  { %3288 = vmatpush1.msra.mxu0 %v3082_v26  ;;  %v3093_v17 = vld [vmem:[%s7808_s8 + $0x88] sm:$0xff]  ;;  %v4795_v26 = vld [vmem:[%s7808_s8 + $0x190] sm:$0xff] }
 0x6d9   :  { %2980 = vrot.lane.b32.xlu0 %v7151_v11, %s5375_s2  ;;  %3289 = vmatprep.subr.mxu0 %v5372_v0  ;;  %v4798_v23 = vld [vmem:[%s7808_s8 + $0x1a8] sm:$0xff] }
 0x6da   :  { %2982 = vrot.lane.b32.xlu1 %v7160_v1, %s5375_s2  ;;  %3290 = vmatpush1.msra.mxu0 %v3081_v30  ;;  %v4794_v30 = vld [vmem:[%s7808_s8 + $0x188] sm:$0xff] }
 0x6db   :  { %3291 = vmatprep.subr.mxu0 %v5372_v0 }
 0x6dc   :  { %3292 = vmatpush1.msra.mxu0 %v3080_v27  ;;  %v4793_v27 = vld [vmem:[%s7808_s8 + $0x180] sm:$0xff] }
 0x6dd   :  { %2963 = vrot.lane.b32.xlu0 %v7160_v1, %s5374_s6  ;;  %3293 = vmatprep.subr.mxu0 %v5372_v0 }
 0x6de   :  { %2959 = vrot.lane.b32.xlu1 %v7158_v18, %s5374_s6  ;;  %3294 = vmatpush1.msra.mxu0 %v3079_v45  ;;  %v4792_v45 = vld [vmem:[%s7808_s8 + $0x178] sm:$0xff] }
 0x6df   :  { %3295 = vmatprep.subr.mxu0 %v5372_v0 }
 0x6e0   :  { %3296 = vmatpush1.msra.mxu0 %v3078_v33  ;;  %v4791_v33 = vld [vmem:[%s7808_s8 + $0x170] sm:$0xff] }
 0x6e1   :  { %2976 = vrot.lane.b32.xlu0 %v7153_v14, %s5375_s2  ;;  %3297 = vmatprep.subr.mxu0 %v5372_v0 }
 0x6e2   :  { %2978 = vrot.lane.b32.xlu1 %v7158_v18, %s5375_s2  ;;  %3298 = vmatpush1.msra.mxu0 %v3077_v36  ;;  %v4790_v36 = vld [vmem:[%s7808_s8 + $0x168] sm:$0xff] }
 0x6e3   :  { %3299 = vmatprep.subr.mxu0 %v5372_v0 }
 0x6e4   :  { %3300 = vmatpush1.msra.mxu0 %v3076_v28  ;;  %v4789_v28 = vld [vmem:[%s7808_s8 + $0x160] sm:$0xff] }
 0x6e5   :  { %3325 = vmatprep.subr.mxu0 %v5372_v0 }
 0x6e6   :  { %3326 = vmatpush2.msra.mxu0 %v3095_v29  ;;  %v4788_v29 = vld [vmem:[%s7808_s8 + $0x158] sm:$0xff] }
 0x6e7   :  { %3327 = vmatprep.subr.mxu0 %v5372_v0 }
 0x6e8   :  { %3328 = vmatpush2.msra.mxu0 %v3094_v31  ;;  %v4787_v31 = vld [vmem:[%s7808_s8 + $0x150] sm:$0xff] }
 0x6e9   :  { %3329 = vmatprep.subr.mxu0 %v5372_v0 }
 0x6ea   :  { %3330 = vmatpush2.msra.mxu0 %v3093_v17  ;;  %v4845_v17 = vld [vmem:[%s7810_s11 + $0xa0] sm:$0xff] }
 0x6eb   :  { %3331 = vmatprep.subr.mxu0 %v5372_v0 }
 0x747   :  { %v2962_v39 = vpop.permute.xlu0 %2961 }
 0x748   :  { %v2958_v42 = vpop.permute.xlu1 %2957 }
 0x74b   :  { %v2981_v32 = vpop.permute.xlu0 %2980 }
 0x74c   :  { %v2983_v34 = vpop.permute.xlu1 %2982 }
 0x74d   :  { %v2985_v57 = vsel %vm283_vm2, %v2981_v32, %v2983_v34  ;;  %v4804_v32 = vld [vmem:[%s7808_s8 + $0x1d8] sm:$0xff] }
 0x74f   :  { %v2964_v35 = vpop.permute.xlu0 %2963 }
 0x750   :  { %v2967_v37 = vsel %vm2965_vm7, %v2962_v39, %v2964_v35  ;;  %v2975_v40 = vmax.f32 %v7160_v1, %v2964_v35  ;;  %v2960_v54 = vpop.permute.xlu1 %2959  ;;  %v4786_v39 = vld [vmem:[%s7808_s8 + $0x148] sm:$0xff] }
 0x751   :  { %v2974_v63 = vmax.f32 %v7151_v11, %v2967_v37  ;;  %v2966_v52 = vsel %vm2965_vm7, %v2958_v42, %v2960_v54  ;;  %v2973_v58 = vmax.f32 %v7158_v18, %v2960_v54  ;;  %v4759_v11 = vld [vmem:[%s7808_s8 + $0xa0] sm:$0xff]  ;;  %v4802_v35 = vld [vmem:[%s7808_s8 + $0x1c8] sm:$0xff]  ;;  %v4824_v54 = vld [vmem:[%s7808_s8 + $0x250] sm:$0xff] }
 0x752   :  { %v7245_v5 = vmax.f32 %v2975_v40, %v2983_v34  ;;  %v2972_v41 = vmax.f32 %v7153_v14, %v2966_v52  ;;  %v4777_v14 = vld [vmem:[%s7808_s8 + $0x130] sm:$0xff]  ;;  %v3092_v18 = vld [vmem:[%s7808_s8 + $0x80] sm:$0xff]  ;;  %v4825_v40 = vld [vmem:[%s7808_s8 + $0x258] sm:$0xff] }
 0x753   :  { %v7247_v55 = vmax.f32 %v2974_v63, %v2985_v57  ;;  %v2977_v61 = vpop.permute.xlu0 %2976  ;;  %3332 = vmatpush2.msra.mxu0 %v3092_v18  ;;  %v4785_v42 = vld [vmem:[%s7808_s8 + $0x140] sm:$0xff]  ;;  %v4803_v34 = vld [vmem:[%s7808_s8 + $0x1d0] sm:$0xff]  ;;  %v4823_v63 = vld [vmem:[%s7808_s8 + $0x248] sm:$0xff] }
 0x754   :  { %4752 = vmatprep.subr.msk.mxu1 %vm1279_vm4, %v7245_v5  ;;  %v2979_v43 = vpop.permute.xlu1 %2978  ;;  %3610 = vmatprep.subr.mxu0 %v5372_v0  ;;  %v4801_v37 = vld [vmem:[%s7808_s8 + $0x1c0] sm:$0xff]  ;;  %v4821_v57 = vld [vmem:[%s7808_s8 + $0x238] sm:$0xff] }
 0x755   :  { %v2984_v19 = vsel %vm283_vm2, %v2977_v61, %v2979_v43  ;;  %v7254_v38 = vmax.f32 %v2973_v58, %v2979_v43  ;;  %4753 = vmatpush1.msk.msra.mxu1 %vm1279_vm4, %v7247_v55  ;;  %v4822_v52 = vld [vmem:[%s7808_s8 + $0x240] sm:$0xff]  ;;  %v4819_v58 = vld [vmem:[%s7808_s8 + $0x228] sm:$0xff]  ;;  %v4816_v43 = vld [vmem:[%s7808_s8 + $0x210] sm:$0xff] }
 0x756   :  { %v7258_v46 = vmax.f32 %v2972_v41, %v2984_v19  ;;  %v4818_v61 = vld [vmem:[%s7808_s8 + $0x220] sm:$0xff]  ;;  %v4817_v41 = vld [vmem:[%s7808_s8 + $0x218] sm:$0xff]  ;;  %v4815_v19 = vld [vmem:[%s7808_s8 + $0x208] sm:$0xff] }
 0x757   :  { %3035 = vmatprep.subr.mxu1 %v7254_v38  ;;  %v4844_v18 = vld [vmem:[%s7810_s11 + $0x98] sm:$0xff] }
 0x758   :  { %3036 = vmatpush1.msra.mxu1 %v7258_v46 }
 0x759   :  { %4754 = vmatmul.mubr.msk.f32.vlgmr.msra.gmra.mxu1 %vm2995_vm8, %v2994_v47  ;;  %4756 = vmatprep.subr.msk.mxu1 %vm1279_vm4, %v7245_v5  ;;  %v4814_v47 = vld [vmem:[%s7808_s8 + $0x200] sm:$0xff] }
 0x75a   :  { %4757 = vmatpush1.msk.msra.mxu1 %vm1279_vm4, %v7247_v55  ;;  %3165 = vmatprep.mubr.f32.mxu1 %v5372_v0 }
 0x75b   :  { %3131 = vmatprep.subr.mxu1 %v7254_v38 }
 0x75c   :  { %3132 = vmatpush1.msra.mxu1 %v7258_v46 }
 0x75d   :  { %4758 = vmatmul.mubr.msk.f32.vlgmr.msra.gmra.mxu1 %vm2995_vm8, %v4755_v49  ;;  %3196 = vmatprep.subr.mxu1 %v5372_v0  ;;  %v4813_v49 = vld [vmem:[%s7808_s8 + $0x1f8] sm:$0xff] }
 0x75e   :  { %3197 = vmatpush1.msra.mxu1 %v4774_v50  ;;  %v4812_v50 = vld [vmem:[%s7808_s8 + $0x1f0] sm:$0xff] }
 0x75f   :  { %3198 = vmatprep.subr.mxu1 %v5372_v0 }
 0x760   :  { %3199 = vmatpush1.msra.mxu1 %v4773_v12  ;;  %v4811_v12 = vld [vmem:[%s7808_s8 + $0x1e8] sm:$0xff] }
 0x761   :  { %3200 = vmatprep.subr.mxu1 %v5372_v0 }
 0x762   :  { %3201 = vmatpush1.msra.mxu1 %v4772_v20  ;;  %v4810_v20 = vld [vmem:[%s7808_s8 + $0x1e0] sm:$0xff] }
 0x763   :  { %3202 = vmatprep.subr.mxu1 %v5372_v0 }
 0x764   :  { %3203 = vmatpush1.msra.mxu1 %v4771_v48 }
 0x765   :  { %3204 = vmatprep.subr.mxu1 %v5372_v0 }
 0x766   :  { %3205 = vmatpush1.msra.mxu1 %v4770_v51 }
 0x767   :  { %3206 = vmatprep.subr.mxu1 %v5372_v0 }
 0x768   :  { %3207 = vmatpush1.msra.mxu1 %v4769_v44 }
 0x769   :  { %3208 = vmatprep.subr.mxu1 %v5372_v0 }
 0x76a   :  { %3209 = vmatpush1.msra.mxu1 %v4768_v53 }
 0x76b   :  { %3210 = vmatprep.subr.mxu1 %v5372_v0 }
 0x76c   :  { %3211 = vmatpush1.msra.mxu1 %v4767_v56 }
 0x76d   :  { %3212 = vmatprep.subr.mxu1 %v5372_v0 }
 0x76e   :  { %3213 = vmatpush1.msra.mxu1 %v4766_v60 }
 0x76f   :  { %3214 = vmatprep.subr.mxu1 %v5372_v0 }
 0x770   :  { %3215 = vmatpush1.msra.mxu1 %v4765_v7 }
 0x771   :  { %3216 = vmatprep.subr.mxu1 %v5372_v0 }
 0x772   :  { %3217 = vmatpush1.msra.mxu1 %v4764_v62  ;;  %v4806_v62 = vld [vmem:[%s7809_s7 + $0x18] sm:$0x3f] }
 0x773   :  { %3218 = vmatprep.subr.mxu1 %v5372_v0 }
 0x774   :  { %3219 = vmatpush1.msra.mxu1 %v4763_v6  ;;  %v4828_v6 = vld [vmem:[%s7808_s8 + $0x270] sm:$0xff] }
 0x775   :  { %3220 = vmatprep.subr.mxu1 %v5372_v0 }
 0x776   :  { %3221 = vmatpush1.msra.mxu1 %v4762_v8 }
 0x777   :  { %3222 = vmatprep.subr.mxu1 %v5372_v0 }
 0x778   :  { %3223 = vmatpush1.msra.mxu1 %v4761_v9 }
 0x779   :  { %3224 = vmatprep.subr.mxu1 %v5372_v0 }
 0x77a   :  { %3225 = vmatpush1.msra.mxu1 %v4760_v10 }
 0x77b   :  { %3226 = vmatprep.subr.mxu1 %v5372_v0 }
 0x77c   :  { %3227 = vmatpush1.msra.mxu1 %v4759_v11 }
 0x77d   :  { %3252 = vmatprep.subr.mxu1 %v5372_v0 }
 0x77e   :  { %3253 = vmatpush2.msra.mxu1 %v4778_v13 }
 0x77f   :  { %3254 = vmatprep.subr.mxu1 %v5372_v0 }
 0x780   :  { %3255 = vmatpush2.msra.mxu1 %v4777_v14  ;;  %v4848_v14 = vld [vmem:[%s7810_s11 + $0xb8] sm:$0xff] }
 0x781   :  { %3256 = vmatprep.subr.mxu1 %v5372_v0 }
 0x782   :  { %3257 = vmatpush2.msra.mxu1 %v4776_v15  ;;  %v4847_v15 = vld [vmem:[%s7810_s11 + $0xb0] sm:$0xff] }
 0x783   :  { %3258 = vmatprep.subr.mxu1 %v5372_v0 }
 0x784   :  { %3259 = vmatpush2.msra.mxu1 %v4775_v16  ;;  %v4846_v16 = vld [vmem:[%s7810_s11 + $0xa8] sm:$0xff] }
 0x785   :  { %4782 = vmatprep.subr.msk.mxu1 %vm1279_vm4, %v7245_v5 }
 0x819   :  { %v3071_v1 = vpop.f32.mrf.mxu1 }
 0x81b   :  { %v3073_v21 = vpop.f32.mrf.mxu1 }
 0x81c   :  { %4780 = vmatprep.mubr.msk.f32.mxu0 %vm51_vm1, %v3073_v21  ;;  %v4842_v21 = vld [vmem:[%s7810_s11 + $0x88] sm:$0xff] }
 0x81d   :  { %v3167_v59 = vpop.f32.mrf.mxu1  ;;  %3334 = vmatmul.mubr.f32.vlgmr.msra.gmra.mxu0 %v3071_v1  ;;  %v4843_v1 = vld [vmem:[%s7810_s11 + $0x90] sm:$0xff] }
 0x81e   :  { %3611 = vmatpush1.msra.mxu0 %v4825_v40  ;;  %v4838_v40 = vld [vmem:[%s7810_s11 + $0x68] sm:$0xff] }
 0x81f   :  { %v3169_v2 = vpop.f32.mrf.mxu1  ;;  %3612 = vmatprep.subr.mxu0 %v5372_v0 }
 0x820   :  { %4779 = vmatprep.mubr.msk.f32.mxu1 %vm51_vm1, %v3169_v2  ;;  %3613 = vmatpush1.msra.mxu0 %v4824_v54  ;;  %v4840_v2 = vld [vmem:[%s7810_s11 + $0x78] sm:$0xff]  ;;  %v3769_v54 = vld [vmem:[%s7810_s11] sm:$0xff] }
 0x821   :  { %3261 = vmatmul.mubr.f32.vlgmr.msra.gmra.mxu1 %v3167_v59  ;;  %3614 = vmatprep.subr.mxu0 %v5372_v0  ;;  %v4841_v59 = vld [vmem:[%s7810_s11 + $0x80] sm:$0xff] }
 0x822   :  { %4783 = vmatpush1.msk.msra.mxu1 %vm1279_vm4, %v7247_v55  ;;  %3408 = vmatprep.mubr.f32.mxu1 %v5372_v0 }
 0x823   :  { %3374 = vmatprep.subr.mxu1 %v7254_v38  ;;  %3615 = vmatpush1.msra.mxu0 %v4823_v63  ;;  %v4837_v63 = vld [vmem:[%s7810_s11 + $0x60] sm:$0xff] }
 0x824   :  { %3375 = vmatpush1.msra.mxu1 %v7258_v46  ;;  %3616 = vmatprep.subr.mxu0 %v5372_v0 }
 0x825   :  { %3439 = vmatprep.subr.mxu1 %v5372_v0  ;;  %4784 = vmatmul.mubr.msk.f32.vlgmr.msra.gmra.mxu1 %vm2995_vm8, %v4781_v3  ;;  %v4839_v3 = vld [vmem:[%s7810_s11 + $0x70] sm:$0xff] }
 0x826   :  { %3440 = vmatpush1.msra.mxu1 %v4800_v4  ;;  %3617 = vmatpush1.msra.mxu0 %v4822_v52  ;;  %v4865_v52 = vld [vmem:[%s7810_s11 + $0x118] sm:$0xff] }
 0x827   :  { %3441 = vmatprep.subr.mxu1 %v5372_v0  ;;  %3618 = vmatprep.subr.mxu0 %v5372_v0 }
 0x828   :  { %3442 = vmatpush1.msra.mxu1 %v4799_v22  ;;  %3619 = vmatpush1.msra.mxu0 %v4821_v57  ;;  %v4831_v22 = vld [vmem:[%s7811_s9] ss:$0 sm:$0xff] }
 0x829   :  { %3443 = vmatprep.subr.mxu1 %v5372_v0  ;;  %3620 = vmatprep.subr.mxu0 %v5372_v0 }
 0x82a   :  { %3444 = vmatpush1.msra.mxu1 %v4798_v23 }
 0x82b   :  { %3445 = vmatprep.subr.mxu1 %v5372_v0 }
 0x82c   :  { %3446 = vmatpush1.msra.mxu1 %v4797_v24 }
 0x82d   :  { %3447 = vmatprep.subr.mxu1 %v5372_v0 }
 0x82e   :  { %3448 = vmatpush1.msra.mxu1 %v4796_v25 }
 0x82f   :  { %3449 = vmatprep.subr.mxu1 %v5372_v0 }
 0x830   :  { %3450 = vmatpush1.msra.mxu1 %v4795_v26 }
 0x831   :  { %3451 = vmatprep.subr.mxu1 %v5372_v0 }
 0x832   :  { %3452 = vmatpush1.msra.mxu1 %v4794_v30 }
 0x833   :  { %3453 = vmatprep.subr.mxu1 %v5372_v0 }
 0x834   :  { %3454 = vmatpush1.msra.mxu1 %v4793_v27  ;;  %v3691_v27 = vld [vmem:[%s7812_s10] sm:$0xf] }
 0x835   :  { %3455 = vmatprep.subr.mxu1 %v5372_v0 }
 0x836   :  { %3456 = vmatpush1.msra.mxu1 %v4792_v45  ;;  %v4834_v45 = vld [vmem:[%s7812_s10 + $0x4] sm:$0xf] }
 0x837   :  { %3457 = vmatprep.subr.mxu1 %v5372_v0 }
 0x838   :  { %3458 = vmatpush1.msra.mxu1 %v4791_v33  ;;  %v3780_v33 = vld [vmem:[%s7810_s11 + $0x58] sm:$0xff] }
 0x839   :  { %3459 = vmatprep.subr.mxu1 %v5372_v0 }
 0x83a   :  { %3460 = vmatpush1.msra.mxu1 %v4790_v36  ;;  %v3779_v36 = vld [vmem:[%s7810_s11 + $0x50] sm:$0xff] }
 0x83b   :  { %3461 = vmatprep.subr.mxu1 %v5372_v0 }
 0x83c   :  { %3462 = vmatpush1.msra.mxu1 %v4789_v28  ;;  %v3778_v28 = vld [vmem:[%s7810_s11 + $0x48] sm:$0xff] }
 0x83d   :  { %3463 = vmatprep.subr.mxu1 %v5372_v0 }
 0x83e   :  { %3464 = vmatpush1.msra.mxu1 %v4788_v29  ;;  %v3777_v29 = vld [vmem:[%s7810_s11 + $0x40] sm:$0xff] }
 0x83f   :  { %3465 = vmatprep.subr.mxu1 %v5372_v0 }
 0x840   :  { %3466 = vmatpush1.msra.mxu1 %v4787_v31  ;;  %v3776_v31 = vld [vmem:[%s7810_s11 + $0x38] sm:$0xff] }
 0x841   :  { %3467 = vmatprep.subr.mxu1 %v5372_v0 }
 0x842   :  { %3468 = vmatpush1.msra.mxu1 %v4786_v39  ;;  %v3775_v39 = vld [vmem:[%s7810_s11 + $0x30] sm:$0xff] }
 0x843   :  { %3469 = vmatprep.subr.mxu1 %v5372_v0 }
 0x844   :  { %3470 = vmatpush1.msra.mxu1 %v4785_v42  ;;  %v3774_v42 = vld [vmem:[%s7810_s11 + $0x28] sm:$0xff] }
 0x845   :  { %3495 = vmatprep.subr.mxu1 %v5372_v0 }
 0x846   :  { %3496 = vmatpush2.msra.mxu1 %v4804_v32  ;;  %v3773_v32 = vld [vmem:[%s7810_s11 + $0x20] sm:$0xff] }
 0x847   :  { %3497 = vmatprep.subr.mxu1 %v5372_v0 }
 0x848   :  { %3498 = vmatpush2.msra.mxu1 %v4803_v34  ;;  %v3772_v34 = vld [vmem:[%s7810_s11 + $0x18] sm:$0xff] }
 0x849   :  { %3499 = vmatprep.subr.mxu1 %v5372_v0 }
 0x84a   :  { %3500 = vmatpush2.msra.mxu1 %v4802_v35  ;;  %v3771_v35 = vld [vmem:[%s7810_s11 + $0x10] sm:$0xff] }
 0x84b   :  { %3501 = vmatprep.subr.mxu1 %v5372_v0 }
 0x84c   :  { %3502 = vmatpush2.msra.mxu1 %v4801_v37  ;;  %v3770_v37 = vld [vmem:[%s7810_s11 + $0x8] sm:$0xff] }
 0x84d   :  { %4807 = vmatprep.subr.msk.mxu1 %vm1279_vm4, %v7245_v5  ;;  %v4820_v5 = vld [vmem:[%s7808_s8 + $0x230] sm:$0xff] }
 0x84e   :  { %3621 = vmatpush1.msra.mxu0 %v4820_v5  ;;  %v4864_v5 = vld [vmem:[%s7810_s11 + $0x110] sm:$0xff] }
 0x84f   :  { %3622 = vmatprep.subr.mxu0 %v5372_v0 }
 0x850   :  { %3623 = vmatpush1.msra.mxu0 %v4819_v58 }
 0x851   :  { %3624 = vmatprep.subr.mxu0 %v5372_v0 }
 0x852   :  { %3625 = vmatpush1.msra.mxu0 %v4818_v61 }
 0x853   :  { %3626 = vmatprep.subr.mxu0 %v5372_v0 }
 0x854   :  { %3627 = vmatpush1.msra.mxu0 %v4817_v41  ;;  %v4863_v41 = vld [vmem:[%s7810_s11 + $0x108] sm:$0xff] }
 0x855   :  { %3628 = vmatprep.subr.mxu0 %v5372_v0 }
 0x856   :  { %3629 = vmatpush1.msra.mxu0 %v4816_v43  ;;  %v4851_v43 = vld [vmem:[%s7812_s10 + $0x8] sm:$0xf] }
 0x857   :  { %3630 = vmatprep.subr.mxu0 %v5372_v0 }
 0x858   :  { %3631 = vmatpush1.msra.mxu0 %v4815_v19 }
 0x859   :  { %3632 = vmatprep.subr.mxu0 %v5372_v0 }
 0x85a   :  { %3633 = vmatpush1.msra.mxu0 %v4814_v47  ;;  %v4862_v47 = vld [vmem:[%s7810_s11 + $0x100] sm:$0xff] }
 0x85b   :  { %3634 = vmatprep.subr.mxu0 %v5372_v0 }
 0x85c   :  { %3635 = vmatpush1.msra.mxu0 %v4813_v49  ;;  %v4861_v49 = vld [vmem:[%s7810_s11 + $0xf8] sm:$0xff] }
 0x85d   :  { %3636 = vmatprep.subr.mxu0 %v5372_v0 }
 0x85e   :  { %3637 = vmatpush1.msra.mxu0 %v4812_v50  ;;  %v4867_v50 = vld [vmem:[%s7812_s10 + $0xc] sm:$0xf] }
 0x85f   :  { %3638 = vmatprep.subr.mxu0 %v5372_v0 }
 0x860   :  { %3639 = vmatpush1.msra.mxu0 %v4811_v12  ;;  %v4881_v12 = vld [vmem:[%s7810_s11 + $0x178] sm:$0xff] }
 0x861   :  { %3640 = vmatprep.subr.mxu0 %v5372_v0 }
 0x862   :  { %3641 = vmatpush1.msra.mxu0 %v4810_v20  ;;  %v4860_v20 = vld [vmem:[%s7810_s11 + $0xf0] sm:$0xff] }
 0x863   :  { %3666 = vmatprep.subr.mxu0 %v5372_v0 }
 0x8dd   :  { %v3335_v48 = vpop.f32.mrf.mxu0 }
 0x8df   :  { %v3337_v51 = vpop.f32.mrf.mxu0 }
 0x8e0   :  { %v4859_v51 = vld [vmem:[%s7810_s11 + $0xe8] sm:$0xff] }
 0x8e1   :  { %v3262_v44 = vpop.f32.mrf.mxu1 }
 0x8e2   :  { %v3336_v53 = vadd.f32 %v3335_v48, %v3262_v44  ;;  %v4880_v48 = vld [vmem:[%s7810_s11 + $0x170] sm:$0xff]  ;;  %v4879_v44 = vld [vmem:[%s7810_s11 + $0x168] sm:$0xff] }
 0x8e3   :  { %v3264_v56 = vpop.f32.mrf.mxu1 }
 0x8e4   :  { %v4878_v56 = vld [vmem:[%s7810_s11 + $0x160] sm:$0xff] }
 0x8e5   :  { %v3410_v60 = vpop.f32.mrf.mxu1 }
 0x8e7   :  { %v3412_v7 = vpop.f32.mrf.mxu1 }
 0x8e8   :  { %4805 = vmatprep.mubr.msk.f32.mxu1 %vm51_vm1, %v3412_v7  ;;  %v4877_v7 = vld [vmem:[%s7810_s11 + $0x158] sm:$0xff] }
 0x8e9   :  { %3504 = vmatmul.mubr.f32.vlgmr.msra.gmra.mxu1 %v3410_v60  ;;  %v4857_v60 = vld [vmem:[%s7810_s11 + $0xd8] sm:$0xff] }
 0x8ea   :  { %4808 = vmatpush1.msk.msra.mxu1 %vm1279_vm4, %v7247_v55  ;;  %3579 = vmatprep.mubr.f32.mxu1 %v5372_v0  ;;  %v4829_v55 = vld [vmem:[%s7808_s8 + $0x278] sm:$0xff] }
 0x8eb   :  { %3545 = vmatprep.subr.mxu1 %v7254_v38  ;;  %3667 = vmatpush2.msra.mxu0 %v4829_v55  ;;  %v4827_v38 = vld [vmem:[%s7808_s8 + $0x268] sm:$0xff] }
 0x8ec   :  { %3546 = vmatpush1.msra.mxu1 %v7258_v46  ;;  %3668 = vmatprep.subr.mxu0 %v5372_v0  ;;  %v4826_v46 = vld [vmem:[%s7808_s8 + $0x260] sm:$0xff]  ;;  %v4875_v55 = vld [vmem:[%s7810_s11 + $0x148] sm:$0xff] }
 0x8ed   :  { %4809 = vmatmul.mubr.msk.f32.vlgmr.msra.gmra.mxu1 %vm2995_vm8, %v4806_v62  ;;  %5240 = vmatprep.subr.mxu1 %v5372_v0  ;;  %v4876_v62 = vld [vmem:[%s7810_s11 + $0x150] sm:$0xff] }
 0x8ee   :  { %5242 = vmatprep.mubr.msk.f32.mxu1 %vm5373_vm0, %v5372_v0  ;;  %3669 = vmatpush2.msra.mxu0 %v4828_v6  ;;  %v4856_v6 = vld [vmem:[%s7810_s11 + $0xd0] sm:$0xff] }
 0x8ef   :  { %3670 = vmatprep.subr.mxu0 %v5372_v0 }
 0x8f0   :  { %3671 = vmatpush2.msra.mxu0 %v4827_v38  ;;  %v4874_v38 = vld [vmem:[%s7810_s11 + $0x140] sm:$0xff] }
 0x8f1   :  { %3672 = vmatprep.subr.mxu0 %v5372_v0 }
 0x8f2   :  { %3673 = vmatpush2.msra.mxu0 %v4826_v46  ;;  %v4855_v46 = vld [vmem:[%s7810_s11 + $0xc8] sm:$0xff] }
 0x8f3   :  { %5250 = vmatprep.subr.mxu0 %v5372_v0 }
 0x9a9   :  { %v3505_v8 = vpop.f32.mrf.mxu1 }
 0x9aa   :  { %v3509_v9 = vadd.f32 %v3505_v8, %v3336_v53  ;;  %v4858_v53 = vld [vmem:[%s7810_s11 + $0xe0] sm:$0xff]  ;;  %v4873_v8 = vld [vmem:[%s7810_s11 + $0x138] sm:$0xff] }
 0x9ab   :  { %v3507_v10 = vpop.f32.mrf.mxu1 }
 0x9ac   :  { %v4872_v10 = vld [vmem:[%s7810_s11 + $0x130] sm:$0xff] }
 0x9ad   :  { %v3581_v11 = vpop.f32.mrf.mxu1 }
 0x9af   :  { %v3583_v13 = vpop.f32.mrf.mxu1 }
 0x9b0   :  { %4830 = vmatprep.mubr.msk.f32.mxu0 %vm51_vm1, %v3583_v13  ;;  %v4870_v13 = vld [vmem:[%s7810_s11 + $0x120] sm:$0xff] }
 0x9b1   :  { %3675 = vmatmul.mubr.f32.vlgmr.msra.gmra.mxu0 %v3581_v11  ;;  %v4871_v11 = vld [vmem:[%s7810_s11 + $0x128] sm:$0xff] }
 0x9b2   :  { %5274 = vmatprep.mubr.msk.f32.mxu0 %vm5373_vm0, %v5372_v0  ;;  %5251 = vmatpush3.msra.mxu0 %v4848_v14 }
 0x9b3   :  { %5252 = vmatprep.subr.mxu0 %v5372_v0 }
 0x9b4   :  { %5253 = vmatpush3.msra.mxu0 %v4847_v15 }
 0x9b5   :  { %5254 = vmatprep.subr.mxu0 %v5372_v0 }
 0x9b6   :  { %5255 = vmatpush3.msra.mxu0 %v4846_v16 }
 0x9b7   :  { %5256 = vmatprep.subr.mxu0 %v5372_v0 }
 0x9b8   :  { %5257 = vmatpush3.msra.mxu0 %v4845_v17 }
 0x9b9   :  { %5258 = vmatprep.subr.mxu0 %v5372_v0 }
 0x9ba   :  { %5259 = vmatpush3.msra.mxu0 %v4844_v18 }
 0x9bb   :  { %5260 = vmatprep.subr.mxu0 %v5372_v0 }
 0x9bc   :  { %5261 = vmatpush3.msra.mxu0 %v4843_v1 }
 0x9bd   :  { %5262 = vmatprep.subr.mxu0 %v5372_v0 }
 0x9be   :  { %5263 = vmatpush3.msra.mxu0 %v4842_v21 }
 0x9bf   :  { %5264 = vmatprep.subr.mxu0 %v5372_v0 }
 0x9c0   :  { %5265 = vmatpush3.msra.mxu0 %v4841_v59 }
 0x9c1   :  { %5266 = vmatprep.subr.mxu0 %v5372_v0 }
 0x9c2   :  { %5267 = vmatpush3.msra.mxu0 %v4840_v2 }
 0x9c3   :  { %5268 = vmatprep.subr.mxu0 %v5372_v0 }
 0x9c4   :  { %5269 = vmatpush3.msra.mxu0 %v4839_v3 }
 0x9c5   :  { %5270 = vmatprep.subr.mxu0 %v5372_v0 }
 0x9c6   :  { %5271 = vmatpush3.msra.mxu0 %v4838_v40 }
 0x9c7   :  { %5272 = vmatprep.subr.mxu0 %v5372_v0 }
 0x9c8   :  { %5273 = vmatpush3.msra.mxu0 %v4837_v63 }
 0x9c9   :  { %5304 = vmatprep.subr.mxu0 %v5372_v0 }
 0xa71   :  { %v3676_v4 = vpop.f32.mrf.mxu0 }
 0xa72   :  { %v3680_v23 = vadd.f32 %v3676_v4, %v3509_v9  ;;  %v4854_v9 = vld [vmem:[%s7810_s11 + $0xc0] sm:$0xff] }
 0xa73   :  { %v3678_v24 = vpop.f32.mrf.mxu0 }
 0xa74   :  { %v3688_v25 = vadd.f32 %v4831_v22, %v3680_v23  ;;  %v4883_v23 = vld [vmem:[%s7813_s12] ss:$0 sm:$0xff] }
 0xa76   :  { %v3689_v26 = vmul.f32 0.01, %v3688_v25 }
 0xa78   :  { %v7599_v30 = vmax.f32 %v3688_v25, %v3689_v26 }
 0xa7a   :  { %5241 = vmatpush3.msk.msra.mxu1 %vm2938_vm6, %v7599_v30 }
 0xa7b   :  { %5243 = vmatmul.mubr.msk.f32.vlgmr.msra.gmra.mxu1 %vm3692_vm9, %v3691_v27  ;;  %5245 = vmatprep.subr.mxu1 %v5372_v0 }
 0xa7c   :  { %5246 = vmatpush3.msk.msra.mxu1 %vm2938_vm6, %v7599_v30  ;;  %5247 = vmatprep.mubr.msk.f32.mxu1 %vm5373_vm0, %v5372_v0 }
 0xa7d   :  { %5277 = vmatprep.subr.mxu1 %v5372_v0 }
 0xa7f   :  { %5248 = vmatmul.mubr.msk.f32.vlgmr.msra.gmra.mxu1 %vm3692_vm9, %v4834_v45 }
 0xa80   :  { %5278 = vmatpush3.msra.mxu1 %v3780_v33  ;;  %5301 = vmatprep.mubr.msk.f32.mxu1 %vm5373_vm0, %v5372_v0 }
 0xa81   :  { %5279 = vmatprep.subr.mxu1 %v5372_v0 }
 0xa82   :  { %5280 = vmatpush3.msra.mxu1 %v3779_v36 }
 0xa83   :  { %5281 = vmatprep.subr.mxu1 %v5372_v0 }
 0xa84   :  { %5282 = vmatpush3.msra.mxu1 %v3778_v28 }
 0xa85   :  { %5283 = vmatprep.subr.mxu1 %v5372_v0 }
 0xa86   :  { %5284 = vmatpush3.msra.mxu1 %v3777_v29 }
 0xa87   :  { %5285 = vmatprep.subr.mxu1 %v5372_v0 }
 0xa88   :  { %5286 = vmatpush3.msra.mxu1 %v3776_v31 }
 0xa89   :  { %5287 = vmatprep.subr.mxu1 %v5372_v0 }
 0xa8a   :  { %5288 = vmatpush3.msra.mxu1 %v3775_v39 }
 0xa8b   :  { %5289 = vmatprep.subr.mxu1 %v5372_v0 }
 0xa8c   :  { %5290 = vmatpush3.msra.mxu1 %v3774_v42 }
 0xa8d   :  { %5291 = vmatprep.subr.mxu1 %v5372_v0 }
 0xa8e   :  { %5292 = vmatpush3.msra.mxu1 %v3773_v32 }
 0xa8f   :  { %5293 = vmatprep.subr.mxu1 %v5372_v0 }
 0xa90   :  { %5294 = vmatpush3.msra.mxu1 %v3772_v34 }
 0xa91   :  { %5295 = vmatprep.subr.mxu1 %v5372_v0 }
 0xa92   :  { %5296 = vmatpush3.msra.mxu1 %v3771_v35 }
 0xa93   :  { %5297 = vmatprep.subr.mxu1 %v5372_v0 }
 0xa94   :  { %5298 = vmatpush3.msra.mxu1 %v3770_v37 }
 0xa95   :  { %5299 = vmatprep.subr.mxu1 %v5372_v0 }
 0xa96   :  { %5300 = vmatpush3.msra.mxu1 %v3769_v54 }
 0xa97   :  { %5309 = vmatprep.subr.mxu1 %v5372_v0 }
 0xb3b   :  { %v3765_v57 = vpop.f32.mrf.mxu1 }
 0xb3c   :  { %5302 = vmatmul.mubr.msk.f32.vlgmr.msra.gmra.mxu1 %vm2965_vm7, %v3765_v57 }
 0xb3d   :  { %v5244_v58 = vpop.f32.mrf.mxu1  ;;  %5310 = vmatpush3.msra.mxu1 %v4865_v52  ;;  %5333 = vmatprep.mubr.msk.f32.mxu1 %vm5373_vm0, %v5372_v0 }
 0xb3e   :  { %5311 = vmatprep.subr.mxu1 %v5372_v0 }
 0xb3f   :  { %v3852_v61 = vpop.f32.mrf.mxu1  ;;  %5312 = vmatpush3.msra.mxu1 %v4864_v5 }
 0xb40   :  { %5275 = vmatmul.mubr.msk.f32.vlgmr.msra.gmra.mxu0 %vm2965_vm7, %v3852_v61  ;;  %5313 = vmatprep.subr.mxu1 %v5372_v0 }
 0xb41   :  { %5305 = vmatpush3.msk.msra.mxu0 %vm2938_vm6, %v7599_v30  ;;  %5306 = vmatprep.mubr.msk.f32.mxu0 %vm5373_vm0, %v5372_v0  ;;  %v5249_v19 = vpop.f32.mrf.mxu1 }
 0xb42   :  { %5336 = vmatprep.subr.mxu0 %v5372_v0  ;;  %5314 = vmatpush3.msra.mxu1 %v4863_v41 }
 0xb43   :  { %5315 = vmatprep.subr.mxu1 %v5372_v0 }
 0xb44   :  { %5307 = vmatmul.mubr.msk.f32.vlgmr.msra.gmra.mxu0 %vm3692_vm9, %v4851_v43  ;;  %5316 = vmatpush3.msra.mxu1 %v4862_v47 }
 0xb45   :  { %5337 = vmatpush3.msk.msra.mxu0 %vm2938_vm6, %v7599_v30  ;;  %5338 = vmatprep.mubr.msk.f32.mxu0 %vm5373_vm0, %v5372_v0 }
 0xb46   :  { %5341 = vmatprep.subr.mxu0 %v5372_v0  ;;  %5317 = vmatprep.subr.mxu1 %v5372_v0 }
 0xb47   :  { %5318 = vmatpush3.msra.mxu1 %v4861_v49 }
 0xb48   :  { %5339 = vmatmul.mubr.msk.f32.vlgmr.msra.gmra.mxu0 %vm3692_vm9, %v4867_v50  ;;  %5319 = vmatprep.subr.mxu1 %v5372_v0 }
 0xb49   :  { %5342 = vmatpush3.msra.mxu0 %v4881_v12  ;;  %5320 = vmatpush3.msra.mxu1 %v4860_v20 }
 0xb4a   :  { %5343 = vmatprep.subr.mxu0 %v5372_v0  ;;  %5321 = vmatprep.subr.mxu1 %v5372_v0 }
 0xb4b   :  { %5344 = vmatpush3.msra.mxu0 %v4880_v48  ;;  %5322 = vmatpush3.msra.mxu1 %v4859_v51 }
 0xb4c   :  { %5345 = vmatprep.subr.mxu0 %v5372_v0  ;;  %5323 = vmatprep.subr.mxu1 %v5372_v0 }
 0xb4d   :  { %5346 = vmatpush3.msra.mxu0 %v4879_v44  ;;  %5324 = vmatpush3.msra.mxu1 %v4858_v53 }
 0xb4e   :  { %5347 = vmatprep.subr.mxu0 %v5372_v0  ;;  %5325 = vmatprep.subr.mxu1 %v5372_v0 }
 0xb4f   :  { %5348 = vmatpush3.msra.mxu0 %v4878_v56  ;;  %5326 = vmatpush3.msra.mxu1 %v4857_v60 }
 0xb50   :  { %5349 = vmatprep.subr.mxu0 %v5372_v0  ;;  %5327 = vmatprep.subr.mxu1 %v5372_v0 }
 0xb51   :  { %5350 = vmatpush3.msra.mxu0 %v4877_v7  ;;  %5365 = vmatprep.mubr.msk.f32.mxu0 %vm5373_vm0, %v5372_v0 }
 0xb52   :  { %5351 = vmatprep.subr.mxu0 %v5372_v0  ;;  %5328 = vmatpush3.msra.mxu1 %v4856_v6 }
 0xb53   :  { %5352 = vmatpush3.msra.mxu0 %v4876_v62  ;;  %5329 = vmatprep.subr.mxu1 %v5372_v0 }
 0xb54   :  { %5353 = vmatprep.subr.mxu0 %v5372_v0  ;;  %5330 = vmatpush3.msra.mxu1 %v4855_v46 }
 0xb55   :  { %5354 = vmatpush3.msra.mxu0 %v4875_v55  ;;  %5331 = vmatprep.subr.mxu1 %v5372_v0 }
 0xb56   :  { %5355 = vmatprep.subr.mxu0 %v5372_v0  ;;  %5332 = vmatpush3.msra.mxu1 %v4854_v9 }
 0xb57   :  { %5356 = vmatpush3.msra.mxu0 %v4874_v38 }
 0xb58   :  { %5357 = vmatprep.subr.mxu0 %v5372_v0 }
 0xb59   :  { %5358 = vmatpush3.msra.mxu0 %v4873_v8 }
 0xb5a   :  { %5359 = vmatprep.subr.mxu0 %v5372_v0 }
 0xb5b   :  { %5360 = vmatpush3.msra.mxu0 %v4872_v10 }
 0xb5c   :  { %5361 = vmatprep.subr.mxu0 %v5372_v0 }
 0xb5d   :  { %5362 = vmatpush3.msra.mxu0 %v4871_v11 }
 0xb5e   :  { %5363 = vmatprep.subr.mxu0 %v5372_v0 }
 0xb5f   :  { %5364 = vmatpush3.msra.mxu0 %v4870_v13 }
 0xbfc   :  { %v4011_v14 = vpop.f32.mrf.mxu1 }
 0xbfe   :  { %v5303_v15 = vpop.f32.mrf.mxu1 }
 0xc00   :  { %v3938_v16 = vpop.f32.mrf.mxu0 }
 0xc01   :  { %v4012_v17 = vadd.f32 %v4011_v14, %v3938_v16 }
 0xc02   :  { %v5276_v18 = vpop.f32.mrf.mxu0 }
 0xc04   :  { %v4086_v1 = vpop.f32.mrf.mxu0 }
 0xc05   :  { %5334 = vmatmul.mubr.msk.f32.vlgmr.msra.gmra.mxu1 %vm2965_vm7, %v4086_v1 }
 0xc06   :  { %v5308_v21 = vpop.f32.mrf.mxu0 }
 0xc08   :  { %v4248_v59 = vpop.f32.mrf.mxu0 }
 0xc09   :  { %5366 = vmatmul.mubr.msk.f32.vlgmr.msra.gmra.mxu0 %vm2965_vm7, %v4248_v59 }
 0xc0a   :  { %v5340_v2 = vpop.f32.mrf.mxu0 }
 0xcc5   :  { %v4172_v3 = vpop.f32.mrf.mxu1 }
 0xcc6   :  { %v4176_v4 = vadd.f32 %v4172_v3, %v4012_v17 }
 0xcc7   :  { %v5335_v0 = vpop.f32.mrf.mxu1 }
 0xcc9   :  { %v4334_v22 = vpop.f32.mrf.mxu0 }
 0xcca   :  { %v4338_v24 = vadd.f32 %v4334_v22, %v4176_v4 }
 0xccb   :  { %v5367_v25 = vpop.f32.mrf.mxu0 }
 0xccc   :  { %v4346_v26 = vadd.f32 %v4883_v23, %v4338_v24 }
 0xcce   :  { %4348 = vst.msk [vmem:[%s7814_s13] sm:$0xf] %vm4347_vm10, %v4346_v26 }

</bundles_post_ra>
